<compile_context>
chip_gen: v7x
topology: tpu7x:2x2x1
jax: 0.10.0
libtpu: 0.0.40
codegen_flags: <defaults>
</compile_context>

<pallas_src>
import jax
import jax.numpy as jnp
import numpy as np
from jax import lax
from jax.experimental import pallas as pl
from jax.experimental.pallas import tpu as pltpu

REGIONS = 49     # fixed by affine_v / affine_g / affine_h shapes
VDIM = 512       # fixed by affine_video input dim
ADIM = 128       # fixed by affine_audio input dim
HIDDEN = 64      # hidden_size hyperparameter (512 in the original; small here)


def _round_up(x, m):
    return ((x + m - 1) // m) * m


def _cdiv(a, b):
    return -(-a // b)


def _default_tn_max():
    """Frames per grid step, tuned per TPU generation (HBM BW vs. VMEM)."""
    try:
        kind = jax.devices()[0].device_kind.lower()
    except Exception:
        return 64
    if ("v5 lite" in kind) or ("v5e" in kind) or ("v2" in kind) or ("v3" in kind):
        return 32    # slow HBM: TN=32 step is already DMA-dominated; save VMEM
    if "v6" in kind:
        return 96    # 128 MiB VMEM, amortize the ~0.35us/step overhead further
    return 64        # v7x and default: 64 MiB VMEM, fast HBM


def avga_kernel(audio_ref, video_ref,
                waT_ref, ba_ref, wvT_ref, bv_ref, wvvT_ref, wgT_ref, wh_ref,
                out_ref):
    f32, bf16 = jnp.float32, jnp.bfloat16
    TN = audio_ref.shape[0]
    TNR, D = video_ref.shape
    R = TNR // TN                                    # 49 regions per frame

    # ---- helper 0/1 matrices, generated on-chip (no div/mod needed) -------
    # rep[m, n]  = 1 iff frame(m) == n           (TNR, TN)
    # rept[n, m] = rep[m, n]                      (TN, TNR)
    # sel[m, r]  = 1 iff region(m) == r           (TNR, R)
    m_row = lax.broadcasted_iota(jnp.int32, (TNR, TN), 0)
    n_col = lax.broadcasted_iota(jnp.int32, (TNR, TN), 1)
    ge_lo = m_row >= n_col * R
    ge_hi = m_row >= (n_col + 1) * R
    rep = jnp.where(jnp.logical_and(ge_lo, jnp.logical_not(ge_hi)),
                    1.0, 0.0).astype(bf16)                       # (TNR, TN)
    frame = jnp.sum(jnp.where(ge_hi, 1.0, 0.0),
                    axis=1, keepdims=True)                       # (TNR, 1) == m // R

    n_row = lax.broadcasted_iota(jnp.int32, (TN, TNR), 0)
    m_col = lax.broadcasted_iota(jnp.int32, (TN, TNR), 1)
    rept = jnp.where(jnp.logical_and(m_col >= n_row * R,
                                     m_col < (n_row + 1) * R),
                     1.0, 0.0).astype(bf16)                      # (TN, TNR)

    m_idx = lax.broadcasted_iota(jnp.int32, (TNR, 1), 0).astype(f32)
    r_idx = lax.broadcasted_iota(jnp.int32, (1, R), 1).astype(f32)
    region = m_idx - float(R) * frame                            # (TNR, 1)
    sel = jnp.where(region == r_idx, 1.0, 0.0)                   # (TNR, R) f32

    # ---- audio path (batched rows) -----------------------------------------
    a = audio_ref[...].astype(bf16)                              # (TN, 128)
    h_a = jnp.maximum(
        jnp.dot(a, waT_ref[...], preferred_element_type=f32) + ba_ref[...], 0.0)
    ga = jnp.dot(h_a.astype(bf16), wgT_ref[...],
                 preferred_element_type=f32)                     # (TN, R)
    # bias[m] = ga[frame(m), region(m)]  via row-replication + diag select
    g_rep = jnp.dot(rep, ga.astype(bf16), preferred_element_type=f32)  # (TNR, R)
    bias = jnp.sum(g_rep * sel, axis=1, keepdims=True)           # (TNR, 1)

    # ---- video path (flattened frames x regions) ---------------------------
    V_bf = video_ref[...].astype(bf16)                           # (TNR, 512)
    h_v = jnp.maximum(
        jnp.dot(V_bf, wvT_ref[...], preferred_element_type=f32) + bv_ref[...], 0.0)
    cv = jnp.dot(h_v.astype(bf16), wvvT_ref[...],
                 preferred_element_type=f32)                     # (TNR, R)

    t = jnp.tanh(cv + bias)                                      # (TNR, R)
    z = jnp.sum(t * wh_ref[...], axis=1, keepdims=True)          # (TNR, 1)

    # Grouped softmax over the 49 regions of each frame.  |z| <= sum|wh| since
    # |tanh| <= 1, so subtracting that constant is a safe, per-group-constant
    # shift (softmax value unchanged) that replaces a runtime max reduce.
    shift = jnp.sum(jnp.abs(wh_ref[...]))
    e = jnp.exp(z - shift)                                       # (TNR, 1), in (0, 1]
    e_bf = e.astype(bf16)
    denom = jnp.dot(rept, e_bf, preferred_element_type=f32)      # (TN, 1)
    inv = pl.reciprocal(denom, approx=False)                     # exact; HBM-bound kernel

    # Weighted region sum, chunked over the 512 lanes (4 x 128) so the e*V
    # temporary stays at 1/4 video-tile.  128-lane stores are unmasked/dense.
    CH = 128
    for c0 in range(0, D, CH):
        eVc = e_bf * V_bf[:, c0:c0 + CH]                         # (TNR, CH) bf16
        num_c = jnp.dot(rept, eVc, preferred_element_type=f32)   # (TN, CH)
        out_ref[:, c0:c0 + CH] = (num_c * inv).astype(out_ref.dtype)


def avga_forward(audio, video, params, *, tn_max=None):
    B, T, A = audio.shape
    _, _, R, D = video.shape
    assert (A, R, D) == (ADIM, REGIONS, VDIM)
    N = B * T
    H = params["wa"].shape[0]

    if tn_max is None:
        tn_max = _default_tn_max()

    # ---- frames per grid step (multiple of 8) + megacore-friendly grid ----
    TN = min(tn_max, _round_up(N, 8))
    steps = _cdiv(N, TN)
    if steps == 1 and N >= 16:
        # Split a single giant tile so both v7x TensorCores get work.
        TN = _round_up(_cdiv(N, 2), 8)
    elif steps > 1 and steps % 2 == 1:
        # Prefer an even number of grid steps for 2-core sharding.
        TN = max(8, _round_up(_cdiv(N, steps + 1), 8))
    N_pad = _round_up(N, TN)
    num_steps = N_pad // TN

    # Free, contiguous reshapes — no dtype copies of the big video tensor.
    audio2 = audio.reshape(N, A)
    video2 = video.reshape(N * R, D)
    if N_pad != N:                          # ragged tail: zero-pad frames
        audio2 = jnp.pad(audio2, ((0, N_pad - N), (0, 0)))
        video2 = jnp.pad(video2, ((0, (N_pad - N) * R), (0, 0)))

    f32, bf16 = jnp.float32, jnp.bfloat16
    waT = params["wa"].T.astype(bf16)                     # (128, H)
    ba = params["ba"].reshape(1, H).astype(f32)           # (1, H)
    wvT = params["wv"].T.astype(bf16)                     # (512, H)
    bv = params["bv"].reshape(1, H).astype(f32)           # (1, H)
    wvvT = params["wvv"].T.astype(bf16)                   # (H, 49)
    wgT = params["wg"].T.astype(bf16)                     # (H, 49)
    wh = params["wh"].reshape(1, R).astype(f32)           # (1, 49)

    def const2d(arr):
        return pl.BlockSpec(arr.shape, lambda i: (0, 0))

    vmem_limit = (64 if TN > 64 else 48) * 1024 * 1024

    out = pl.pallas_call(
        avga_kernel,
        out_shape=jax.ShapeDtypeStruct((N_pad, D), video.dtype),
        grid_spec=pltpu.PrefetchScalarGridSpec(
            num_scalar_prefetch=0,
            grid=(num_steps,),
            in_specs=[
                pl.BlockSpec((TN, A), lambda i: (i, 0)),        # audio rows
                pl.BlockSpec((TN * R, D), lambda i: (i, 0)),    # video slab
                const2d(waT), const2d(ba),
                const2d(wvT), const2d(bv),
                const2d(wvvT), const2d(wgT), const2d(wh),
            ],
            out_specs=pl.BlockSpec((TN, D), lambda i: (i, 0)),
        ),
        compiler_params=pltpu.CompilerParams(
            dimension_semantics=("parallel",),
            vmem_limit_bytes=vmem_limit),
    )(audio2, video2, waT, ba, wvT, bv, wvvT, wgT, wh)

    return out[:N].reshape(B, T, D)


def avga_reference(audio, video, p):
    """Plain-JAX replica of the PyTorch forward, for verification."""
    B, T, A = audio.shape
    N = B * T
    V = video.reshape(N, REGIONS, VDIM)
    v_t = jax.nn.relu(jnp.einsum("nrd,hd->nrh", V, p["wv"]) + p["bv"])
    a_t = jax.nn.relu(audio.reshape(N, A) @ p["wa"].T + p["ba"])
    content = jnp.einsum("nrh,jh->nrj", v_t, p["wvv"]) + (a_t @ p["wg"].T)[:, :, None]
    z = jnp.einsum("nrj,j->nr", jnp.tanh(content), p["wh"][0])
    alpha = jax.nn.softmax(z, axis=-1)
    c = jnp.einsum("nr,nrd->nd", alpha, V)
    return c.reshape(B, T, VDIM)


def xavier_uniform(key, shape):
    fan_out, fan_in = shape
    bound = float(np.sqrt(6.0 / (fan_in + fan_out)))
    return jax.random.uniform(key, shape, jnp.float32, -bound, bound)


def init_params(key, hidden=HIDDEN):
    ks = jax.random.split(key, 7)
    return {
        "wa": xavier_uniform(ks[0], (hidden, ADIM)),
        "ba": jax.random.uniform(ks[1], (hidden,), jnp.float32, -0.05, 0.05),
        "wv": xavier_uniform(ks[2], (hidden, VDIM)),
        "bv": jax.random.uniform(ks[3], (hidden,), jnp.float32, -0.05, 0.05),
        "wvv": xavier_uniform(ks[4], (REGIONS, hidden)),
        "wg": xavier_uniform(ks[5], (REGIONS, hidden)),
        "wh": xavier_uniform(ks[6], (1, REGIONS)),
    }


if __name__ == "__main__":
    key = jax.random.PRNGKey(0)
    k_p, k_a, k_v = jax.random.split(key, 3)

    B, T = 2, 3
    params = init_params(k_p)
    audio = jax.random.normal(k_a, (B, T, ADIM), jnp.float32)
    video = jax.random.normal(k_v, (B, T, REGIONS, VDIM), jnp.float32)

    out = avga_forward(audio, video, params)
    out = jax.block_until_ready(out)
    assert out.shape == (B, T, VDIM)

    ref = jax.block_until_ready(avga_reference(audio, video, params))
    np.testing.assert_allclose(np.asarray(out), np.asarray(ref),
                               rtol=2e-2, atol=2e-2)
    print("KERNEL_OK")
</pallas_src>

<mosaic_0001>
module attributes {stable_mosaic.version = 11 : i64} {
  func.func @avga_kernel(%arg0: i32, %arg1: memref<8x128xf32, #tpu.memory_space<vmem>>, %arg2: memref<392x512xf32, #tpu.memory_space<vmem>>, %arg3: memref<128x64xbf16, #tpu.memory_space<vmem>>, %arg4: memref<1x64xf32, #tpu.memory_space<vmem>>, %arg5: memref<512x64xbf16, #tpu.memory_space<vmem>>, %arg6: memref<1x64xf32, #tpu.memory_space<vmem>>, %arg7: memref<64x49xbf16, #tpu.memory_space<vmem>>, %arg8: memref<64x49xbf16, #tpu.memory_space<vmem>>, %arg9: memref<1x49xf32, #tpu.memory_space<vmem>>, %arg10: memref<8x512xf32, #tpu.memory_space<vmem>>) attributes {dimension_semantics = [#tpu.dimension_semantics<parallel>], iteration_bounds = array<i64: 1>, scalar_prefetch = 0 : i64, scratch_operands = 0 : i64, tpu.core_type = #tpu.core_type<tc>, window_params = [{transform_indices = @transform_0, window_bounds = array<i64: 8, 128>}, {transform_indices = @transform_1, window_bounds = array<i64: 392, 512>}, {pipeline_mode = #tpu.pipeline_mode<synchronous>, transform_indices = @transform_2, window_bounds = array<i64: 128, 64>}, {pipeline_mode = #tpu.pipeline_mode<synchronous>, transform_indices = @transform_3, window_bounds = array<i64: 1, 64>}, {pipeline_mode = #tpu.pipeline_mode<synchronous>, transform_indices = @transform_4, window_bounds = array<i64: 512, 64>}, {pipeline_mode = #tpu.pipeline_mode<synchronous>, transform_indices = @transform_5, window_bounds = array<i64: 1, 64>}, {pipeline_mode = #tpu.pipeline_mode<synchronous>, transform_indices = @transform_6, window_bounds = array<i64: 64, 49>}, {pipeline_mode = #tpu.pipeline_mode<synchronous>, transform_indices = @transform_7, window_bounds = array<i64: 64, 49>}, {pipeline_mode = #tpu.pipeline_mode<synchronous>, transform_indices = @transform_8, window_bounds = array<i64: 1, 49>}, {transform_indices = @transform_9, window_bounds = array<i64: 8, 512>}]} {
    %0 = tpu.iota {dimensions = array<i32: 0>} : vector<392x8xi32>
    %1 = tpu.iota {dimensions = array<i32: 1>} : vector<392x8xi32>
    %c49_i32 = arith.constant 49 : i32
    %2 = vector.broadcast %c49_i32 : i32 to vector<392x8xi32>
    %3 = arith.muli %1, %2 : vector<392x8xi32>
    %4 = arith.cmpi sge, %0, %3 : vector<392x8xi32>
    %c1_i32 = arith.constant 1 : i32
    %5 = vector.broadcast %c1_i32 : i32 to vector<392x8xi32>
    %6 = arith.addi %1, %5 : vector<392x8xi32>
    %c49_i32_0 = arith.constant 49 : i32
    %7 = vector.broadcast %c49_i32_0 : i32 to vector<392x8xi32>
    %8 = arith.muli %6, %7 : vector<392x8xi32>
    %9 = arith.cmpi sge, %0, %8 : vector<392x8xi32>
    %cst = arith.constant dense<true> : vector<392x8xi1>
    %10 = arith.xori %9, %cst : vector<392x8xi1>
    %11 = arith.andi %4, %10 : vector<392x8xi1>
    %cst_1 = arith.constant 1.000000e+00 : f32
    %cst_2 = arith.constant 0.000000e+00 : f32
    %12 = vector.broadcast %cst_1 : f32 to vector<392x8xf32>
    %13 = vector.broadcast %cst_2 : f32 to vector<392x8xf32>
    %14 = arith.select %11, %12, %13 : vector<392x8xi1>, vector<392x8xf32>
    %15 = arith.truncf %14 : vector<392x8xf32> to vector<392x8xbf16>
    %cst_3 = arith.constant 1.000000e+00 : f32
    %cst_4 = arith.constant 0.000000e+00 : f32
    %16 = vector.broadcast %cst_3 : f32 to vector<392x8xf32>
    %17 = vector.broadcast %cst_4 : f32 to vector<392x8xf32>
    %18 = arith.select %9, %16, %17 : vector<392x8xi1>, vector<392x8xf32>
    %cst_5 = arith.constant dense<0.000000e+00> : vector<392xf32>
    %19 = vector.multi_reduction <add>, %18, %cst_5 [1] : vector<392x8xf32> to vector<392xf32>
    %20 = vector.shape_cast %19 : vector<392xf32> to vector<392x1xf32>
    %21 = tpu.iota {dimensions = array<i32: 0>} : vector<8x392xi32>
    %22 = tpu.iota {dimensions = array<i32: 1>} : vector<8x392xi32>
    %c49_i32_6 = arith.constant 49 : i32
    %23 = vector.broadcast %c49_i32_6 : i32 to vector<8x392xi32>
    %24 = arith.muli %21, %23 : vector<8x392xi32>
    %25 = arith.cmpi sge, %22, %24 : vector<8x392xi32>
    %c1_i32_7 = arith.constant 1 : i32
    %26 = vector.broadcast %c1_i32_7 : i32 to vector<8x392xi32>
    %27 = arith.addi %21, %26 : vector<8x392xi32>
    %c49_i32_8 = arith.constant 49 : i32
    %28 = vector.broadcast %c49_i32_8 : i32 to vector<8x392xi32>
    %29 = arith.muli %27, %28 : vector<8x392xi32>
    %30 = arith.cmpi slt, %22, %29 : vector<8x392xi32>
    %31 = arith.andi %25, %30 : vector<8x392xi1>
    %cst_9 = arith.constant 1.000000e+00 : f32
    %cst_10 = arith.constant 0.000000e+00 : f32
    %32 = vector.broadcast %cst_9 : f32 to vector<8x392xf32>
    %33 = vector.broadcast %cst_10 : f32 to vector<8x392xf32>
    %34 = arith.select %31, %32, %33 : vector<8x392xi1>, vector<8x392xf32>
    %35 = arith.truncf %34 : vector<8x392xf32> to vector<8x392xbf16>
    %36 = tpu.iota {dimensions = array<i32: 0>} : vector<392x1xi32>
    %37 = arith.sitofp %36 : vector<392x1xi32> to vector<392x1xf32>
    %38 = tpu.iota {dimensions = array<i32: 1>} : vector<1x49xi32>
    %39 = arith.sitofp %38 : vector<1x49xi32> to vector<1x49xf32>
    %cst_11 = arith.constant 4.900000e+01 : f32
    %40 = vector.broadcast %cst_11 : f32 to vector<392x1xf32>
    %41 = arith.mulf %40, %20 : vector<392x1xf32>
    %42 = arith.subf %37, %41 : vector<392x1xf32>
    %43 = vector.broadcast %42 : vector<392x1xf32> to vector<392x49xf32>
    %44 = vector.broadcast %39 : vector<1x49xf32> to vector<392x49xf32>
    %45 = arith.cmpf oeq, %43, %44 : vector<392x49xf32>
    %cst_12 = arith.constant 1.000000e+00 : f32
    %cst_13 = arith.constant 0.000000e+00 : f32
    %46 = vector.broadcast %cst_12 : f32 to vector<392x49xf32>
    %47 = vector.broadcast %cst_13 : f32 to vector<392x49xf32>
    %48 = arith.select %45, %46, %47 : vector<392x49xi1>, vector<392x49xf32>
    %c0 = arith.constant 0 : index
    %c0_14 = arith.constant 0 : index
    %49 = vector.load %arg1[%c0, %c0_14] : memref<8x128xf32, #tpu.memory_space<vmem>>, vector<8x128xf32>
    %50 = arith.truncf %49 : vector<8x128xf32> to vector<8x128xbf16>
    %c0_15 = arith.constant 0 : index
    %c0_16 = arith.constant 0 : index
    %51 = vector.load %arg3[%c0_15, %c0_16] : memref<128x64xbf16, #tpu.memory_space<vmem>>, vector<128x64xbf16>
    %cst_17 = arith.constant dense<0.000000e+00> : vector<8x64xf32>
    %52 = tpu.matmul %50, %51, %cst_17 {dimension_numbers = #tpu.dot_dimension_numbers<[1], [0], [0], [1], [0, 0, 1, 1], [], []>} : vector<8x128xbf16>, vector<128x64xbf16>, vector<8x64xf32> -> vector<8x64xf32>
    %c0_18 = arith.constant 0 : index
    %c0_19 = arith.constant 0 : index
    %53 = vector.load %arg4[%c0_18, %c0_19] : memref<1x64xf32, #tpu.memory_space<vmem>>, vector<1x64xf32>
    %54 = vector.broadcast %53 : vector<1x64xf32> to vector<8x64xf32>
    %55 = arith.addf %52, %54 : vector<8x64xf32>
    %cst_20 = arith.constant 0.000000e+00 : f32
    %56 = vector.broadcast %cst_20 : f32 to vector<8x64xf32>
    %57 = arith.maximumf %55, %56 : vector<8x64xf32>
    %58 = arith.truncf %57 : vector<8x64xf32> to vector<8x64xbf16>
    %c0_21 = arith.constant 0 : index
    %c0_22 = arith.constant 0 : index
    %59 = vector.load %arg8[%c0_21, %c0_22] : memref<64x49xbf16, #tpu.memory_space<vmem>>, vector<64x49xbf16>
    %cst_23 = arith.constant dense<0.000000e+00> : vector<8x49xf32>
    %60 = tpu.matmul %58, %59, %cst_23 {dimension_numbers = #tpu.dot_dimension_numbers<[1], [0], [0], [1], [0, 0, 1, 1], [], []>} : vector<8x64xbf16>, vector<64x49xbf16>, vector<8x49xf32> -> vector<8x49xf32>
    %61 = arith.truncf %60 : vector<8x49xf32> to vector<8x49xbf16>
    %cst_24 = arith.constant dense<0.000000e+00> : vector<392x49xf32>
    %62 = tpu.matmul %15, %61, %cst_24 {dimension_numbers = #tpu.dot_dimension_numbers<[1], [0], [0], [1], [0, 0, 1, 1], [], []>} : vector<392x8xbf16>, vector<8x49xbf16>, vector<392x49xf32> -> vector<392x49xf32>
    %63 = arith.mulf %62, %48 : vector<392x49xf32>
    %cst_25 = arith.constant dense<0.000000e+00> : vector<392xf32>
    %64 = vector.multi_reduction <add>, %63, %cst_25 [1] : vector<392x49xf32> to vector<392xf32>
    %65 = vector.shape_cast %64 : vector<392xf32> to vector<392x1xf32>
    %c0_26 = arith.constant 0 : index
    %c0_27 = arith.constant 0 : index
    %66 = vector.load %arg2[%c0_26, %c0_27] : memref<392x512xf32, #tpu.memory_space<vmem>>, vector<392x512xf32>
    %67 = arith.truncf %66 : vector<392x512xf32> to vector<392x512xbf16>
    %c0_28 = arith.constant 0 : index
    %c0_29 = arith.constant 0 : index
    %68 = vector.load %arg5[%c0_28, %c0_29] : memref<512x64xbf16, #tpu.memory_space<vmem>>, vector<512x64xbf16>
    %cst_30 = arith.constant dense<0.000000e+00> : vector<392x64xf32>
    %69 = tpu.matmul %67, %68, %cst_30 {dimension_numbers = #tpu.dot_dimension_numbers<[1], [0], [0], [1], [0, 0, 1, 1], [], []>} : vector<392x512xbf16>, vector<512x64xbf16>, vector<392x64xf32> -> vector<392x64xf32>
    %c0_31 = arith.constant 0 : index
    %c0_32 = arith.constant 0 : index
    %70 = vector.load %arg6[%c0_31, %c0_32] : memref<1x64xf32, #tpu.memory_space<vmem>>, vector<1x64xf32>
    %71 = vector.broadcast %70 : vector<1x64xf32> to vector<392x64xf32>
    %72 = arith.addf %69, %71 : vector<392x64xf32>
    %cst_33 = arith.constant 0.000000e+00 : f32
    %73 = vector.broadcast %cst_33 : f32 to vector<392x64xf32>
    %74 = arith.maximumf %72, %73 : vector<392x64xf32>
    %75 = arith.truncf %74 : vector<392x64xf32> to vector<392x64xbf16>
    %c0_34 = arith.constant 0 : index
    %c0_35 = arith.constant 0 : index
    %76 = vector.load %arg7[%c0_34, %c0_35] : memref<64x49xbf16, #tpu.memory_space<vmem>>, vector<64x49xbf16>
    %cst_36 = arith.constant dense<0.000000e+00> : vector<392x49xf32>
    %77 = tpu.matmul %75, %76, %cst_36 {dimension_numbers = #tpu.dot_dimension_numbers<[1], [0], [0], [1], [0, 0, 1, 1], [], []>} : vector<392x64xbf16>, vector<64x49xbf16>, vector<392x49xf32> -> vector<392x49xf32>
    %78 = vector.broadcast %65 : vector<392x1xf32> to vector<392x49xf32>
    %79 = arith.addf %77, %78 : vector<392x49xf32>
    %80 = math.tanh %79 : vector<392x49xf32>
    %c0_37 = arith.constant 0 : index
    %c0_38 = arith.constant 0 : index
    %81 = vector.load %arg9[%c0_37, %c0_38] : memref<1x49xf32, #tpu.memory_space<vmem>>, vector<1x49xf32>
    %82 = vector.broadcast %81 : vector<1x49xf32> to vector<392x49xf32>
    %83 = arith.mulf %80, %82 : vector<392x49xf32>
    %cst_39 = arith.constant dense<0.000000e+00> : vector<392xf32>
    %84 = vector.multi_reduction <add>, %83, %cst_39 [1] : vector<392x49xf32> to vector<392xf32>
    %85 = vector.shape_cast %84 : vector<392xf32> to vector<392x1xf32>
    %c0_40 = arith.constant 0 : index
    %c0_41 = arith.constant 0 : index
    %86 = vector.load %arg9[%c0_40, %c0_41] : memref<1x49xf32, #tpu.memory_space<vmem>>, vector<1x49xf32>
    %87 = math.absf %86 : vector<1x49xf32>
    %88 = vector.shape_cast %87 : vector<1x49xf32> to vector<1x1x49xf32>
    %cst_42 = arith.constant dense<0.000000e+00> : vector<1xf32>
    %89 = vector.multi_reduction <add>, %88, %cst_42 [1, 2] : vector<1x1x49xf32> to vector<1xf32>
    %90 = vector.shape_cast %89 : vector<1xf32> to vector<1x1x1xf32>
    %91 = vector.extract %90[0, 0, 0] : f32 from vector<1x1x1xf32>
    %92 = vector.broadcast %91 : f32 to vector<392x1xf32>
    %93 = arith.subf %85, %92 : vector<392x1xf32>
    %94 = math.exp %93 : vector<392x1xf32>
    %95 = arith.truncf %94 : vector<392x1xf32> to vector<392x1xbf16>
    %cst_43 = arith.constant dense<0.000000e+00> : vector<8x1xf32>
    %96 = tpu.matmul %35, %95, %cst_43 {dimension_numbers = #tpu.dot_dimension_numbers<[1], [0], [0], [1], [0, 0, 1, 1], [], []>} : vector<8x392xbf16>, vector<392x1xbf16>, vector<8x1xf32> -> vector<8x1xf32>
    %97 = tpu.reciprocal %96 : vector<8x1xf32> -> vector<8x1xf32>
    %98 = vector.extract_strided_slice %67 {offsets = [0, 0], sizes = [392, 128], strides = [1, 1]} : vector<392x512xbf16> to vector<392x128xbf16>
    %99 = vector.broadcast %95 : vector<392x1xbf16> to vector<392x128xbf16>
    %100 = arith.mulf %99, %98 : vector<392x128xbf16>
    %cst_44 = arith.constant dense<0.000000e+00> : vector<8x128xf32>
    %101 = tpu.matmul %35, %100, %cst_44 {dimension_numbers = #tpu.dot_dimension_numbers<[1], [0], [0], [1], [0, 0, 1, 1], [], []>} : vector<8x392xbf16>, vector<392x128xbf16>, vector<8x128xf32> -> vector<8x128xf32>
    %102 = vector.broadcast %97 : vector<8x1xf32> to vector<8x128xf32>
    %103 = arith.mulf %101, %102 : vector<8x128xf32>
    %c0_45 = arith.constant 0 : index
    %c0_46 = arith.constant 0 : index
    %104 = vector.load %arg10[%c0_45, %c0_46] : memref<8x512xf32, #tpu.memory_space<vmem>>, vector<8x128xf32>
    tpu.vector_store %arg10[%c0_45, %c0_46], %103 {strides = array<i32>} : memref<8x512xf32, #tpu.memory_space<vmem>>, vector<8x128xf32>,
    %105 = vector.extract_strided_slice %67 {offsets = [0, 128], sizes = [392, 128], strides = [1, 1]} : vector<392x512xbf16> to vector<392x128xbf16>
    %106 = vector.broadcast %95 : vector<392x1xbf16> to vector<392x128xbf16>
    %107 = arith.mulf %106, %105 : vector<392x128xbf16>
    %cst_47 = arith.constant dense<0.000000e+00> : vector<8x128xf32>
    %108 = tpu.matmul %35, %107, %cst_47 {dimension_numbers = #tpu.dot_dimension_numbers<[1], [0], [0], [1], [0, 0, 1, 1], [], []>} : vector<8x392xbf16>, vector<392x128xbf16>, vector<8x128xf32> -> vector<8x128xf32>
    %109 = vector.broadcast %97 : vector<8x1xf32> to vector<8x128xf32>
    %110 = arith.mulf %108, %109 : vector<8x128xf32>
    %c0_48 = arith.constant 0 : index
    %c128 = arith.constant 128 : index
    %111 = vector.load %arg10[%c0_48, %c128] : memref<8x512xf32, #tpu.memory_space<vmem>>, vector<8x128xf32>
    tpu.vector_store %arg10[%c0_48, %c128], %110 {strides = array<i32>} : memref<8x512xf32, #tpu.memory_space<vmem>>, vector<8x128xf32>,
    %112 = vector.extract_strided_slice %67 {offsets = [0, 256], sizes = [392, 128], strides = [1, 1]} : vector<392x512xbf16> to vector<392x128xbf16>
    %113 = vector.broadcast %95 : vector<392x1xbf16> to vector<392x128xbf16>
    %114 = arith.mulf %113, %112 : vector<392x128xbf16>
    %cst_49 = arith.constant dense<0.000000e+00> : vector<8x128xf32>
    %115 = tpu.matmul %35, %114, %cst_49 {dimension_numbers = #tpu.dot_dimension_numbers<[1], [0], [0], [1], [0, 0, 1, 1], [], []>} : vector<8x392xbf16>, vector<392x128xbf16>, vector<8x128xf32> -> vector<8x128xf32>
    %116 = vector.broadcast %97 : vector<8x1xf32> to vector<8x128xf32>
    %117 = arith.mulf %115, %116 : vector<8x128xf32>
    %c0_50 = arith.constant 0 : index
    %c256 = arith.constant 256 : index
    %118 = vector.load %arg10[%c0_50, %c256] : memref<8x512xf32, #tpu.memory_space<vmem>>, vector<8x128xf32>
    tpu.vector_store %arg10[%c0_50, %c256], %117 {strides = array<i32>} : memref<8x512xf32, #tpu.memory_space<vmem>>, vector<8x128xf32>,
    %119 = vector.extract_strided_slice %67 {offsets = [0, 384], sizes = [392, 128], strides = [1, 1]} : vector<392x512xbf16> to vector<392x128xbf16>
    %120 = vector.broadcast %95 : vector<392x1xbf16> to vector<392x128xbf16>
    %121 = arith.mulf %120, %119 : vector<392x128xbf16>
    %cst_51 = arith.constant dense<0.000000e+00> : vector<8x128xf32>
    %122 = tpu.matmul %35, %121, %cst_51 {dimension_numbers = #tpu.dot_dimension_numbers<[1], [0], [0], [1], [0, 0, 1, 1], [], []>} : vector<8x392xbf16>, vector<392x128xbf16>, vector<8x128xf32> -> vector<8x128xf32>
    %123 = vector.broadcast %97 : vector<8x1xf32> to vector<8x128xf32>
    %124 = arith.mulf %122, %123 : vector<8x128xf32>
    %c0_52 = arith.constant 0 : index
    %c384 = arith.constant 384 : index
    %125 = vector.load %arg10[%c0_52, %c384] : memref<8x512xf32, #tpu.memory_space<vmem>>, vector<8x128xf32>
    tpu.vector_store %arg10[%c0_52, %c384], %124 {strides = array<i32>} : memref<8x512xf32, #tpu.memory_space<vmem>>, vector<8x128xf32>,
    return
  }
  func.func @transform_0(%arg0: i32) -> (i32, i32) {
    %c0_i32 = arith.constant 0 : i32
    %c0_i32_0 = arith.constant 0 : i32
    return %arg0, %c0_i32 : i32, i32
  }
  func.func @transform_1(%arg0: i32) -> (i32, i32) {
    %c0_i32 = arith.constant 0 : i32
    %c0_i32_0 = arith.constant 0 : i32
    return %arg0, %c0_i32 : i32, i32
  }
  func.func @transform_2(%arg0: i32) -> (i32, i32) {
    %c0_i32 = arith.constant 0 : i32
    %c0_i32_0 = arith.constant 0 : i32
    %c0_i32_1 = arith.constant 0 : i32
    return %c0_i32, %c0_i32_0 : i32, i32
  }
  func.func @transform_3(%arg0: i32) -> (i32, i32) {
    %c0_i32 = arith.constant 0 : i32
    %c0_i32_0 = arith.constant 0 : i32
    %c0_i32_1 = arith.constant 0 : i32
    return %c0_i32, %c0_i32_0 : i32, i32
  }
  func.func @transform_4(%arg0: i32) -> (i32, i32) {
    %c0_i32 = arith.constant 0 : i32
    %c0_i32_0 = arith.constant 0 : i32
    %c0_i32_1 = arith.constant 0 : i32
    return %c0_i32, %c0_i32_0 : i32, i32
  }
  func.func @transform_5(%arg0: i32) -> (i32, i32) {
    %c0_i32 = arith.constant 0 : i32
    %c0_i32_0 = arith.constant 0 : i32
    %c0_i32_1 = arith.constant 0 : i32
    return %c0_i32, %c0_i32_0 : i32, i32
  }
  func.func @transform_6(%arg0: i32) -> (i32, i32) {
    %c0_i32 = arith.constant 0 : i32
    %c0_i32_0 = arith.constant 0 : i32
    %c0_i32_1 = arith.constant 0 : i32
    return %c0_i32, %c0_i32_0 : i32, i32
  }
  func.func @transform_7(%arg0: i32) -> (i32, i32) {
    %c0_i32 = arith.constant 0 : i32
    %c0_i32_0 = arith.constant 0 : i32
    %c0_i32_1 = arith.constant 0 : i32
    return %c0_i32, %c0_i32_0 : i32, i32
  }
  func.func @transform_8(%arg0: i32) -> (i32, i32) {
    %c0_i32 = arith.constant 0 : i32
    %c0_i32_0 = arith.constant 0 : i32
    %c0_i32_1 = arith.constant 0 : i32
    return %c0_i32, %c0_i32_0 : i32, i32
  }
  func.func @transform_9(%arg0: i32) -> (i32, i32) {
    %c0_i32 = arith.constant 0 : i32
    %c0_i32_0 = arith.constant 0 : i32
    return %arg0, %c0_i32 : i32, i32
  }
}

</mosaic_0001>

<bundles_post_ra>
// kernel: tpu_custom_call.1
= control target key start
LH: loop header
LB: loop body
LE: loop exit
PB: predicated region body
PF: predicated region fallthrough
CT: control target
= control target key end

     0   :  { %14 = vsyncpa [#allocation3], 0  ;;  %s7896_s0 = inlined_call_operand.vmem [shape: f32[8,128], index: 0, kind: input, shape index: {}]   ;;  %s7897_s1 = inlined_call_operand.hbm [shape: f32[392,512], index: 1, kind: input, shape index: {}]   ;;  %s7898_s2 = inlined_call_operand.vmem [shape: bf16[128,64], index: 2, kind: input, shape index: {}]   ;;  %s7899_s3 = inlined_call_operand.vmem [shape: f32[1,64], index: 3, kind: input, shape index: {}]   ;;  %s7900_s4 = inlined_call_operand.vmem [shape: bf16[512,64], index: 4, kind: input, shape index: {}]   ;;  %s7901_s5 = inlined_call_operand.vmem [shape: f32[1,64], index: 5, kind: input, shape index: {}]   ;;  %s7902_s6 = inlined_call_operand.vmem [shape: bf16[64,49], index: 6, kind: input, shape index: {}]   ;;  %s7903_s7 = inlined_call_operand.vmem [shape: bf16[64,49], index: 7, kind: input, shape index: {}]   ;;  %s7904_s8 = inlined_call_operand.vmem [shape: f32[1,49], index: 8, kind: input, shape index: {}]   ;;  %s7905_s9 = inlined_call_operand.hbm [shape: f32[8,512], index: 9, kind: output, shape index: {}]  }
   0x1   :  { %15 = vsyncpa [#allocation4], 0  ;;  %s4977_s30 = smov [#allocation2]   ;;  %s4929_s13 = scalar_lea.hbm %s7897_s1, 25088 }
   0x2   :  { %s23_s10 = sshll.u32 %s4977_s30, 4  ;;  %p4930_p0 = scmp.ne.s32.totalorder %s7897_s1, %s4929_s13  ;;  %s24_s10 = int_to_ptr.vmem [resolvable:$true] %s23_s10 }
   0x3   :  { %p4933_p1 = scmp.lt.u32.totalorder %s4929_s13, %s7897_s1 }
   0x5   :  { %p4935_p2 = pnand %p4933_p1, %p4930_p0 }
   0x7   :  { %4938 = shalt.err (!%p4935_p2)
}
   0x8   :  { %s4939_s18 = scalar_lea.vmem %s24_s10, 25088  ;;  %p4944_p4 = scmp.lt.s32.totalorder %s24_s10, %s24_s10 }
   0x9   :  { %p4940_p3 = scmp.ne.s32.totalorder %s24_s10, %s4939_s18  ;;  %p4945_p5 = scmp.lt.s32.totalorder %s4939_s18, %s4939_s18 }
   0xb   :  { %p4946_p6 = por %p4945_p5, %p4944_p4 }
   0xd   :  { %p4947_p7 = pnand %p4946_p6, %p4940_p3 }
   0xf   :  { %4950 = shalt.err (!%p4947_p7)
}
  0x10   :  { %s4978_s19 = smov 512   ;;  %s4979_s20 = smov 32  }
  0x11   :  { %29 = dma.hbm_to_vmem [thread:$0]  %s7897_s1, 25088, %s24_s10, [#allocation3], %s4978_s19, %s4978_s19, %s4979_s20  }
  0x12   :  { %4973 = dma.done.wait [#allocation3], 25088  }
  0x13   :  { %4974 = vsyncadd [#allocation3], 4294942208  ;;  %v7908_v0 = vmov 0.0   ;;  %vm7995_vm0 = vmmov 0   ;;  %v7906_v1 = vmov 0   ;;  %v4680_v2 = vld [vmem:[%s7898_s2] sm:$0xff]  }
  0x14   :  { %4277 = vmatprep.subr.bf16.mxu0 %v7908_v0  ;;  %4293 = vmatprep.mubr.msk.bf16.mxu0 %vm7995_vm0, %v7908_v0  ;;  %v4681_v3 = vld [vmem:[%s7898_s2 + $0x8] sm:$0xff]   ;;  %v4682_v4 = vld [vmem:[%s7898_s2 + $0x10] sm:$0xff]   ;;  %v4683_v5 = vld [vmem:[%s7898_s2 + $0x18] sm:$0xff]   ;;  %vm7971_vm1 = vcmask 523264   ;;  %vm8030_vm3 = vcmask 64512   ;;  %vm4983_vm7 = vmmov 1  }
  0x15   :  { %4297 = vmatprep.subr.bf16.mxu1 %v7908_v0  ;;  %4305 = vmatprep.mubr.msk.bf16.mxu1 %vm7995_vm0, %v7908_v0  ;;  %v4684_v6 = vld [vmem:[%s7898_s2 + $0x20] sm:$0xff]   ;;  %v4685_v7 = vld [vmem:[%s7898_s2 + $0x28] sm:$0xff]   ;;  %v4686_v8 = vld [vmem:[%s7898_s2 + $0x30] sm:$0xff]   ;;  %s4985_s28 = smov [#allocation5]  }
  0x16   :  { %4679 = vset.pattern.permute.xlu0 %v7906_v1  ;;  %4278 = vmatpush3.bf16.msra.mxu0 %v4680_v2  ;;  %v4687_v9 = vld [vmem:[%s7898_s2 + $0x38] sm:$0xff]   ;;  %v842_v10 = vld [vmem:[%s7896_s0] sm:$0xff]  ;;  %v1543_v11 = vld [vmem:[#allocation2 + $0x8] sm:$0xff]  ;;  %s3953_s29 = sshll.u32 %s4985_s28, 4  ;;  %s3954_s29 = int_to_ptr.vmem [resolvable:$true] %s3953_s29 }
  0x17   :  { %4279 = vmatprep.subr.bf16.mxu0 %v7908_v0  ;;  %v1547_v12 = vld [vmem:[#allocation2 + $0x28] sm:$0xff]  ;;  %v843_v13 = vpack.c.bf16 %v842_v10, %v842_v10  ;;  %v4688_v14 = vld [vmem:[%s7900_s4] sm:$0xff]   ;;  %v4690_v17 = vld [vmem:[%s7900_s4 + $0x10] sm:$0xff]   ;;  %s4951_s30 = scalar_lea.vmem %s3954_s29, 512  ;;  %p4956_p9 = scmp.lt.s32.totalorder %s3954_s29, %s3954_s29 }
  0x18   :  { %v5092_v15 = vpack.c.bf16 %v1547_v12, %v1543_v11  ;;  %v4689_v16 = vld [vmem:[%s7900_s4 + $0x8] sm:$0xff]   ;;  %v4691_v18 = vld [vmem:[%s7900_s4 + $0x18] sm:$0xff]   ;;  %v4692_v19 = vld [vmem:[%s7900_s4 + $0x20] sm:$0xff]   ;;  %p4952_p8 = scmp.ne.s32.totalorder %s3954_s29, %s4951_s30  ;;  %p4957_p10 = scmp.lt.s32.totalorder %s4951_s30, %s4951_s30 }
  0x19   :  { %v4693_v20 = vld [vmem:[%s7900_s4 + $0x28] sm:$0xff]   ;;  %v4694_v21 = vld [vmem:[%s7900_s4 + $0x30] sm:$0xff]   ;;  %v4695_v22 = vld [vmem:[%s7900_s4 + $0x38] sm:$0xff]  }
  0x1a   :  { %4280 = vmatpush3.bf16.msra.mxu0 %v4681_v3  ;;  %8082 = vst [vmem:[#allocation8_spill] sm:$0xff] %v5092_v15  ;;  %v4696_v23 = vld [vmem:[%s7900_s4 + $0x40] sm:$0xff]   ;;  %v4697_v24 = vld [vmem:[%s7900_s4 + $0x48] sm:$0xff]   ;;  %v4698_v25 = vld [vmem:[%s7900_s4 + $0x50] sm:$0xff]   ;;  %p4958_p11 = por %p4957_p10, %p4956_p9 }
  0x1b   :  { %4281 = vmatprep.subr.bf16.mxu0 %v7908_v0  ;;  %v4699_v26 = vld [vmem:[%s7900_s4 + $0x58] sm:$0xff]   ;;  %v4700_v27 = vld [vmem:[%s7900_s4 + $0x60] sm:$0xff]   ;;  %v4701_v28 = vld [vmem:[%s7900_s4 + $0x68] sm:$0xff]  }
  0x1c   :  { %v4702_v29 = vld [vmem:[%s7900_s4 + $0x70] sm:$0xff]   ;;  %v4703_v30 = vld [vmem:[%s7900_s4 + $0x78] sm:$0xff]   ;;  %v1542_v31 = vld [vmem:[#allocation2] sm:$0xff]  ;;  %p4959_p12 = pnand %p4958_p11, %p4952_p8 }
  0x1d   :  { %v1546_v32 = vld [vmem:[#allocation2 + $0x20] sm:$0xff]  ;;  %v1551_v33 = vld [vmem:[#allocation2 + $0x48] sm:$0xff]  ;;  %v4708_v53 = vld [vmem:[%s7900_s4 + $0x90] sm:$0xff]  }
  0x1e   :  { %4282 = vmatpush3.bf16.msra.mxu0 %v4682_v4  ;;  %v1555_v34 = vld [vmem:[#allocation2 + $0x68] sm:$0xff]  ;;  %v5156_v35 = vpack.c.bf16 %v1546_v32, %v1542_v31  ;;  %v1550_v37 = vld [vmem:[#allocation2 + $0x40] sm:$0xff]  ;;  %v4709_v56 = vld [vmem:[%s7903_s7 + $0x10] sm:$0xff]  }
  0x1f   :  { %4283 = vmatprep.subr.bf16.mxu0 %v7908_v0  ;;  %v5158_v36 = vpack.c.bf16 %v1555_v34, %v1551_v33  ;;  %v1554_v38 = vld [vmem:[#allocation2 + $0x60] sm:$0xff]  ;;  %v1559_v39 = vld [vmem:[#allocation2 + $0x88] sm:$0xff]  ;;  %v4710_v59 = vld [vmem:[%s7900_s4 + $0x98] sm:$0xff]  }
  0x20   :  { %8083 = vst [vmem:[#allocation9_spill] sm:$0xff] %v5156_v35  ;;  %v1563_v40 = vld [vmem:[#allocation2 + $0xa8] sm:$0xff]  ;;  %v5163_v41 = vpack.c.bf16 %v1554_v38, %v1550_v37  ;;  %v4704_v43 = vld [vmem:[%s7900_s4 + $0x80] sm:$0xff]   ;;  %v4711_v62 = vld [vmem:[%s7903_s7 + $0x18] sm:$0xff]  }
  0x21   :  { %8084 = vst [vmem:[#allocation10_spill] sm:$0xff] %v5158_v36  ;;  %v5165_v42 = vpack.c.bf16 %v1563_v40, %v1559_v39  ;;  %v4705_v44 = vld [vmem:[%s7903_s7] sm:$0xff]   ;;  %v4706_v47 = vld [vmem:[%s7900_s4 + $0x88] sm:$0xff]   ;;  %v4715_v12 = vld [vmem:[%s7900_s4 + $0xb8] sm:$0xff]  }
  0x22   :  { %4284 = vmatpush3.bf16.msra.mxu0 %v4683_v5  ;;  %8085 = vst [vmem:[#allocation11_spill] sm:$0xff] %v5163_v41  ;;  %v1558_v45 = vld [vmem:[#allocation2 + $0x80] sm:$0xff]  ;;  %v1567_v48 = vld [vmem:[#allocation2 + $0xc8] sm:$0xff]  ;;  %4298 = vmatpush3.bf16.msra.mxu1 %v4705_v44 }
  0x23   :  { %4285 = vmatprep.subr.bf16.mxu0 %v7908_v0  ;;  %8086 = vst [vmem:[#allocation12_spill] sm:$0xff] %v5165_v42  ;;  %v1562_v46 = vld [vmem:[#allocation2 + $0xa0] sm:$0xff]  ;;  %v1571_v49 = vld [vmem:[#allocation2 + $0xe8] sm:$0xff]  ;;  %4299 = vmatprep.subr.bf16.mxu1 %v7908_v0 }
  0x24   :  { %v4707_v50 = vld [vmem:[%s7903_s7 + $0x8] sm:$0xff]   ;;  %v5183_v51 = vpack.c.bf16 %v1562_v46, %v1558_v45  ;;  %v5185_v52 = vpack.c.bf16 %v1571_v49, %v1567_v48  ;;  %v1566_v54 = vld [vmem:[#allocation2 + $0xc0] sm:$0xff]  ;;  %v4722_v46 = vld [vmem:[%s7900_s4 + $0xf0] sm:$0xff]  }
  0x25   :  { %v1570_v55 = vld [vmem:[#allocation2 + $0xe0] sm:$0xff]  ;;  %v1575_v57 = vld [vmem:[#allocation2 + $0x108] sm:$0xff]  ;;  %v4723_v49 = vld [vmem:[%s7900_s4 + $0xf8] sm:$0xff]  }
  0x26   :  { %4286 = vmatpush3.bf16.msra.mxu0 %v4684_v6  ;;  %8087 = vst [vmem:[#allocation13_spill] sm:$0xff] %v5183_v51  ;;  %8088 = vst [vmem:[#allocation14_spill] sm:$0xff] %v5185_v52  ;;  %4300 = vmatpush3.bf16.msra.mxu1 %v4707_v50  ;;  %v1579_v58 = vld [vmem:[#allocation2 + $0x128] sm:$0xff]  ;;  %v5201_v60 = vpack.c.bf16 %v1570_v55, %v1566_v54  ;;  %v4712_v63 = vld [vmem:[%s7900_s4 + $0xa0] sm:$0xff]  }
  0x27   :  { %4287 = vmatprep.subr.bf16.mxu0 %v7908_v0  ;;  %4301 = vmatprep.subr.bf16.mxu1 %v7908_v0  ;;  %v5204_v61 = vpack.c.bf16 %v1579_v58, %v1575_v57  ;;  %v1574_v2 = vld [vmem:[#allocation2 + $0x100] sm:$0xff]  ;;  %v1583_v4 = vld [vmem:[#allocation2 + $0x148] sm:$0xff] }
  0x28   :  { %8089 = vst [vmem:[#allocation15_spill] sm:$0xff] %v5201_v60  ;;  %v1578_v3 = vld [vmem:[#allocation2 + $0x120] sm:$0xff]  ;;  %v1587_v5 = vld [vmem:[#allocation2 + $0x168] sm:$0xff] }
  0x29   :  { %8090 = vst [vmem:[#allocation16_spill] sm:$0xff] %v5204_v61  ;;  %v4713_v6 = vld [vmem:[%s7900_s4 + $0xa8] sm:$0xff]   ;;  %v1582_v10 = vld [vmem:[#allocation2 + $0x140] sm:$0xff] }
  0x2a   :  { %4288 = vmatpush3.bf16.msra.mxu0 %v4685_v7  ;;  %4302 = vmatpush3.bf16.msra.mxu1 %v4709_v56  ;;  %v5220_v7 = vpack.c.bf16 %v1578_v3, %v1574_v2  ;;  %v1586_v11 = vld [vmem:[#allocation2 + $0x160] sm:$0xff]  ;;  %v1611_v31 = vld [vmem:[#allocation2 + $0x228] sm:$0xff] }
  0x2b   :  { %4289 = vmatprep.subr.bf16.mxu0 %v7908_v0  ;;  %4303 = vmatprep.subr.bf16.mxu1 %v7908_v0  ;;  %v4720_v34 = vld [vmem:[%s7900_s4 + $0xe0] sm:$0xff]   ;;  %v4721_v39 = vld [vmem:[%s7900_s4 + $0xe8] sm:$0xff]  }
  0x2c   :  { %8091 = vst [vmem:[#allocation17_spill] sm:$0xff] %v5220_v7  ;;  %v1606_v37 = vld [vmem:[#allocation2 + $0x200] sm:$0xff]  ;;  %v1615_v40 = vld [vmem:[#allocation2 + $0x248] sm:$0xff] }
  0x2d   :  { %v1610_v38 = vld [vmem:[#allocation2 + $0x220] sm:$0xff]  ;;  %v1623_v50 = vld [vmem:[#allocation2 + $0x288] sm:$0xff] }
  0x2e   :  { %4290 = vmatpush3.bf16.msra.mxu0 %v4686_v8  ;;  %4304 = vmatpush3.bf16.msra.mxu1 %v4711_v62  ;;  %v5222_v8 = vpack.c.bf16 %v1587_v5, %v1583_v4  ;;  %v5276_v44 = vpack.c.bf16 %v1610_v38, %v1606_v37  ;;  %v1618_v48 = vld [vmem:[#allocation2 + $0x260] sm:$0xff]  ;;  %v1631_v58 = vld [vmem:[#allocation2 + $0x2c8] sm:$0xff] }
  0x2f   :  { %4291 = vmatprep.subr.bf16.mxu0 %v7908_v0  ;;  %4309 = vmatprep.subr.bf16.mxu1 %v7908_v0  ;;  %v1622_v56 = vld [vmem:[#allocation2 + $0x280] sm:$0xff]  ;;  %v1639_v4 = vld [vmem:[#allocation2 + $0x308] sm:$0xff] }
  0x30   :  { %8092 = vst [vmem:[#allocation18_spill] sm:$0xff] %v5222_v8  ;;  %8099 = vst [vmem:[#allocation25_spill] sm:$0xff] %v5276_v44  ;;  %v1626_v57 = vld [vmem:[#allocation2 + $0x2a0] sm:$0xff]  ;;  %v1643_v5 = vld [vmem:[#allocation2 + $0x328] sm:$0xff] }
  0x31   :  { %v5297_v62 = vpack.c.bf16 %v1626_v57, %v1622_v56  ;;  %v1630_v2 = vld [vmem:[#allocation2 + $0x2c0] sm:$0xff] }
  0x32   :  { %4292 = vmatpush3.bf16.msra.mxu0 %v4687_v9  ;;  %v4714_v9 = vld [vmem:[%s7900_s4 + $0xb0] sm:$0xff]   ;;  %v1634_v3 = vld [vmem:[#allocation2 + $0x2e0] sm:$0xff] }
  0x33   :  { %2101 = vmatprep.subr.bf16.mxu0 %v7906_v1  ;;  %8103 = vst [vmem:[#allocation29_spill] sm:$0xff] %v5297_v62  ;;  %v1662_v37 = vld [vmem:[#allocation2 + $0x3c0] sm:$0xff] }
  0x34   :  { %v1666_v38 = vld [vmem:[#allocation2 + $0x3e0] sm:$0xff] }
  0x35   :  { %4294 = vmatmul.mubr.bf16.vlgmr.msra.gmra.mrb[0].mxu0 %v843_v13  ;;  %v1591_v13 = vld [vmem:[#allocation2 + $0x188] sm:$0xff]  ;;  %v1678_v57 = vld [vmem:[#allocation2 + $0x440] sm:$0xff] }
  0x36   :  { %2102 = vmatpush1.bf16.msra.mxu0 %v4688_v14  ;;  %2133 = vmatprep.mubr.bf16.mxu0 %v5092_v15  ;;  %v1595_v14 = vld [vmem:[#allocation2 + $0x1a8] sm:$0xff] }
  0x37   :  { %2103 = vmatprep.subr.bf16.mxu0 %v7906_v1 }
  0x3a   :  { %2104 = vmatpush1.bf16.msra.mxu0 %v4689_v16  ;;  %v5234_v16 = vpack.c.bf16 %v1586_v11, %v1582_v10  ;;  %v1638_v10 = vld [vmem:[#allocation2 + $0x300] sm:$0xff] }
  0x3b   :  { %2105 = vmatprep.subr.bf16.mxu0 %v7906_v1  ;;  %v1642_v11 = vld [vmem:[#allocation2 + $0x320] sm:$0xff] }
  0x3c   :  { %8093 = vst [vmem:[#allocation19_spill] sm:$0xff] %v5234_v16 }
  0x3e   :  { %2106 = vmatpush1.bf16.msra.mxu0 %v4690_v17  ;;  %v5236_v17 = vpack.c.bf16 %v1595_v14, %v1591_v13  ;;  %v1651_v13 = vld [vmem:[#allocation2 + $0x368] sm:$0xff]  ;;  %v5309_v14 = vpack.c.bf16 %v1642_v11, %v1638_v10  ;;  %v1690_v10 = vld [vmem:[#allocation2 + $0x4a0] sm:$0xff] }
  0x3f   :  { %2107 = vmatprep.subr.bf16.mxu0 %v7906_v1  ;;  %v1695_v11 = vld [vmem:[#allocation2 + $0x4c8] sm:$0xff] }
  0x40   :  { %8094 = vst [vmem:[#allocation20_spill] sm:$0xff] %v5236_v17  ;;  %8107 = vst [vmem:[#allocation33_spill] sm:$0xff] %v5309_v14 }
  0x42   :  { %2108 = vmatpush1.bf16.msra.mxu0 %v4691_v18  ;;  %v4716_v18 = vld [vmem:[%s7900_s4 + $0xc0] sm:$0xff]  }
  0x43   :  { %2109 = vmatprep.subr.bf16.mxu0 %v7906_v1 }
  0x46   :  { %2110 = vmatpush1.bf16.msra.mxu0 %v4692_v19  ;;  %v1590_v19 = vld [vmem:[#allocation2 + $0x180] sm:$0xff] }
  0x47   :  { %2111 = vmatprep.subr.bf16.mxu0 %v7906_v1 }
  0x4a   :  { %2112 = vmatpush1.bf16.msra.mxu0 %v4693_v20  ;;  %v1594_v20 = vld [vmem:[#allocation2 + $0x1a0] sm:$0xff] }
  0x4b   :  { %2113 = vmatprep.subr.bf16.mxu0 %v7906_v1 }
  0x4e   :  { %2114 = vmatpush1.bf16.msra.mxu0 %v4694_v21  ;;  %v4717_v21 = vld [vmem:[%s7900_s4 + $0xc8] sm:$0xff]  }
  0x4f   :  { %2115 = vmatprep.subr.bf16.mxu0 %v7906_v1 }
  0x52   :  { %2116 = vmatpush1.bf16.msra.mxu0 %v4695_v22  ;;  %v1599_v22 = vld [vmem:[#allocation2 + $0x1c8] sm:$0xff] }
  0x53   :  { %2117 = vmatprep.subr.bf16.mxu0 %v7906_v1 }
  0x56   :  { %2118 = vmatpush1.bf16.msra.mxu0 %v4696_v23  ;;  %v1603_v23 = vld [vmem:[#allocation2 + $0x1e8] sm:$0xff] }
  0x57   :  { %2119 = vmatprep.subr.bf16.mxu0 %v7906_v1 }
  0x5a   :  { %2120 = vmatpush1.bf16.msra.mxu0 %v4697_v24  ;;  %v5248_v24 = vpack.c.bf16 %v1594_v20, %v1590_v19  ;;  %v1646_v19 = vld [vmem:[#allocation2 + $0x340] sm:$0xff] }
  0x5b   :  { %2121 = vmatprep.subr.bf16.mxu0 %v7906_v1  ;;  %v1650_v20 = vld [vmem:[#allocation2 + $0x360] sm:$0xff] }
  0x5c   :  { %8095 = vst [vmem:[#allocation21_spill] sm:$0xff] %v5248_v24 }
  0x5e   :  { %2122 = vmatpush1.bf16.msra.mxu0 %v4698_v25  ;;  %v5250_v25 = vpack.c.bf16 %v1603_v23, %v1599_v22  ;;  %v1659_v22 = vld [vmem:[#allocation2 + $0x3a8] sm:$0xff]  ;;  %v5315_v23 = vpack.c.bf16 %v1650_v20, %v1646_v19  ;;  %v3962_v20 = vld [vmem:[%s7899_s3] ss:$0 sm:$0xff] }
  0x5f   :  { %2123 = vmatprep.subr.bf16.mxu0 %v7906_v1 }
  0x60   :  { %8096 = vst [vmem:[#allocation22_spill] sm:$0xff] %v5250_v25  ;;  %8109 = vst [vmem:[#allocation35_spill] sm:$0xff] %v5315_v23 }
  0x62   :  { %2124 = vmatpush1.bf16.msra.mxu0 %v4699_v26  ;;  %v4718_v26 = vld [vmem:[%s7900_s4 + $0xd0] sm:$0xff]  }
  0x63   :  { %2125 = vmatprep.subr.bf16.mxu0 %v7906_v1 }
  0x66   :  { %2126 = vmatpush1.bf16.msra.mxu0 %v4700_v27  ;;  %v1598_v27 = vld [vmem:[#allocation2 + $0x1c0] sm:$0xff] }
  0x67   :  { %2127 = vmatprep.subr.bf16.mxu0 %v7906_v1 }
  0x6a   :  { %2128 = vmatpush1.bf16.msra.mxu0 %v4701_v28  ;;  %v1602_v28 = vld [vmem:[#allocation2 + $0x1e0] sm:$0xff] }
  0x6b   :  { %2129 = vmatprep.subr.bf16.mxu0 %v7906_v1  ;;  %v5262_v32 = vpack.c.bf16 %v1602_v28, %v1598_v27  ;;  %v1654_v27 = vld [vmem:[#allocation2 + $0x380] sm:$0xff] }
  0x6c   :  { %v1658_v28 = vld [vmem:[#allocation2 + $0x3a0] sm:$0xff] }
  0x6d   :  { %8097 = vst [vmem:[#allocation23_spill] sm:$0xff] %v5262_v32 }
  0x6e   :  { %2130 = vmatpush1.bf16.msra.mxu0 %v4702_v29  ;;  %v4719_v29 = vld [vmem:[%s7900_s4 + $0xd8] sm:$0xff]  }
  0x6f   :  { %2131 = vmatprep.subr.bf16.mxu0 %v7906_v1 }
  0x72   :  { %2132 = vmatpush1.bf16.msra.mxu0 %v4703_v30  ;;  %v1607_v30 = vld [vmem:[#allocation2 + $0x208] sm:$0xff] }
  0x73   :  { %2333 = vmatprep.subr.bf16.mxu0 %v7906_v1  ;;  %v5264_v33 = vpack.c.bf16 %v1611_v31, %v1607_v30  ;;  %v1667_v30 = vld [vmem:[#allocation2 + $0x3e8] sm:$0xff]  ;;  %v5321_v31 = vpack.c.bf16 %v1658_v28, %v1654_v27 }
  0x74   :  { %v1703_v27 = vld [vmem:[#allocation2 + $0x508] sm:$0xff] }
  0x75   :  { %2134 = vmatmul.mubr.bf16.vlgmr.msra.gmra.mrb[4].mxu0 %v5156_v35  ;;  %8098 = vst [vmem:[#allocation24_spill] sm:$0xff] %v5264_v33  ;;  %8111 = vst [vmem:[#allocation37_spill] sm:$0xff] %v5321_v31  ;;  %v1707_v28 = vld [vmem:[#allocation2 + $0x528] sm:$0xff] }
  0x76   :  { %2141 = vmatprep.mubr.bf16.mxu0 %v5158_v36  ;;  %2334 = vmatpush1.bf16.msra.mxu0 %v4704_v43  ;;  %v1619_v43 = vld [vmem:[#allocation2 + $0x268] sm:$0xff] }
  0x77   :  { %2335 = vmatprep.subr.bf16.mxu0 %v7906_v1  ;;  %v5278_v45 = vpack.c.bf16 %v1619_v43, %v1615_v40  ;;  %v1675_v40 = vld [vmem:[#allocation2 + $0x428] sm:$0xff]  ;;  %v5327_v43 = vpack.c.bf16 %v1666_v38, %v1662_v37 }
  0x79   :  { %8100 = vst [vmem:[#allocation26_spill] sm:$0xff] %v5278_v45  ;;  %8113 = vst [vmem:[#allocation39_spill] sm:$0xff] %v5327_v43 }
  0x7a   :  { %2336 = vmatpush1.bf16.msra.mxu0 %v4706_v47  ;;  %v1614_v47 = vld [vmem:[#allocation2 + $0x240] sm:$0xff] }
  0x7b   :  { %2337 = vmatprep.subr.bf16.mxu0 %v7906_v1  ;;  %v5290_v54 = vpack.c.bf16 %v1618_v48, %v1614_v47  ;;  %v1670_v47 = vld [vmem:[#allocation2 + $0x400] sm:$0xff] }
  0x7c   :  { %v1674_v48 = vld [vmem:[#allocation2 + $0x420] sm:$0xff] }
  0x7d   :  { %2142 = vmatmul.mubr.bf16.gmra.mrb[8].mxu0 %v5163_v41  ;;  %8101 = vst [vmem:[#allocation27_spill] sm:$0xff] %v5290_v54 }
  0x7e   :  { %2149 = vmatprep.mubr.bf16.mxu0 %v5165_v42  ;;  %2338 = vmatpush1.bf16.msra.mxu0 %v4708_v53  ;;  %v1627_v53 = vld [vmem:[#allocation2 + $0x2a8] sm:$0xff] }
  0x7f   :  { %2339 = vmatprep.subr.bf16.mxu0 %v7906_v1  ;;  %v5292_v55 = vpack.c.bf16 %v1627_v53, %v1623_v50  ;;  %v1683_v50 = vld [vmem:[#allocation2 + $0x468] sm:$0xff]  ;;  %v5333_v53 = vpack.c.bf16 %v1674_v48, %v1670_v47 }
  0x81   :  { %8102 = vst [vmem:[#allocation28_spill] sm:$0xff] %v5292_v55  ;;  %8115 = vst [vmem:[#allocation41_spill] sm:$0xff] %v5333_v53 }
  0x82   :  { %2340 = vmatpush1.bf16.msra.mxu0 %v4710_v59  ;;  %v1635_v59 = vld [vmem:[#allocation2 + $0x2e8] sm:$0xff] }
  0x83   :  { %2341 = vmatprep.subr.bf16.mxu0 %v7906_v1 }
  0x85   :  { %2150 = vmatmul.mubr.bf16.gmra.mrb[12].mxu0 %v5183_v51 }
  0x86   :  { %2157 = vmatprep.mubr.bf16.mxu0 %v5185_v52  ;;  %2342 = vmatpush1.bf16.msra.mxu0 %v4712_v63  ;;  %v5299_v63 = vpack.c.bf16 %v1635_v59, %v1631_v58  ;;  %v1682_v58 = vld [vmem:[#allocation2 + $0x460] sm:$0xff]  ;;  %v1687_v59 = vld [vmem:[#allocation2 + $0x488] sm:$0xff] }
  0x87   :  { %2343 = vmatprep.subr.bf16.mxu0 %v7906_v1 }
  0x88   :  { %8104 = vst [vmem:[#allocation30_spill] sm:$0xff] %v5299_v63 }
  0x8a   :  { %2344 = vmatpush1.bf16.msra.mxu0 %v4713_v6  ;;  %v5303_v6 = vpack.c.bf16 %v1634_v3, %v1630_v2  ;;  %v1691_v2 = vld [vmem:[#allocation2 + $0x4a8] sm:$0xff]  ;;  %v5339_v3 = vpack.c.bf16 %v1682_v58, %v1678_v57  ;;  %v1706_v57 = vld [vmem:[#allocation2 + $0x520] sm:$0xff] }
  0x8b   :  { %2345 = vmatprep.subr.bf16.mxu0 %v7906_v1  ;;  %v1711_v58 = vld [vmem:[#allocation2 + $0x548] sm:$0xff] }
  0x8c   :  { %8105 = vst [vmem:[#allocation31_spill] sm:$0xff] %v5303_v6  ;;  %8117 = vst [vmem:[#allocation43_spill] sm:$0xff] %v5339_v3 }
  0x8d   :  { %2158 = vmatmul.mubr.bf16.gmra.mrb[16].mxu0 %v5201_v60 }
  0x8e   :  { %2165 = vmatprep.mubr.bf16.mxu0 %v5204_v61  ;;  %2346 = vmatpush1.bf16.msra.mxu0 %v4714_v9  ;;  %v5305_v9 = vpack.c.bf16 %v1643_v5, %v1639_v4  ;;  %v5341_v4 = vpack.c.bf16 %v1691_v2, %v1687_v59  ;;  %v1686_v5 = vld [vmem:[#allocation2 + $0x480] sm:$0xff]  ;;  %v1715_v59 = vld [vmem:[#allocation2 + $0x568] sm:$0xff] }
  0x8f   :  { %2347 = vmatprep.subr.bf16.mxu0 %v7906_v1 }
  0x90   :  { %8106 = vst [vmem:[#allocation32_spill] sm:$0xff] %v5305_v9  ;;  %8118 = vst [vmem:[#allocation44_spill] sm:$0xff] %v5341_v4 }
  0x92   :  { %2348 = vmatpush1.bf16.msra.mxu0 %v4715_v12  ;;  %v1647_v12 = vld [vmem:[#allocation2 + $0x348] sm:$0xff] }
  0x93   :  { %2349 = vmatprep.subr.bf16.mxu0 %v7906_v1 }
  0x95   :  { %2166 = vmatmul.mubr.bf16.gmra.mrb[20].mxu0 %v5220_v7 }
  0x96   :  { %2173 = vmatprep.mubr.bf16.mxu0 %v5222_v8  ;;  %2350 = vmatpush1.bf16.msra.mxu0 %v4716_v18  ;;  %v5311_v18 = vpack.c.bf16 %v1651_v13, %v1647_v12  ;;  %v1699_v12 = vld [vmem:[#allocation2 + $0x4e8] sm:$0xff]  ;;  %v5345_v13 = vpack.c.bf16 %v1690_v10, %v1686_v5  ;;  %v5365_v5 = vpack.c.bf16 %v1715_v59, %v1711_v58  ;;  %v1710_v10 = vld [vmem:[#allocation2 + $0x540] sm:$0xff]  ;;  %v1545_v59 = vld [vmem:[#allocation2 + $0x18] sm:$0xff] }
  0x97   :  { %2351 = vmatprep.subr.bf16.mxu0 %v7906_v1  ;;  %v5347_v19 = vpack.c.bf16 %v1699_v12, %v1695_v11  ;;  %v1714_v11 = vld [vmem:[#allocation2 + $0x560] sm:$0xff]  ;;  %v1719_v12 = vld [vmem:[#allocation2 + $0x588] sm:$0xff] }
  0x98   :  { %8108 = vst [vmem:[#allocation34_spill] sm:$0xff] %v5311_v18  ;;  %8119 = vst [vmem:[#allocation45_spill] sm:$0xff] %v5345_v13  ;;  %v1734_v58 = vld [vmem:[#allocation2 + $0x600] sm:$0xff] }
  0x99   :  { %8120 = vst [vmem:[#allocation46_spill] sm:$0xff] %v5347_v19  ;;  %8124 = vst [vmem:[#allocation50_spill] sm:$0xff] %v5365_v5 }
  0x9a   :  { %2352 = vmatpush1.bf16.msra.mxu0 %v4717_v21  ;;  %v1655_v21 = vld [vmem:[#allocation2 + $0x388] sm:$0xff] }
  0x9b   :  { %2353 = vmatprep.subr.bf16.mxu0 %v7906_v1 }
  0x9d   :  { %2174 = vmatmul.mubr.bf16.gmra.mrb[24].mxu0 %v5234_v16 }
  0x9e   :  { %2181 = vmatprep.mubr.bf16.mxu0 %v5236_v17  ;;  %2354 = vmatpush1.bf16.msra.mxu0 %v4718_v26  ;;  %v5317_v26 = vpack.c.bf16 %v1659_v22, %v1655_v21  ;;  %v1694_v21 = vld [vmem:[#allocation2 + $0x4c0] sm:$0xff] }
  0x9f   :  { %2355 = vmatprep.subr.bf16.mxu0 %v7906_v1  ;;  %v1698_v22 = vld [vmem:[#allocation2 + $0x4e0] sm:$0xff] }
  0xa0   :  { %8110 = vst [vmem:[#allocation36_spill] sm:$0xff] %v5317_v26  ;;  %v5354_v38 = vpack.c.bf16 %v1698_v22, %v1694_v21  ;;  %v5369_v21 = vpack.c.bf16 %v1714_v11, %v1710_v10  ;;  %v1549_v10 = vld [vmem:[#allocation2 + $0x38] sm:$0xff]  ;;  %v5387_v11 = vpack.c.bf16 %v1734_v58, %v1734_v58 }
  0xa1   :  { %v1561_v58 = vld [vmem:[#allocation2 + $0x98] sm:$0xff] }
  0xa2   :  { %2356 = vmatpush1.bf16.msra.mxu0 %v4719_v29  ;;  %v1663_v29 = vld [vmem:[#allocation2 + $0x3c8] sm:$0xff]  ;;  %8121 = vst [vmem:[#allocation47_spill] sm:$0xff] %v5354_v38  ;;  %8125 = vst [vmem:[#allocation51_spill] sm:$0xff] %v5369_v21 }
  0xa3   :  { %2357 = vmatprep.subr.bf16.mxu0 %v7906_v1  ;;  %8131 = vst [vmem:[#allocation57_spill] sm:$0xff] %v5387_v11 }
  0xa5   :  { %2182 = vmatmul.mubr.bf16.gmra.mrb[28].mxu0 %v5248_v24 }
  0xa6   :  { %2189 = vmatprep.mubr.bf16.mxu0 %v5250_v25  ;;  %2358 = vmatpush1.bf16.msra.mxu0 %v4720_v34  ;;  %v5323_v34 = vpack.c.bf16 %v1667_v30, %v1663_v29 }
  0xa7   :  { %2359 = vmatprep.subr.bf16.mxu0 %v7906_v1 }
  0xa8   :  { %8112 = vst [vmem:[#allocation38_spill] sm:$0xff] %v5323_v34 }
  0xaa   :  { %2360 = vmatpush1.bf16.msra.mxu0 %v4721_v39  ;;  %v1671_v39 = vld [vmem:[#allocation2 + $0x408] sm:$0xff] }
  0xab   :  { %2361 = vmatprep.subr.bf16.mxu0 %v7906_v1 }
  0xad   :  { %2190 = vmatmul.mubr.bf16.gmra.mrb[32].mxu0 %v5262_v32 }
  0xae   :  { %2197 = vmatprep.mubr.bf16.mxu0 %v5264_v33  ;;  %2362 = vmatpush1.bf16.msra.mxu0 %v4722_v46  ;;  %v5329_v46 = vpack.c.bf16 %v1675_v40, %v1671_v39  ;;  %v5356_v40 = vpack.c.bf16 %v1707_v28, %v1703_v27  ;;  %v1718_v27 = vld [vmem:[#allocation2 + $0x580] sm:$0xff] }
  0xaf   :  { %2363 = vmatprep.subr.bf16.mxu0 %v7906_v1  ;;  %v1722_v28 = vld [vmem:[#allocation2 + $0x5a0] sm:$0xff] }
  0xb0   :  { %8114 = vst [vmem:[#allocation40_spill] sm:$0xff] %v5329_v46  ;;  %8122 = vst [vmem:[#allocation48_spill] sm:$0xff] %v5356_v40 }
  0xb2   :  { %2364 = vmatpush1.bf16.msra.mxu0 %v4723_v49  ;;  %v1679_v49 = vld [vmem:[#allocation2 + $0x448] sm:$0xff] }
  0xb3   :  { %3570 = vmatprep.subr.bf16.mxu0 %v7906_v1  ;;  %v5335_v56 = vpack.c.bf16 %v1683_v50, %v1679_v49  ;;  %v1702_v50 = vld [vmem:[#allocation2 + $0x500] sm:$0xff] }
  0xb4   :  { %v5363_v2 = vpack.c.bf16 %v1706_v57, %v1702_v50 }
  0xb5   :  { %2198 = vmatmul.mubr.bf16.gmra.mrb[36].mxu0 %v5276_v44  ;;  %8116 = vst [vmem:[#allocation42_spill] sm:$0xff] %v5335_v56 }
  0xb6   :  { %2205 = vmatprep.mubr.bf16.mxu0 %v5278_v45  ;;  %8123 = vst [vmem:[#allocation49_spill] sm:$0xff] %v5363_v2 }
  0xbd   :  { %2206 = vmatmul.mubr.bf16.gmra.mrb[40].mxu0 %v5290_v54  ;;  %v1708_v54 = vld [vmem:[#allocation2 + $0x530] sm:$0xff] }
  0xbe   :  { %2213 = vmatprep.mubr.bf16.mxu0 %v5292_v55 }
  0xc5   :  { %2214 = vmatmul.mubr.bf16.gmra.mrb[44].mxu0 %v5297_v62 }
  0xc6   :  { %2221 = vmatprep.mubr.bf16.mxu0 %v5299_v63 }
  0xcd   :  { %2222 = vmatmul.mubr.bf16.gmra.mrb[48].mxu0 %v5303_v6 }
  0xce   :  { %2229 = vmatprep.mubr.bf16.mxu0 %v5305_v9 }
  0xd5   :  { %2230 = vmatmul.mubr.bf16.gmra.mrb[52].mxu0 %v5309_v14 }
  0xd6   :  { %2237 = vmatprep.mubr.bf16.mxu0 %v5311_v18 }
  0xdd   :  { %2238 = vmatmul.mubr.bf16.gmra.mrb[56].mxu0 %v5315_v23 }
  0xde   :  { %2245 = vmatprep.mubr.bf16.mxu0 %v5317_v26 }
  0xe5   :  { %2246 = vmatmul.mubr.bf16.gmra.mrb[60].mxu0 %v5321_v31 }
  0xe6   :  { %2253 = vmatprep.mubr.bf16.mxu0 %v5323_v34 }
  0xed   :  { %2254 = vmatmul.mubr.bf16.gmra.mrb[64].mxu0 %v5327_v43 }
  0xee   :  { %2261 = vmatprep.mubr.bf16.mxu0 %v5329_v46 }
  0xf5   :  { %2262 = vmatmul.mubr.bf16.gmra.mrb[68].mxu0 %v5333_v53 }
  0xf6   :  { %2269 = vmatprep.mubr.bf16.mxu0 %v5335_v56 }
  0xfd   :  { %2270 = vmatmul.mubr.bf16.gmra.mrb[72].mxu0 %v5339_v3 }
  0xfe   :  { %2277 = vmatprep.mubr.bf16.mxu0 %v5341_v4 }
 0x105   :  { %2278 = vmatmul.mubr.bf16.gmra.mrb[76].mxu0 %v5345_v13  ;;  %v1725_v13 = vld [vmem:[#allocation2 + $0x5b8] sm:$0xff] }
 0x106   :  { %2285 = vmatprep.mubr.bf16.mxu0 %v5347_v19 }
 0x108   :  { %v949_v29 = vpop.f32.mrb[0].mxu0 }
 0x109   :  { %v950_v30 = vadd.f32 %v3962_v20, %v949_v29  ;;  %v4295_v37 = vpop.f32.mrb[1].mxu0  ;;  %v1723_v20 = vld [vmem:[#allocation2 + $0x5a8] sm:$0xff] }
 0x10a   :  { %v952_v39 = vpop.f32.mrb[2].mxu0  ;;  %v5371_v22 = vpack.c.bf16 %v1723_v20, %v1719_v12  ;;  %v1727_v29 = vld [vmem:[#allocation2 + $0x5c8] sm:$0xff]  ;;  %v5375_v37 = vpack.c.bf16 %v1722_v28, %v1718_v27  ;;  %v5389_v12 = vpack.c.bf16 %v1549_v10, %v1545_v59  ;;  %v1544_v20 = vld [vmem:[#allocation2 + $0x10] sm:$0xff]  ;;  %v1553_v28 = vld [vmem:[#allocation2 + $0x58] sm:$0xff] }
 0x10b   :  { %v955_v47 = vmax.f32 %v950_v30, 0.0  ;;  %v4296_v48 = vpop.f32.mrb[3].mxu0  ;;  %v1731_v30 = vld [vmem:[#allocation2 + $0x5e8] sm:$0xff]  ;;  %v1548_v27 = vld [vmem:[#allocation2 + $0x30] sm:$0xff]  ;;  %v1565_v59 = vld [vmem:[#allocation2 + $0xb8] sm:$0xff] }
 0x10c   :  { %8126 = vst [vmem:[#allocation52_spill] sm:$0xff] %v5371_v22  ;;  %8127 = vst [vmem:[#allocation53_spill] sm:$0xff] %v5375_v37  ;;  %v5377_v39 = vpack.c.bf16 %v1731_v30, %v1727_v29  ;;  %v1730_v48 = vld [vmem:[#allocation2 + $0x5e0] sm:$0xff]  ;;  %v1557_v29 = vld [vmem:[#allocation2 + $0x78] sm:$0xff]  ;;  %v5393_v30 = vpack.c.bf16 %v1548_v27, %v1544_v20  ;;  %v5401_v1 = vpack.c.bf16 %v1565_v59, %v1561_v58 }
 0x10d   :  { %v956_v49 = vpack.c.bf16 %v955_v47, %v955_v47  ;;  %2286 = vmatmul.mubr.bf16.gmra.mrb[80].mxu0 %v5354_v38  ;;  %v1726_v47 = vld [vmem:[#allocation2 + $0x5c0] sm:$0xff]  ;;  %8132 = vst [vmem:[#allocation58_spill] sm:$0xff] %v5389_v12  ;;  %v1560_v20 = vld [vmem:[#allocation2 + $0x90] sm:$0xff]  ;;  %v1577_v58 = vld [vmem:[#allocation2 + $0x118] sm:$0xff] }
 0x10e   :  { %2293 = vmatprep.mubr.bf16.mxu0 %v5356_v40  ;;  %8128 = vst [vmem:[#allocation54_spill] sm:$0xff] %v5377_v39  ;;  %v5381_v50 = vpack.c.bf16 %v1730_v48, %v1726_v47  ;;  %8133 = vst [vmem:[#allocation59_spill] sm:$0xff] %v5393_v30  ;;  %v5395_v47 = vpack.c.bf16 %v1557_v29, %v1553_v28  ;;  %v1552_v48 = vld [vmem:[#allocation2 + $0x50] sm:$0xff]  ;;  %v1569_v28 = vld [vmem:[#allocation2 + $0xd8] sm:$0xff] }
 0x10f   :  { %4306 = vmatmul.mubr.msk.bf16.vlgmr.msra.gmra.mrb[0].mxu1 %vm7971_vm1, %v956_v49  ;;  %v1735_v49 = vld [vmem:[#allocation2 + $0x608] sm:$0xff]  ;;  %8136 = vst [vmem:[#allocation62_spill] sm:$0xff] %v5401_v1  ;;  %v1564_v27 = vld [vmem:[#allocation2 + $0xb0] sm:$0xff]  ;;  %v1573_v29 = vld [vmem:[#allocation2 + $0xf8] sm:$0xff] }
 0x110   :  { %4311 = vmatprep.mubr.msk.bf16.mxu1 %vm7995_vm0, %v7908_v0  ;;  %8129 = vst [vmem:[#allocation55_spill] sm:$0xff] %v5381_v50  ;;  %v5383_v57 = vpack.c.bf16 %v1735_v49, %v1735_v49  ;;  %8134 = vst [vmem:[#allocation60_spill] sm:$0xff] %v5395_v47  ;;  %v1556_v49 = vld [vmem:[#allocation2 + $0x70] sm:$0xff]  ;;  %v5405_v0 = vpack.c.bf16 %v1564_v27, %v1560_v20  ;;  %v1581_v59 = vld [vmem:[#allocation2 + $0x138] sm:$0xff] }
 0x111   :  { %v5399_v10 = vpack.c.bf16 %v1556_v49, %v1552_v48  ;;  %v1568_v48 = vld [vmem:[#allocation2 + $0xd0] sm:$0xff] }
 0x112   :  { %8130 = vst [vmem:[#allocation56_spill] sm:$0xff] %v5383_v57  ;;  %8137 = vst [vmem:[#allocation63_spill] sm:$0xff] %v5405_v0  ;;  %v1572_v49 = vld [vmem:[#allocation2 + $0xf0] sm:$0xff] }
 0x113   :  { %8135 = vst [vmem:[#allocation61_spill] sm:$0xff] %v5399_v10  ;;  %v1576_v20 = vld [vmem:[#allocation2 + $0x110] sm:$0xff] }
 0x114   :  { %v1580_v27 = vld [vmem:[#allocation2 + $0x130] sm:$0xff] }
 0x115   :  { %2294 = vmatmul.mubr.bf16.gmra.mrb[84].mxu0 %v5363_v2  ;;  %v1716_v2 = vld [vmem:[#allocation2 + $0x570] sm:$0xff] }
 0x116   :  { %2301 = vmatprep.mubr.bf16.mxu0 %v5365_v5 }
 0x11d   :  { %2302 = vmatmul.mubr.bf16.gmra.mrb[88].mxu0 %v5369_v21 }
 0x11e   :  { %2309 = vmatprep.mubr.bf16.mxu0 %v5371_v22 }
 0x125   :  { %2310 = vmatmul.mubr.bf16.gmra.mrb[92].mxu0 %v5375_v37 }
 0x126   :  { %2317 = vmatprep.mubr.bf16.mxu0 %v5377_v39 }
 0x12d   :  { %2318 = vmatmul.mubr.bf16.gmra.mrb[96].mxu0 %v5381_v50 }
 0x12e   :  { %2325 = vmatprep.mubr.bf16.mxu0 %v5383_v57 }
 0x135   :  { %2326 = vmatmul.mubr.bf16.gmra.mrb[100].mxu0 %v5387_v11 }
 0x136   :  { %2365 = vmatprep.mubr.bf16.mxu0 %v5389_v12  ;;  %v5407_v12 = vpack.c.bf16 %v1573_v29, %v1569_v28  ;;  %v1585_v28 = vld [vmem:[#allocation2 + $0x158] sm:$0xff] }
 0x137   :  { %v1589_v29 = vld [vmem:[#allocation2 + $0x178] sm:$0xff] }
 0x138   :  { %8138 = vst [vmem:[#allocation64_spill] sm:$0xff] %v5407_v12 }
 0x13d   :  { %2366 = vmatmul.mubr.bf16.vlgmr.msra.gmra.mrb[4].mxu0 %v5393_v30 }
 0x13e   :  { %2373 = vmatprep.mubr.bf16.mxu0 %v5395_v47  ;;  %v5411_v47 = vpack.c.bf16 %v1572_v49, %v1568_v48  ;;  %v1584_v48 = vld [vmem:[#allocation2 + $0x150] sm:$0xff] }
 0x13f   :  { %v1588_v49 = vld [vmem:[#allocation2 + $0x170] sm:$0xff] }
 0x140   :  { %8139 = vst [vmem:[#allocation65_spill] sm:$0xff] %v5411_v47 }
 0x145   :  { %2374 = vmatmul.mubr.bf16.gmra.mrb[8].mxu0 %v5399_v10  ;;  %v5413_v10 = vpack.c.bf16 %v1581_v59, %v1577_v58  ;;  %v1593_v58 = vld [vmem:[#allocation2 + $0x198] sm:$0xff] }
 0x146   :  { %2381 = vmatprep.mubr.bf16.mxu0 %v5401_v1  ;;  %v5417_v1 = vpack.c.bf16 %v1580_v27, %v1576_v20  ;;  %v1597_v59 = vld [vmem:[#allocation2 + $0x1b8] sm:$0xff]  ;;  %v1592_v20 = vld [vmem:[#allocation2 + $0x190] sm:$0xff] }
 0x147   :  { %8140 = vst [vmem:[#allocation66_spill] sm:$0xff] %v5413_v10  ;;  %v1596_v27 = vld [vmem:[#allocation2 + $0x1b0] sm:$0xff] }
 0x148   :  { %8141 = vst [vmem:[#allocation67_spill] sm:$0xff] %v5417_v1 }
 0x14d   :  { %2382 = vmatmul.mubr.bf16.gmra.mrb[12].mxu0 %v5405_v0  ;;  %v5419_v0 = vpack.c.bf16 %v1589_v29, %v1585_v28  ;;  %v1601_v28 = vld [vmem:[#allocation2 + $0x1d8] sm:$0xff] }
 0x14e   :  { %2389 = vmatprep.mubr.bf16.mxu0 %v5407_v12  ;;  %v5423_v12 = vpack.c.bf16 %v1588_v49, %v1584_v48  ;;  %v1605_v29 = vld [vmem:[#allocation2 + $0x1f8] sm:$0xff]  ;;  %v1600_v48 = vld [vmem:[#allocation2 + $0x1d0] sm:$0xff] }
 0x14f   :  { %8142 = vst [vmem:[#allocation68_spill] sm:$0xff] %v5419_v0  ;;  %v1604_v49 = vld [vmem:[#allocation2 + $0x1f0] sm:$0xff] }
 0x150   :  { %8143 = vst [vmem:[#allocation69_spill] sm:$0xff] %v5423_v12 }
 0x155   :  { %2390 = vmatmul.mubr.bf16.gmra.mrb[16].mxu0 %v5411_v47  ;;  %v5425_v47 = vpack.c.bf16 %v1597_v59, %v1593_v58  ;;  %v1609_v58 = vld [vmem:[#allocation2 + $0x218] sm:$0xff] }
 0x156   :  { %2397 = vmatprep.mubr.bf16.mxu0 %v5413_v10  ;;  %v5429_v10 = vpack.c.bf16 %v1596_v27, %v1592_v20  ;;  %v1613_v59 = vld [vmem:[#allocation2 + $0x238] sm:$0xff]  ;;  %v1608_v20 = vld [vmem:[#allocation2 + $0x210] sm:$0xff] }
 0x157   :  { %8144 = vst [vmem:[#allocation70_spill] sm:$0xff] %v5425_v47  ;;  %v1612_v27 = vld [vmem:[#allocation2 + $0x230] sm:$0xff] }
 0x158   :  { %8145 = vst [vmem:[#allocation71_spill] sm:$0xff] %v5429_v10 }
 0x15d   :  { %2398 = vmatmul.mubr.bf16.gmra.mrb[20].mxu0 %v5417_v1  ;;  %v5431_v1 = vpack.c.bf16 %v1605_v29, %v1601_v28  ;;  %v1617_v28 = vld [vmem:[#allocation2 + $0x258] sm:$0xff] }
 0x15e   :  { %2405 = vmatprep.mubr.bf16.mxu0 %v5419_v0  ;;  %v5435_v0 = vpack.c.bf16 %v1604_v49, %v1600_v48  ;;  %v1621_v29 = vld [vmem:[#allocation2 + $0x278] sm:$0xff]  ;;  %v1616_v48 = vld [vmem:[#allocation2 + $0x250] sm:$0xff] }
 0x15f   :  { %8146 = vst [vmem:[#allocation72_spill] sm:$0xff] %v5431_v1  ;;  %v1620_v49 = vld [vmem:[#allocation2 + $0x270] sm:$0xff] }
 0x160   :  { %8147 = vst [vmem:[#allocation73_spill] sm:$0xff] %v5435_v0 }
 0x165   :  { %2406 = vmatmul.mubr.bf16.gmra.mrb[24].mxu0 %v5423_v12  ;;  %v5437_v12 = vpack.c.bf16 %v1613_v59, %v1609_v58  ;;  %v1625_v58 = vld [vmem:[#allocation2 + $0x298] sm:$0xff] }
 0x166   :  { %2413 = vmatprep.mubr.bf16.mxu0 %v5425_v47  ;;  %v5441_v47 = vpack.c.bf16 %v1612_v27, %v1608_v20  ;;  %v1629_v59 = vld [vmem:[#allocation2 + $0x2b8] sm:$0xff]  ;;  %v1624_v20 = vld [vmem:[#allocation2 + $0x290] sm:$0xff] }
 0x167   :  { %8148 = vst [vmem:[#allocation74_spill] sm:$0xff] %v5437_v12  ;;  %v1628_v27 = vld [vmem:[#allocation2 + $0x2b0] sm:$0xff] }
 0x168   :  { %8149 = vst [vmem:[#allocation75_spill] sm:$0xff] %v5441_v47 }
 0x16d   :  { %2414 = vmatmul.mubr.bf16.gmra.mrb[28].mxu0 %v5429_v10  ;;  %v5443_v10 = vpack.c.bf16 %v1621_v29, %v1617_v28  ;;  %v1633_v28 = vld [vmem:[#allocation2 + $0x2d8] sm:$0xff] }
 0x16e   :  { %2421 = vmatprep.mubr.bf16.mxu0 %v5431_v1  ;;  %v5447_v1 = vpack.c.bf16 %v1620_v49, %v1616_v48  ;;  %v1637_v29 = vld [vmem:[#allocation2 + $0x2f8] sm:$0xff]  ;;  %v1632_v48 = vld [vmem:[#allocation2 + $0x2d0] sm:$0xff] }
 0x16f   :  { %8150 = vst [vmem:[#allocation76_spill] sm:$0xff] %v5443_v10  ;;  %v5455_v30 = vpack.c.bf16 %v1637_v29, %v1633_v28  ;;  %v1636_v49 = vld [vmem:[#allocation2 + $0x2f0] sm:$0xff]  ;;  %v1649_v28 = vld [vmem:[#allocation2 + $0x358] sm:$0xff] }
 0x170   :  { %8151 = vst [vmem:[#allocation77_spill] sm:$0xff] %v5447_v1  ;;  %v1653_v29 = vld [vmem:[#allocation2 + $0x378] sm:$0xff] }
 0x171   :  { %8154 = vst [vmem:[#allocation80_spill] sm:$0xff] %v5455_v30 }
 0x175   :  { %2422 = vmatmul.mubr.bf16.gmra.mrb[32].mxu0 %v5435_v0  ;;  %v5449_v0 = vpack.c.bf16 %v1629_v59, %v1625_v58  ;;  %v1641_v58 = vld [vmem:[#allocation2 + $0x318] sm:$0xff] }
 0x176   :  { %2429 = vmatprep.mubr.bf16.mxu0 %v5437_v12  ;;  %v5453_v12 = vpack.c.bf16 %v1628_v27, %v1624_v20  ;;  %v1645_v59 = vld [vmem:[#allocation2 + $0x338] sm:$0xff]  ;;  %v1640_v20 = vld [vmem:[#allocation2 + $0x310] sm:$0xff] }
 0x177   :  { %8152 = vst [vmem:[#allocation78_spill] sm:$0xff] %v5449_v0  ;;  %v1644_v27 = vld [vmem:[#allocation2 + $0x330] sm:$0xff] }
 0x178   :  { %8153 = vst [vmem:[#allocation79_spill] sm:$0xff] %v5453_v12 }
 0x17d   :  { %2430 = vmatmul.mubr.bf16.gmra.mrb[36].mxu0 %v5441_v47  ;;  %v5469_v47 = vpack.c.bf16 %v1653_v29, %v1649_v28 }
 0x17e   :  { %2437 = vmatprep.mubr.bf16.mxu0 %v5443_v10  ;;  %v5459_v10 = vpack.c.bf16 %v1636_v49, %v1632_v48  ;;  %v1648_v49 = vld [vmem:[#allocation2 + $0x350] sm:$0xff] }
 0x17f   :  { %8159 = vst [vmem:[#allocation85_spill] sm:$0xff] %v5469_v47 }
 0x180   :  { %8155 = vst [vmem:[#allocation81_spill] sm:$0xff] %v5459_v10 }
 0x185   :  { %2438 = vmatmul.mubr.bf16.gmra.mrb[40].mxu0 %v5447_v1  ;;  %v5461_v1 = vpack.c.bf16 %v1645_v59, %v1641_v58  ;;  %v1652_v58 = vld [vmem:[#allocation2 + $0x370] sm:$0xff] }
 0x186   :  { %2445 = vmatprep.mubr.bf16.mxu0 %v5449_v0  ;;  %v48_v0 = vlaneseq }
 0x187   :  { %8156 = vst [vmem:[#allocation82_spill] sm:$0xff] %v5461_v1 }
 0x188   :  { %v5474_v59 = vshrl.u32 %v48_v0, 7 }
 0x18a   :  { %8160 = vst [vmem:[#allocation86_spill] sm:$0xff] %v5474_v59  ;;  %v5479_v34 = vadd.s32 128, %v5474_v59  ;;  %v5489_v29 = vadd.s32 8, %v5474_v59  ;;  %v5532_v26 = vadd.s32 144, %v5474_v59  ;;  %v5543_v61 = vadd.s32 152, %v5474_v59 }
 0x18b   :  { %v5592_v42 = vadd.s32 160, %v5474_v59  ;;  %v5603_v36 = vadd.s32 168, %v5474_v59  ;;  %v5652_v39 = vadd.s32 176, %v5474_v59  ;;  %v5663_v32 = vadd.s32 184, %v5474_v59 }
 0x18c   :  { %8161 = vst [vmem:[#allocation87_spill] sm:$0xff] %v5479_v34  ;;  %8166 = vst [vmem:[#allocation91_spill] sm:$0xff] %v5532_v26  ;;  %v5712_v5 = vadd.s32 192, %v5474_v59  ;;  %v5723_v16 = vadd.s32 200, %v5474_v59  ;;  %v5772_v19 = vadd.s32 208, %v5474_v59  ;;  %v5783_v60 = vadd.s32 216, %v5474_v59 }
 0x18d   :  { %2446 = vmatmul.mubr.bf16.gmra.mrb[44].mxu0 %v5453_v12  ;;  %v5465_v12 = vand.u32 127, %v48_v0  ;;  %8168 = vst [vmem:[#allocation93_spill] sm:$0xff] %v5543_v61  ;;  %8172 = vst [vmem:[#allocation97_spill] sm:$0xff] %v5592_v42  ;;  %v5832_v56 = vadd.s32 224, %v5474_v59  ;;  %v5843_v41 = vadd.s32 232, %v5474_v59  ;;  %v5924_v44 = vadd.s32 240, %v5474_v59 }
 0x18e   :  { %2453 = vmatprep.mubr.bf16.mxu0 %v5455_v30  ;;  %v5467_v30 = vpack.c.bf16 %v1644_v27, %v1640_v20  ;;  %v5481_v20 = vpack.c.bf16 %v1652_v58, %v1648_v49  ;;  %v5484_v27 = vadd.s32 136, %v5474_v59  ;;  %v1660_v49 = vld [vmem:[#allocation2 + $0x3b0] sm:$0xff]  ;;  %8174 = vst [vmem:[#allocation99_spill] sm:$0xff] %v5603_v36  ;;  %8178 = vst [vmem:[#allocation103_spill] sm:$0xff] %v5652_v39  ;;  %v5974_v21 = vadd.s32 120, %v5474_v59 }
 0x18f   :  { %8157 = vst [vmem:[#allocation83_spill] sm:$0xff] %v5465_v12  ;;  %v150_v48 = vadd.s32 1, %v5465_v12  ;;  %v5492_v0 = vmul.u32 49, %v5465_v12  ;;  %8180 = vst [vmem:[#allocation105_spill] sm:$0xff] %v5663_v32 }
 0x190   :  { %8158 = vst [vmem:[#allocation84_spill] sm:$0xff] %v5467_v30  ;;  %8162 = vst [vmem:[#allocation88_spill] sm:$0xff] %v5481_v20 }
 0x191   :  { %v5476_v25 = vmul.u32 49, %v150_v48  ;;  %8163 = vst [vmem:[#allocation89_spill] sm:$0xff] %v5484_v27  ;;  %v8165_v48 = vmov 0.0   ;;  %vm117_vm6 = vcmp.ge.s32.totalorder %v5479_v34, %v5492_v0  ;;  %vm118_vm9 = vcmp.ge.s32.totalorder %v5484_v27, %v5492_v0  ;;  %8184 = vst [vmem:[#allocation109_spill] sm:$0xff] %v5712_v5 }
 0x192   :  { %8186 = vst [vmem:[#allocation111_spill] sm:$0xff] %v5723_v16  ;;  %vm126_vm1 = vcmp.ge.s32.totalorder %v5723_v16, %v5492_v0  ;;  %8190 = vst [vmem:[#allocation115_spill] sm:$0xff] %v5772_v19 }
 0x193   :  { %vm168_vm2 = vcmp.ge.s32.totalorder %v5479_v34, %v5476_v25  ;;  %vm169_vm4 = vcmp.ge.s32.totalorder %v5484_v27, %v5476_v25  ;;  %vm152_vm5 = vcmp.ge.s32.totalorder %v5474_v59, %v5476_v25  ;;  %vm153_vm13 = vcmp.ge.s32.totalorder %v5489_v29, %v5476_v25  ;;  %8192 = vst [vmem:[#allocation117_spill] sm:$0xff] %v5783_v60 }
 0x194   :  { %vm217_vm8 = vmxor %vm168_vm2, %vm4983_vm7  ;;  %v374_v18 = vsel %vm153_vm13, 1.0, %v8165_v48  ;;  %vm170_vm14 = vcmp.ge.s32.totalorder %v5532_v26, %v5476_v25  ;;  %vm171_vm15 = vcmp.ge.s32.totalorder %v5543_v61, %v5476_v25  ;;  %8196 = vst [vmem:[#allocation121_spill] sm:$0xff] %v5832_v56 }
 0x195   :  { %2454 = vmatmul.mubr.bf16.gmra.mrb[48].mxu0 %v5459_v10  ;;  %v1661_v10 = vld [vmem:[#allocation2 + $0x3b8] sm:$0xff]  ;;  %vm266_vm10 = vmand %vm117_vm6, %vm217_vm8  ;;  %vm120_vm6 = vcmp.ge.s32.totalorder %v5543_v61, %v5492_v0  ;;  %8198 = vst [vmem:[#allocation123_spill] sm:$0xff] %v5843_v41  ;;  %v6359_v61 = vadd.s32 328, %v5474_v59 }
 0x196   :  { %2461 = vmatprep.mubr.bf16.mxu0 %v5461_v1  ;;  %v1657_v1 = vld [vmem:[#allocation2 + $0x398] sm:$0xff]  ;;  %v5514_v58 = vsel %vm266_vm10, 1.0, %v8165_v48  ;;  %vm218_vm11 = vmxor %vm169_vm4, %vm4983_vm7  ;;  %8208 = vst [vmem:[#allocation127_spill] sm:$0xff] %v5924_v44 }
 0x197   :  { %v5486_v28 = vpack.c.bf16 %v1661_v10, %v1657_v1  ;;  %v373_v10 = vsel %vm152_vm5, 1.0, %v8165_v48  ;;  %vm267_vm12 = vmand %vm118_vm9, %vm218_vm11  ;;  %8219 = vst [vmem:[#allocation132_spill] sm:$0xff] %v5974_v21 }
 0x198   :  { %v5528_v17 = vsel %vm267_vm12, 1.0, %v8165_v48  ;;  %vm220_vm10 = vmxor %vm171_vm15, %vm4983_vm7 }
 0x199   :  { %8164 = vst [vmem:[#allocation90_spill] sm:$0xff] %v5486_v28  ;;  %vm269_vm11 = vmand %vm120_vm6, %vm220_vm10  ;;  %vm122_vm6 = vcmp.ge.s32.totalorder %v5603_v36, %v5492_v0 }
 0x19a   :  { %v5588_v52 = vsel %vm269_vm11, 1.0, %v8165_v48 }
 0x19d   :  { %2462 = vmatmul.mubr.bf16.gmra.mrb[52].mxu0 %v5467_v30  ;;  %v423_v30 = vsel %vm8030_vm3, %v373_v10, 0.0 }
 0x19e   :  { %2469 = vmatprep.mubr.bf16.mxu0 %v5469_v47  ;;  %v389_v47 = vsel %vm168_vm2, 1.0, %v8165_v48  ;;  %424 = vadd.xlane.f32.xlu1 %v423_v30  ;;  %vm119_vm2 = vcmp.ge.s32.totalorder %v5532_v26, %v5492_v0  ;;  %v1673_v30 = vld [vmem:[#allocation2 + $0x418] sm:$0xff] }
 0x19f   :  { %v471_v1 = vsel %vm8030_vm3, %v389_v47, 0.0  ;;  %v1656_v47 = vld [vmem:[#allocation2 + $0x390] sm:$0xff] }
 0x1a0   :  { %472 = vadd.xlane.f32.xlu0 %v471_v1  ;;  %v1665_v1 = vld [vmem:[#allocation2 + $0x3d8] sm:$0xff]  ;;  %v5534_v8 = vpack.c.bf16 %v1660_v49, %v1656_v47  ;;  %v426_v47 = vsel %vm8030_vm3, %v374_v18, 0.0  ;;  %v391_v49 = vsel %vm170_vm14, 1.0, %v8165_v48  ;;  %v392_v18 = vsel %vm171_vm15, 1.0, %v8165_v48 }
 0x1a1   :  { %vm173_vm15 = vcmp.ge.s32.totalorder %v5603_v36, %v5476_v25  ;;  %v6287_v36 = vadd.s32 312, %v5474_v59 }
 0x1a2   :  { %8167 = vst [vmem:[#allocation92_spill] sm:$0xff] %v5534_v8  ;;  %427 = vadd.xlane.f32.xlu1 %v426_v47  ;;  %v1668_v47 = vld [vmem:[#allocation2 + $0x3f0] sm:$0xff]  ;;  %vm222_vm11 = vmxor %vm173_vm15, %vm4983_vm7 }
 0x1a5   :  { %2470 = vmatmul.mubr.bf16.gmra.mrb[56].mxu0 %v5481_v20  ;;  %v1669_v20 = vld [vmem:[#allocation2 + $0x3f8] sm:$0xff] }
 0x1a6   :  { %2477 = vmatprep.mubr.bf16.mxu0 %v5486_v28  ;;  %v390_v28 = vsel %vm169_vm4, 1.0, %v8165_v48  ;;  %v5545_v9 = vpack.c.bf16 %v1669_v20, %v1665_v1  ;;  %vm219_vm4 = vmxor %vm170_vm14, %vm4983_vm7  ;;  %v477_v20 = vsel %vm8030_vm3, %v391_v49, 0.0  ;;  %v1664_v1 = vld [vmem:[#allocation2 + $0x3d0] sm:$0xff]  ;;  %vm172_vm14 = vcmp.ge.s32.totalorder %v5592_v42, %v5476_v25 }
 0x1a7   :  { %v474_v10 = vsel %vm8030_vm3, %v390_v28, 0.0  ;;  %v5548_v28 = vadd.s32 16, %v5474_v59  ;;  %vm268_vm8 = vmand %vm119_vm2, %vm219_vm4  ;;  %vm121_vm2 = vcmp.ge.s32.totalorder %v5592_v42, %v5492_v0 }
 0x1a8   :  { %475 = vadd.xlane.f32.xlu0 %v474_v10  ;;  %8169 = vst [vmem:[#allocation94_spill] sm:$0xff] %v5545_v9  ;;  %v5557_v10 = vadd.s32 24, %v5474_v59  ;;  %v5574_v49 = vsel %vm268_vm8, 1.0, %v8165_v48  ;;  %vm221_vm4 = vmxor %vm172_vm14, %vm4983_vm7 }
 0x1a9   :  { %8170 = vst [vmem:[#allocation95_spill] sm:$0xff] %v5548_v28  ;;  %vm154_vm9 = vcmp.ge.s32.totalorder %v5548_v28, %v5476_v25  ;;  %vm270_vm8 = vmand %vm121_vm2, %vm221_vm4  ;;  %vm175_vm4 = vcmp.ge.s32.totalorder %v5663_v32, %v5476_v25 }
 0x1aa   :  { %8171 = vst [vmem:[#allocation96_spill] sm:$0xff] %v5557_v10  ;;  %vm155_vm12 = vcmp.ge.s32.totalorder %v5557_v10, %v5476_v25 }
 0x1ab   :  { %v376_v55 = vsel %vm155_vm12, 1.0, %v8165_v48 }
 0x1ac   :  { %478 = vadd.xlane.f32.xlu0 %v477_v20  ;;  %v480_v20 = vsel %vm8030_vm3, %v392_v18, 0.0  ;;  %v5594_v18 = vpack.c.bf16 %v1668_v47, %v1664_v1  ;;  %v432_v1 = vsel %vm8030_vm3, %v376_v55, 0.0  ;;  %v5617_v47 = vadd.s32 40, %v5474_v59 }
 0x1ad   :  { %2478 = vmatmul.mubr.bf16.gmra.mrb[60].mxu0 %v5534_v8  ;;  %v1677_v8 = vld [vmem:[#allocation2 + $0x438] sm:$0xff]  ;;  %481 = vadd.xlane.f32.xlu1 %v480_v20  ;;  %v394_v55 = vsel %vm173_vm15, 1.0, %v8165_v48  ;;  %vm174_vm15 = vcmp.ge.s32.totalorder %v5652_v39, %v5476_v25 }
 0x1ae   :  { %2485 = vmatprep.mubr.bf16.mxu0 %v5545_v9  ;;  %v375_v9 = vsel %vm154_vm9, 1.0, %v8165_v48  ;;  %8173 = vst [vmem:[#allocation98_spill] sm:$0xff] %v5594_v18  ;;  %v5605_v45 = vpack.c.bf16 %v1677_v8, %v1673_v30  ;;  %8177 = vst [vmem:[#allocation102_spill] sm:$0xff] %v5617_v47  ;;  %v1672_v30 = vld [vmem:[#allocation2 + $0x410] sm:$0xff]  ;;  %v1681_v20 = vld [vmem:[#allocation2 + $0x458] sm:$0xff]  ;;  %vm8011_vm2 = vcmp.ge.s32.totalorder %v5617_v47, %v5476_v25 }
 0x1af   :  { %v429_v63 = vsel %vm8030_vm3, %v375_v9, 0.0  ;;  %v5608_v9 = vadd.s32 32, %v5474_v59  ;;  %v378_v33 = vsel %vm8011_vm2, 1.0, %v8165_v48 }
 0x1b0   :  { %430 = vadd.xlane.f32.xlu0 %v429_v63  ;;  %8175 = vst [vmem:[#allocation100_spill] sm:$0xff] %v5605_v45  ;;  %v393_v63 = vsel %vm172_vm14, 1.0, %v8165_v48  ;;  %vm271_vm14 = vmand %vm122_vm6, %vm222_vm11  ;;  %vm123_vm6 = vcmp.ge.s32.totalorder %v5652_v39, %v5492_v0  ;;  %vm124_vm11 = vcmp.ge.s32.totalorder %v5663_v32, %v5492_v0  ;;  %v6210_v32 = vadd.s32 296, %v5474_v59 }
 0x1b1   :  { %8176 = vst [vmem:[#allocation101_spill] sm:$0xff] %v5608_v9  ;;  %433 = vadd.xlane.f32.xlu1 %v432_v1  ;;  %v483_v8 = vsel %vm8030_vm3, %v393_v63, 0.0  ;;  %v1676_v1 = vld [vmem:[#allocation2 + $0x430] sm:$0xff]  ;;  %vm156_vm10 = vcmp.ge.s32.totalorder %v5608_v9, %v5476_v25  ;;  %v5634_v63 = vsel %vm270_vm8, 1.0, %v8165_v48  ;;  %v5648_v15 = vsel %vm271_vm14, 1.0, %v8165_v48  ;;  %vm223_vm8 = vmxor %vm174_vm15, %vm4983_vm7 }
 0x1b2   :  { %vm272_vm14 = vmand %vm123_vm6, %vm223_vm8  ;;  %8253 = vst [vmem:[#allocation141_spill] sm:$0xff] %v6210_v32  ;;  %v6284_v39 = vadd.s32 304, %v5474_v59 }
 0x1b3   :  { %vm224_vm6 = vmxor %vm175_vm4, %vm4983_vm7 }
 0x1b4   :  { %484 = vadd.xlane.f32.xlu0 %v483_v8  ;;  %v486_v8 = vsel %vm8030_vm3, %v394_v55, 0.0  ;;  %v5654_v55 = vpack.c.bf16 %v1676_v1, %v1672_v30  ;;  %v438_v30 = vsel %vm8030_vm3, %v378_v33, 0.0  ;;  %v5677_v1 = vadd.s32 56, %v5474_v59  ;;  %vm273_vm8 = vmand %vm124_vm11, %vm224_vm6 }
 0x1b5   :  { %2486 = vmatmul.mubr.bf16.gmra.mrb[64].mxu0 %v5594_v18  ;;  %v1685_v18 = vld [vmem:[#allocation2 + $0x478] sm:$0xff]  ;;  %487 = vadd.xlane.f32.xlu1 %v486_v8  ;;  %v396_v33 = vsel %vm175_vm4, 1.0, %v8165_v48  ;;  %v5708_v43 = vsel %vm273_vm8, 1.0, %v8165_v48  ;;  %vm176_vm4 = vcmp.ge.s32.totalorder %v5712_v5, %v5476_v25  ;;  %vm177_vm11 = vcmp.ge.s32.totalorder %v5723_v16, %v5476_v25 }
 0x1b6   :  { %2493 = vmatprep.mubr.bf16.mxu0 %v5605_v45  ;;  %v377_v45 = vsel %vm156_vm10, 1.0, %v8165_v48  ;;  %8179 = vst [vmem:[#allocation104_spill] sm:$0xff] %v5654_v55  ;;  %v5665_v22 = vpack.c.bf16 %v1685_v18, %v1681_v20  ;;  %8183 = vst [vmem:[#allocation108_spill] sm:$0xff] %v5677_v1  ;;  %v1680_v20 = vld [vmem:[#allocation2 + $0x450] sm:$0xff]  ;;  %v1689_v8 = vld [vmem:[#allocation2 + $0x498] sm:$0xff]  ;;  %vm125_vm6 = vcmp.ge.s32.totalorder %v5712_v5, %v5492_v0  ;;  %v6132_v16 = vadd.s32 280, %v5474_v59 }
 0x1b7   :  { %v435_v57 = vsel %vm8030_vm3, %v377_v45, 0.0  ;;  %v5668_v45 = vadd.s32 48, %v5474_v59  ;;  %vm225_vm8 = vmxor %vm176_vm4, %vm4983_vm7  ;;  %v6207_v5 = vadd.s32 288, %v5474_v59 }
 0x1b8   :  { %436 = vadd.xlane.f32.xlu0 %v435_v57  ;;  %8181 = vst [vmem:[#allocation106_spill] sm:$0xff] %v5665_v22  ;;  %v395_v57 = vsel %vm174_vm15, 1.0, %v8165_v48  ;;  %8238 = vst [vmem:[#allocation138_spill] sm:$0xff] %v6132_v16 }
 0x1b9   :  { %8182 = vst [vmem:[#allocation107_spill] sm:$0xff] %v5668_v45  ;;  %439 = vadd.xlane.f32.xlu1 %v438_v30  ;;  %v489_v18 = vsel %vm8030_vm3, %v395_v57, 0.0  ;;  %v1684_v30 = vld [vmem:[#allocation2 + $0x470] sm:$0xff]  ;;  %vm7993_vm15 = vcmp.ge.s32.totalorder %v5668_v45, %v5476_v25  ;;  %v5694_v57 = vsel %vm272_vm14, 1.0, %v8165_v48  ;;  %vm7972_vm14 = vcmp.ge.s32.totalorder %v5677_v1, %v5476_v25 }
 0x1ba   :  { %v380_v31 = vsel %vm7972_vm14, 1.0, %v8165_v48  ;;  %vm274_vm14 = vmand %vm125_vm6, %vm225_vm8 }
 0x1bb   :  { %vm226_vm6 = vmxor %vm177_vm11, %vm4983_vm7 }
 0x1bc   :  { %490 = vadd.xlane.f32.xlu0 %v489_v18  ;;  %v492_v18 = vsel %vm8030_vm3, %v396_v33, 0.0  ;;  %v5714_v33 = vpack.c.bf16 %v1684_v30, %v1680_v20  ;;  %v444_v20 = vsel %vm8030_vm3, %v380_v31, 0.0  ;;  %v5737_v30 = vadd.s32 72, %v5474_v59  ;;  %vm275_vm8 = vmand %vm126_vm1, %vm226_vm6 }
 0x1bd   :  { %2494 = vmatmul.mubr.bf16.gmra.mrb[68].mxu0 %v5654_v55  ;;  %v1693_v55 = vld [vmem:[#allocation2 + $0x4b8] sm:$0xff]  ;;  %493 = vadd.xlane.f32.xlu1 %v492_v18  ;;  %v398_v31 = vsel %vm177_vm11, 1.0, %v8165_v48  ;;  %v5768_v23 = vsel %vm275_vm8, 1.0, %v8165_v48  ;;  %vm178_vm1 = vcmp.ge.s32.totalorder %v5772_v19, %v5476_v25  ;;  %vm179_vm11 = vcmp.ge.s32.totalorder %v5783_v60, %v5476_v25 }
 0x1be   :  { %2501 = vmatprep.mubr.bf16.mxu0 %v5665_v22  ;;  %v379_v22 = vsel %vm7993_vm15, 1.0, %v8165_v48  ;;  %8185 = vst [vmem:[#allocation110_spill] sm:$0xff] %v5714_v33  ;;  %v5725_v40 = vpack.c.bf16 %v1693_v55, %v1689_v8  ;;  %8189 = vst [vmem:[#allocation114_spill] sm:$0xff] %v5737_v30  ;;  %v1688_v8 = vld [vmem:[#allocation2 + $0x490] sm:$0xff]  ;;  %v1697_v18 = vld [vmem:[#allocation2 + $0x4d8] sm:$0xff]  ;;  %vm127_vm6 = vcmp.ge.s32.totalorder %v5772_v19, %v5492_v0 }
 0x1bf   :  { %v441_v24 = vsel %vm8030_vm3, %v379_v22, 0.0  ;;  %v5728_v22 = vadd.s32 64, %v5474_v59  ;;  %vm227_vm8 = vmxor %vm178_vm1, %vm4983_vm7 }
 0x1c0   :  { %442 = vadd.xlane.f32.xlu0 %v441_v24  ;;  %8187 = vst [vmem:[#allocation112_spill] sm:$0xff] %v5725_v40  ;;  %v397_v24 = vsel %vm176_vm4, 1.0, %v8165_v48 }
 0x1c1   :  { %8188 = vst [vmem:[#allocation113_spill] sm:$0xff] %v5728_v22  ;;  %445 = vadd.xlane.f32.xlu1 %v444_v20  ;;  %v495_v55 = vsel %vm8030_vm3, %v397_v24, 0.0  ;;  %v1692_v20 = vld [vmem:[#allocation2 + $0x4b0] sm:$0xff]  ;;  %vm7982_vm4 = vcmp.ge.s32.totalorder %v5728_v22, %v5476_v25  ;;  %v5754_v24 = vsel %vm274_vm14, 1.0, %v8165_v48  ;;  %vm7981_vm14 = vcmp.ge.s32.totalorder %v5737_v30, %v5476_v25 }
 0x1c2   :  { %v382_v14 = vsel %vm7981_vm14, 1.0, %v8165_v48  ;;  %vm128_vm14 = vcmp.ge.s32.totalorder %v5783_v60, %v5492_v0 }
 0x1c4   :  { %496 = vadd.xlane.f32.xlu0 %v495_v55  ;;  %v498_v55 = vsel %vm8030_vm3, %v398_v31, 0.0  ;;  %v5774_v31 = vpack.c.bf16 %v1692_v20, %v1688_v8  ;;  %v450_v8 = vsel %vm8030_vm3, %v382_v14, 0.0  ;;  %v5797_v20 = vadd.s32 88, %v5474_v59 }
 0x1c5   :  { %2502 = vmatmul.mubr.bf16.gmra.mrb[72].mxu0 %v5714_v33  ;;  %v1701_v33 = vld [vmem:[#allocation2 + $0x4f8] sm:$0xff]  ;;  %499 = vadd.xlane.f32.xlu1 %v498_v55  ;;  %v400_v14 = vsel %vm179_vm11, 1.0, %v8165_v48 }
 0x1c6   :  { %2509 = vmatprep.mubr.bf16.mxu0 %v5725_v40  ;;  %v381_v40 = vsel %vm7982_vm4, 1.0, %v8165_v48  ;;  %8191 = vst [vmem:[#allocation116_spill] sm:$0xff] %v5774_v31  ;;  %v5785_v4 = vpack.c.bf16 %v1701_v33, %v1697_v18  ;;  %8195 = vst [vmem:[#allocation120_spill] sm:$0xff] %v5797_v20  ;;  %v1696_v18 = vld [vmem:[#allocation2 + $0x4d0] sm:$0xff]  ;;  %v1705_v55 = vld [vmem:[#allocation2 + $0x518] sm:$0xff] }
 0x1c7   :  { %v447_v7 = vsel %vm8030_vm3, %v381_v40, 0.0  ;;  %v5788_v40 = vadd.s32 80, %v5474_v59  ;;  %vm276_vm4 = vmand %vm127_vm6, %vm227_vm8 }
 0x1c8   :  { %448 = vadd.xlane.f32.xlu0 %v447_v7  ;;  %8193 = vst [vmem:[#allocation118_spill] sm:$0xff] %v5785_v4  ;;  %v399_v7 = vsel %vm178_vm1, 1.0, %v8165_v48  ;;  %vm228_vm6 = vmxor %vm179_vm11, %vm4983_vm7  ;;  %vm180_vm11 = vcmp.ge.s32.totalorder %v5832_v56, %v5476_v25 }
 0x1c9   :  { %8194 = vst [vmem:[#allocation119_spill] sm:$0xff] %v5788_v40  ;;  %451 = vadd.xlane.f32.xlu1 %v450_v8  ;;  %v501_v33 = vsel %vm8030_vm3, %v399_v7, 0.0  ;;  %v1700_v8 = vld [vmem:[#allocation2 + $0x4f0] sm:$0xff]  ;;  %vm7992_vm1 = vcmp.ge.s32.totalorder %v5788_v40, %v5476_v25  ;;  %v5814_v7 = vsel %vm276_vm4, 1.0, %v8165_v48  ;;  %vm277_vm8 = vmand %vm128_vm14, %vm228_vm6  ;;  %vm7991_vm4 = vcmp.ge.s32.totalorder %v5797_v20, %v5476_v25 }
 0x1ca   :  { %v5828_v6 = vsel %vm277_vm8, 1.0, %v8165_v48  ;;  %v384_v62 = vsel %vm7991_vm4, 1.0, %v8165_v48  ;;  %vm5851_vm14 = vmxor %vm152_vm5, %vm4983_vm7  ;;  %vm181_vm5 = vcmp.ge.s32.totalorder %v5843_v41, %v5476_v25  ;;  %vm129_vm8 = vcmp.ge.s32.totalorder %v5832_v56, %v5492_v0 }
 0x1cb   :  { %vm5865_vm6 = vmxor %vm153_vm13, %vm4983_vm7  ;;  %vm130_vm13 = vcmp.ge.s32.totalorder %v5843_v41, %v5492_v0 }
 0x1cc   :  { %502 = vadd.xlane.f32.xlu0 %v501_v33  ;;  %v504_v33 = vsel %vm8030_vm3, %v400_v14, 0.0  ;;  %v5834_v14 = vpack.c.bf16 %v1700_v8, %v1696_v18  ;;  %v456_v18 = vsel %vm8030_vm3, %v384_v62, 0.0  ;;  %v5873_v8 = vadd.s32 104, %v5474_v59  ;;  %vm229_vm4 = vmxor %vm180_vm11, %vm4983_vm7 }
 0x1cd   :  { %2510 = vmatmul.mubr.bf16.gmra.mrb[76].mxu0 %v5774_v31  ;;  %v1709_v31 = vld [vmem:[#allocation2 + $0x538] sm:$0xff]  ;;  %505 = vadd.xlane.f32.xlu1 %v504_v33  ;;  %vm278_vm15 = vmand %vm129_vm8, %vm229_vm4  ;;  %v1704_v33 = vld [vmem:[#allocation2 + $0x510] sm:$0xff] }
 0x1ce   :  { %2517 = vmatprep.mubr.bf16.mxu0 %v5785_v4  ;;  %v383_v4 = vsel %vm7992_vm1, 1.0, %v8165_v48  ;;  %8197 = vst [vmem:[#allocation122_spill] sm:$0xff] %v5834_v14  ;;  %v5845_v46 = vpack.c.bf16 %v1709_v31, %v1705_v55  ;;  %v401_v55 = vsel %vm180_vm11, 1.0, %v8165_v48  ;;  %8205 = vst [vmem:[#allocation126_spill] sm:$0xff] %v5873_v8  ;;  %vm101_vm1 = vcmp.ge.s32.totalorder %v5474_v59, %v5492_v0 }
 0x1cf   :  { %v453_v51 = vsel %vm8030_vm3, %v383_v4, 0.0  ;;  %v507_v62 = vsel %vm8030_vm3, %v401_v55, 0.0  ;;  %vm102_vm11 = vcmp.ge.s32.totalorder %v5489_v29, %v5492_v0  ;;  %v5894_v55 = vsel %vm278_vm15, 1.0, %v8165_v48  ;;  %vm230_vm4 = vmxor %vm181_vm5, %vm4983_vm7  ;;  %v1720_v4 = vld [vmem:[#allocation2 + $0x590] sm:$0xff] }
 0x1d0   :  { %454 = vadd.xlane.f32.xlu0 %v453_v51  ;;  %8199 = vst [vmem:[#allocation124_spill] sm:$0xff] %v5845_v46  ;;  %v5856_v51 = vadd.s32 96, %v5474_v59  ;;  %vm279_vm8 = vmand %vm130_vm13, %vm230_vm4  ;;  %v5926_v50 = vpack.c.bf16 %v1708_v54, %v1704_v33  ;;  %v5944_v54 = vadd.s32 248, %v5474_v59 }
 0x1d1   :  { %457 = vadd.xlane.f32.xlu1 %v456_v18  ;;  %v402_v18 = vsel %vm181_vm5, 1.0, %v8165_v48  ;;  %vm5913_vm15 = vmand %vm101_vm1, %vm5851_vm14  ;;  %vm8006_vm5 = vcmp.ge.s32.totalorder %v5873_v8, %v5476_v25 }
 0x1d2   :  { %8202 = vst [vmem:[#allocation125_spill] sm:$0xff] %v5856_v51  ;;  %vm8008_vm0 = vcmp.ge.s32.totalorder %v5856_v51, %v5476_v25  ;;  %8209 = vst [vmem:[#allocation128_spill] sm:$0xff] %v5926_v50 }
 0x1d3   :  { %v385_v35 = vsel %vm8008_vm0, 1.0, %v8165_v48  ;;  %vm5933_vm1 = vmand %vm102_vm11, %vm5865_vm6  ;;  %8212 = vst [vmem:[#allocation129_spill] sm:$0xff] %v5944_v54  ;;  %vm182_vm6 = vcmp.ge.s32.totalorder %v5924_v44, %v5476_v25  ;;  %vm131_vm11 = vcmp.ge.s32.totalorder %v5924_v44, %v5492_v0  ;;  %v299_v44 = vsel %vm5913_vm15, 1.0, %v8165_v48 }
 0x1d4   :  { %508 = vadd.xlane.f32.xlu0 %v507_v62  ;;  %v510_v62 = vsel %vm8030_vm3, %v402_v18, 0.0  ;;  %v5920_v18 = vsel %vm279_vm8, 1.0, %v8165_v48  ;;  %vm5952_vm14 = vmxor %vm154_vm9, %vm4983_vm7  ;;  %vm183_vm9 = vcmp.ge.s32.totalorder %v5944_v54, %v5476_v25  ;;  %vm103_vm8 = vcmp.ge.s32.totalorder %v5548_v28, %v5492_v0 }
 0x1d5   :  { %2518 = vmatmul.mubr.bf16.gmra.mrb[80].mxu0 %v5834_v14  ;;  %v1713_v14 = vld [vmem:[#allocation2 + $0x558] sm:$0xff]  ;;  %511 = vadd.xlane.f32.xlu1 %v510_v62  ;;  %v459_v62 = vsel %vm8030_vm3, %v385_v35, 0.0  ;;  %v386_v35 = vsel %vm8006_vm5, 1.0, %v8165_v48  ;;  %vm5966_vm13 = vmxor %vm155_vm12, %vm4983_vm7  ;;  %vm132_vm12 = vcmp.ge.s32.totalorder %v5944_v54, %v5492_v0  ;;  %v404_v38 = vsel %vm183_vm9, 1.0, %v8165_v48 }
 0x1d6   :  { %2525 = vmatprep.mubr.bf16.mxu0 %v5845_v46  ;;  %v1717_v46 = vld [vmem:[#allocation2 + $0x578] sm:$0xff]  ;;  %v462_v37 = vsel %vm8030_vm3, %v386_v35, 0.0  ;;  %vm231_vm4 = vmxor %vm182_vm6, %vm4983_vm7  ;;  %vm8229_vm15 = vcmp.ge.s32.totalorder %v5617_v47, %v5476_v25 }
 0x1d7   :  { %v5946_v33 = vpack.c.bf16 %v1717_v46, %v1713_v14  ;;  %v403_v14 = vsel %vm182_vm6, 1.0, %v8165_v48  ;;  %vm280_vm5 = vmand %vm131_vm11, %vm231_vm4  ;;  %vm104_vm6 = vcmp.ge.s32.totalorder %v5557_v10, %v5492_v0  ;;  %vm8021_vm4 = vcmask 1043456  }
 0x1d8   :  { %460 = vadd.xlane.f32.xlu0 %v459_v62  ;;  %v5957_v62 = vadd.s32 112, %v5474_v59  ;;  %v513_v35 = vsel %vm8030_vm3, %v403_v14, 0.0  ;;  %v5995_v14 = vsel %vm280_vm5, 1.0, %v8165_v48  ;;  %vm232_vm11 = vmxor %vm183_vm9, %vm4983_vm7  ;;  %vm8024_vm9 = vcmp.ge.s32.totalorder %v5974_v21, %v5476_v25 }
 0x1d9   :  { %8213 = vst [vmem:[#allocation130_spill] sm:$0xff] %v5946_v33  ;;  %463 = vadd.xlane.f32.xlu1 %v462_v37  ;;  %v1712_v37 = vld [vmem:[#allocation2 + $0x550] sm:$0xff]  ;;  %vm281_vm2 = vmand %vm132_vm12, %vm232_vm11  ;;  %v6045_v46 = vadd.s32 264, %v5474_v59  ;;  %vm105_vm11 = vcmp.ge.s32.totalorder %v5608_v9, %v5492_v0 }
 0x1da   :  { %8216 = vst [vmem:[#allocation131_spill] sm:$0xff] %v5957_v62  ;;  %vm8028_vm0 = vcmp.ge.s32.totalorder %v5957_v62, %v5476_v25  ;;  %v6009_v3 = vpack.c.bf16 %v1716_v2, %v1712_v37  ;;  %vm6016_vm5 = vmand %vm103_vm8, %vm5952_vm14  ;;  %v388_v37 = vsel %vm8024_vm9, 1.0, %v8165_v48 }
 0x1db   :  { %vm6031_vm12 = vmand %vm104_vm6, %vm5966_vm13  ;;  %8225 = vst [vmem:[#allocation134_spill] sm:$0xff] %v6045_v46  ;;  %v468_v56 = vsel %vm8030_vm3, %v388_v37, 0.0  ;;  %vm134_vm8 = vcmp.ge.s32.totalorder %v6045_v46, %v5492_v0  ;;  %v1733_v37 = vld [vmem:[#allocation2 + $0x5f8] sm:$0xff]  ;;  %v301_v11 = vsel %vm6016_vm5, 1.0, %v8165_v48 }
 0x1dc   :  { %514 = vadd.xlane.f32.xlu0 %v513_v35  ;;  %v516_v35 = vsel %vm8030_vm3, %v404_v38, 0.0  ;;  %8220 = vst [vmem:[#allocation133_spill] sm:$0xff] %v6009_v3  ;;  %vm6068_vm14 = vmxor %vm8229_vm15, %vm4983_vm7 }
 0x1dd   :  { %2526 = vmatmul.mubr.bf16.gmra.mrb[84].mxu0 %v5926_v50  ;;  %v1721_v50 = vld [vmem:[#allocation2 + $0x598] sm:$0xff]  ;;  %517 = vadd.xlane.f32.xlu1 %v516_v35  ;;  %v6023_v35 = vsel %vm281_vm2, 1.0, %v8165_v48  ;;  %vm6059_vm2 = vmxor %vm156_vm10, %vm4983_vm7  ;;  %vm8023_vm10 = vcmp.ge.s32.totalorder %v6045_v46, %v5476_v25 }
 0x1de   :  { %2533 = vmatprep.mubr.bf16.mxu0 %v5946_v33  ;;  %v387_v33 = vsel %vm8028_vm0, 1.0, %v8165_v48  ;;  %v6053_v31 = vpack.c.bf16 %v1725_v13, %v1721_v50  ;;  %vm234_vm15 = vmxor %vm8023_vm10, %vm4983_vm7 }
 0x1df   :  { %v465_v53 = vsel %vm8030_vm3, %v387_v33, 0.0  ;;  %v6042_v33 = vadd.s32 256, %v5474_v59  ;;  %vm283_vm10 = vmand %vm134_vm8, %vm234_vm15  ;;  %vm107_vm15 = vcmp.ge.s32.totalorder %v5668_v45, %v5492_v0 }
 0x1e0   :  { %466 = vadd.xlane.f32.xlu0 %v465_v53  ;;  %v300_v53 = vsel %vm5933_vm1, 1.0, %v8165_v48  ;;  %8226 = vst [vmem:[#allocation135_spill] sm:$0xff] %v6053_v31  ;;  %vm6110_vm9 = vmand %vm105_vm11, %vm6059_vm2  ;;  %vm8239_vm2 = vmmov 0  }
 0x1e1   :  { %469 = vadd.xlane.f32.xlu1 %v468_v56  ;;  %vm8022_vm1 = vcmp.ge.s32.totalorder %v6042_v33, %v5476_v25  ;;  %vm133_vm13 = vcmp.ge.s32.totalorder %v6042_v33, %v5492_v0  ;;  %v348_v50 = vpack.c.bf16 %v300_v53, %v299_v44  ;;  %v1729_v44 = vld [vmem:[#allocation2 + $0x5d8] sm:$0xff]  ;;  %v303_v38 = vsel %vm6110_vm9, 1.0, %v8165_v48 }
 0x1e2   :  { %v1027_v54 = vpop.f32.mrb[0].mxu1  ;;  %vm233_vm6 = vmxor %vm8022_vm1, %vm4983_vm7  ;;  %vm8036_vm9 = vcmp.ge.s32.totalorder %v6207_v5, %v5476_v25 }
 0x1e3   :  { %v1033_v60 = vpack.c.bf16 %v1027_v54, %v1027_v54  ;;  %v4307_v19 = vpop.f32.mrb[1].mxu1  ;;  %v1724_v54 = vld [vmem:[#allocation2 + $0x5b0] sm:$0xff]  ;;  %vm282_vm1 = vmand %vm133_vm13, %vm233_vm6  ;;  %vm136_vm6 = vcmp.ge.s32.totalorder %v6132_v16, %v5492_v0 }
 0x1e4   :  { %v1030_v13 = vpop.f32.mrb[2].mxu1  ;;  %v6106_v53 = vsel %vm282_vm1, 1.0, %v8165_v48  ;;  %vm8244_vm1 = vcmp.ge.s32.totalorder %v5677_v1, %v5476_v25 }
 0x1e5   :  { %v1111_v56 = vsel %vm8021_vm4, %v1033_v60, 0  ;;  %v4308_v19 = vpop.f32.mrb[3].mxu1  ;;  %2534 = vmatmul.mubr.bf16.gmra.mrb[88].mxu0 %v6009_v3  ;;  %vm106_vm4 = vcmp.ge.s32.totalorder %v5617_v47, %v5492_v0  ;;  %v4724_v60 = vld [vmem:[%s7902_s6] sm:$0xff]   ;;  %v6129_v3 = vadd.s32 272, %v5474_v59  ;;  %vm6156_vm5 = vmxor %vm8244_vm1, %vm4983_vm7  ;;  %vm108_vm1 = vcmp.ge.s32.totalorder %v5677_v1, %v5492_v0 }
 0x1e6   :  { %4310 = vmatpush3.bf16.msra.mxu1 %v1111_v56  ;;  %2541 = vmatprep.mubr.bf16.mxu0 %v6053_v31  ;;  %v6115_v56 = vsel %vm283_vm10, 1.0, %v8165_v48  ;;  %v6118_v19 = vpack.c.bf16 %v1724_v54, %v1720_v4  ;;  %vm6122_vm13 = vmand %vm106_vm4, %vm6068_vm14  ;;  %v6142_v4 = vpack.c.bf16 %v1733_v37, %v1729_v44  ;;  %vm8241_vm4 = vcmp.ge.s32.totalorder %v5668_v45, %v5476_v25  ;;  %v1732_v44 = vld [vmem:[#allocation2 + $0x5f0] sm:$0xff]  ;;  %v1737_v37 = vld [vmem:[#allocation2 + $0x618] sm:$0xff] }
 0x1e7   :  { %4411 = vmatprep.subr.bf16.mxu1 %v8165_v48  ;;  %8237 = vst [vmem:[#allocation137_spill] sm:$0xff] %v6129_v3  ;;  %vm6148_vm14 = vmxor %vm8241_vm4, %vm4983_vm7  ;;  %vm8031_vm10 = vcmp.ge.s32.totalorder %v6132_v16, %v5476_v25  ;;  %vm135_vm8 = vcmp.ge.s32.totalorder %v6129_v3, %v5492_v0  ;;  %v6496_v1 = vadd.s32 352, %v5474_v59  ;;  %v6499_v45 = vadd.s32 360, %v5474_v59 }
 0x1e8   :  { %8234 = vst [vmem:[#allocation136_spill] sm:$0xff] %v6118_v19  ;;  %8240 = vst [vmem:[#allocation139_spill] sm:$0xff] %v6142_v4 }
 0x1e9   :  { %4312 = vmatmul.mubr.msk.bf16.vlgmr.msra.gmra.mrb[4].mxu1 %vm8030_vm3, %v348_v50  ;;  %v302_v50 = vsel %vm6031_vm12, 1.0, %v8165_v48  ;;  %vm8029_vm12 = vcmp.ge.s32.totalorder %v6129_v3, %v5476_v25  ;;  %vm236_vm4 = vmxor %vm8031_vm10, %vm4983_vm7  ;;  %vm8249_vm10 = vcmask 64512   ;;  %8299 = vst [vmem:[#allocation146_spill] sm:$0xff] %v6496_v1 }
 0x1ea   :  { %4315 = vmatprep.mubr.msk.bf16.mxu1 %vm8239_vm2, %v8165_v48  ;;  %4412 = vmatpush3.bf16.msra.mxu1 %v4724_v60  ;;  %vm235_vm11 = vmxor %vm8029_vm12, %vm4983_vm7  ;;  %v349_v2 = vpack.c.bf16 %v302_v50, %v301_v11  ;;  %v1728_v60 = vld [vmem:[#allocation2 + $0x5d0] sm:$0xff]  ;;  %8300 = vst [vmem:[#allocation147_spill] sm:$0xff] %v6499_v45 }
 0x1eb   :  { %4413 = vmatprep.subr.bf16.mxu1 %v8165_v48  ;;  %vm284_vm0 = vmand %vm135_vm8, %vm235_vm11 }
 0x1ec   :  { %vm285_vm12 = vmand %vm136_vm6, %vm236_vm4  ;;  %v6184_v11 = vsel %vm284_vm0, 1.0, %v8165_v48  ;;  %vm8255_vm0 = vcmp.ge.s32.totalorder %v5728_v22, %v5476_v25  ;;  %vm138_vm6 = vcmp.ge.s32.totalorder %v6210_v32, %v5492_v0 }
 0x1ed   :  { %2542 = vmatmul.mubr.bf16.gmra.mrb[92].mxu0 %v6118_v19  ;;  %vm6188_vm3 = vmand %vm107_vm15, %vm6148_vm14  ;;  %v6193_v41 = vsel %vm285_vm12, 1.0, %v8165_v48  ;;  %vm109_vm15 = vcmp.ge.s32.totalorder %v5728_v22, %v5492_v0 }
 0x1ee   :  { %2549 = vmatprep.mubr.bf16.mxu0 %v6142_v4  ;;  %v6196_v4 = vpack.c.bf16 %v1732_v44, %v1728_v60  ;;  %vm6200_vm8 = vmand %vm108_vm1, %vm6156_vm5  ;;  %v6220_v60 = vpack.c.bf16 %v1737_v37, %v1737_v37  ;;  %vm8258_vm5 = vcmp.ge.s32.totalorder %v5737_v30, %v5476_v25  ;;  %v1736_v37 = vld [vmem:[#allocation2 + $0x610] sm:$0xff]  ;;  %vm110_vm1 = vcmp.ge.s32.totalorder %v5737_v30, %v5492_v0 }
 0x1ef   :  { %vm6226_vm14 = vmxor %vm8255_vm0, %vm4983_vm7  ;;  %v305_v13 = vsel %vm6188_vm3, 1.0, %v8165_v48  ;;  %vm8042_vm3 = vcmp.ge.s32.totalorder %v6284_v39, %v5476_v25 }
 0x1f0   :  { %8250 = vst [vmem:[#allocation140_spill] sm:$0xff] %v6196_v4  ;;  %8254 = vst [vmem:[#allocation142_spill] sm:$0xff] %v6220_v60 }
 0x1f1   :  { %4316 = vmatmul.mubr.msk.bf16.gmra.mrb[8].mxu1 %vm8249_vm10, %v349_v2  ;;  %v304_v2 = vsel %vm6122_vm13, 1.0, %v8165_v48  ;;  %vm6234_vm12 = vmxor %vm8258_vm5, %vm4983_vm7  ;;  %vm8037_vm13 = vcmp.ge.s32.totalorder %v6210_v32, %v5476_v25  ;;  %vm137_vm10 = vcmp.ge.s32.totalorder %v6207_v5, %v5492_v0 }
 0x1f2   :  { %4319 = vmatprep.mubr.msk.bf16.mxu1 %vm8239_vm2, %v8165_v48  ;;  %vm237_vm11 = vmxor %vm8036_vm9, %vm4983_vm7  ;;  %v350_v31 = vpack.c.bf16 %v304_v2, %v303_v38  ;;  %v4725_v38 = vld [vmem:[%s7902_s6 + $0x8] sm:$0xff]  }
 0x1f3   :  { %vm238_vm4 = vmxor %vm8037_vm13, %vm4983_vm7  ;;  %vm8263_vm13 = vcmask 64512   ;;  %4414 = vmatpush3.bf16.msra.mxu1 %v4725_v38 }
 0x1f4   :  { %vm286_vm0 = vmand %vm137_vm10, %vm237_vm11  ;;  %vm139_vm11 = vcmp.ge.s32.totalorder %v6284_v39, %v5492_v0  ;;  %4415 = vmatprep.subr.bf16.mxu1 %v8165_v48 }
 0x1f5   :  { %2550 = vmatmul.mubr.bf16.gmra.mrb[96].mxu0 %v6196_v4  ;;  %vm287_vm5 = vmand %vm138_vm6, %vm238_vm4  ;;  %v6261_v54 = vsel %vm286_vm0, 1.0, %v8165_v48  ;;  %v8265_v4 = vmov 0 }
 0x1f6   :  { %2557 = vmatprep.mubr.bf16.mxu0 %v6220_v60  ;;  %vm6265_vm9 = vmand %vm109_vm15, %vm6226_vm14  ;;  %v6270_v2 = vsel %vm287_vm5, 1.0, %v8165_v48  ;;  %v6273_v60 = vpack.c.bf16 %v1736_v37, %v1736_v37  ;;  %vm8267_vm14 = vcmp.ge.s32.totalorder %v5788_v40, %v5476_v25  ;;  %vm140_vm15 = vcmp.ge.s32.totalorder %v6287_v36, %v5492_v0 }
 0x1f7   :  { %vm6277_vm10 = vmand %vm110_vm1, %vm6234_vm12  ;;  %vm111_vm1 = vcmp.ge.s32.totalorder %v5788_v40, %v5492_v0  ;;  %vm112_vm5 = vcmp.ge.s32.totalorder %v5797_v20, %v5492_v0  ;;  %v6356_v37 = vadd.s32 320, %v5474_v59  ;;  %v307_v44 = vsel %vm6265_vm9, 1.0, %v8165_v48 }
 0x1f8   :  { %8264 = vst [vmem:[#allocation143_spill] sm:$0xff] %v6273_v60  ;;  %v8266_v4 = vsel %vm6277_vm10, 4294967295, %v8265_v4  ;;  %vm6301_vm12 = vmxor %vm8267_vm14, %vm4983_vm7  ;;  %vm8275_vm10 = vcmask 64512  }
 0x1f9   :  { %4320 = vmatmul.mubr.msk.bf16.gmra.mrb[12].mxu1 %vm8263_vm13, %v350_v31  ;;  %v306_v31 = vsel %vm6200_vm8, 1.0, %v8165_v48  ;;  %vm8270_vm13 = vcmp.ge.s32.totalorder %v5797_v20, %v5476_v25  ;;  %vm8043_vm8 = vcmp.ge.s32.totalorder %v6287_v36, %v5476_v25  ;;  %vm239_vm4 = vmxor %vm8042_vm3, %vm4983_vm7  ;;  %vm8049_vm9 = vcmp.ge.s32.totalorder %v6356_v37, %v5476_v25 }
 0x1fa   :  { %4323 = vmatprep.mubr.msk.bf16.mxu1 %vm8239_vm2, %v8165_v48  ;;  %vm6309_vm6 = vmxor %vm8270_vm13, %vm4983_vm7  ;;  %v351_v19 = vpack.c.bf16 %v306_v31, %v305_v13 }
 0x1fb   :  { %vm240_vm0 = vmxor %vm8043_vm8, %vm4983_vm7 }
 0x1fc   :  { %vm288_vm14 = vmand %vm139_vm11, %vm239_vm4  ;;  %vm8282_vm11 = vcmp.ge.s32.totalorder %v5873_v8, %v5476_v25  ;;  %vm8050_vm4 = vcmp.ge.s32.totalorder %v6359_v61, %v5476_v25 }
 0x1fd   :  { %2558 = vmatmul.mubr.bf16.gmra.mrb[100].mxu0 %v6273_v60  ;;  %vm289_vm13 = vmand %vm140_vm15, %vm240_vm0  ;;  %v6335_v50 = vsel %vm288_vm14, 1.0, %v8165_v48  ;;  %vm142_vm0 = vcmp.ge.s32.totalorder %v6359_v61, %v5492_v0  ;;  %v6471_v60 = vld [vmem:[%s7901_s5] ss:$0 sm:$0xff] }
 0x1fe   :  { %vm6339_vm3 = vmand %vm111_vm1, %vm6301_vm12  ;;  %v6344_v31 = vsel %vm289_vm13, 1.0, %v8165_v48  ;;  %vm8279_vm12 = vcmp.ge.s32.totalorder %v5856_v51, %v5476_v25  ;;  %vm141_vm1 = vcmp.ge.s32.totalorder %v6356_v37, %v5492_v0  ;;  %vm113_vm13 = vcmp.ge.s32.totalorder %v5856_v51, %v5492_v0 }
 0x1ff   :  { %vm6349_vm8 = vmand %vm112_vm5, %vm6309_vm6  ;;  %v6427_v51 = vadd.s32 344, %v5474_v59  ;;  %v309_v42 = vsel %vm6339_vm3, 1.0, %v8165_v48 }
 0x200   :  { %vm6373_vm6 = vmxor %vm8279_vm12, %vm4983_vm7  ;;  %vm114_vm12 = vcmp.ge.s32.totalorder %v5873_v8, %v5492_v0  ;;  %v6424_v8 = vadd.s32 336, %v5474_v59 }
 0x201   :  { %4324 = vmatmul.mubr.msk.bf16.gmra.mrb[16].mxu1 %vm8275_vm10, %v351_v19  ;;  %vm8278_vm10 = vnez %v8266_v4  ;;  %vm6381_vm15 = vmxor %vm8282_vm11, %vm4983_vm7  ;;  %8289 = vst [vmem:[#allocation145_spill] sm:$0xff] %v6427_v51 }
 0x202   :  { %4327 = vmatprep.mubr.msk.bf16.mxu1 %vm8239_vm2, %v8165_v48  ;;  %v308_v19 = vsel %vm8278_vm10, 1.0, %v8165_v48  ;;  %vm241_vm5 = vmxor %vm8049_vm9, %vm4983_vm7  ;;  %vm8285_vm9 = vcmask 64512   ;;  %8288 = vst [vmem:[#allocation144_spill] sm:$0xff] %v6424_v8  ;;  %vm8055_vm3 = vcmp.ge.s32.totalorder %v6424_v8, %v5476_v25 }
 0x203   :  { %v352_v4 = vpack.c.bf16 %v308_v19, %v307_v44  ;;  %vm242_vm14 = vmxor %vm8050_vm4, %vm4983_vm7 }
 0x204   :  { %vm290_vm10 = vmand %vm141_vm1, %vm241_vm5 }
 0x205   :  { %vm291_vm11 = vmand %vm142_vm0, %vm242_vm14  ;;  %v6409_v27 = vsel %vm290_vm10, 1.0, %v8165_v48  ;;  %vm144_vm0 = vcmp.ge.s32.totalorder %v6427_v51, %v5492_v0  ;;  %vm115_vm10 = vcmp.ge.s32.totalorder %v5957_v62, %v5492_v0 }
 0x206   :  { %v6412_v44 = vsel %vm291_vm11, 1.0, %v8165_v48  ;;  %vm6417_vm4 = vmand %vm113_vm13, %vm6373_vm6  ;;  %vm116_vm11 = vcmp.ge.s32.totalorder %v5974_v21, %v5492_v0 }
 0x207   :  { %vm6439_vm6 = vmand %vm114_vm12, %vm6381_vm15  ;;  %vm143_vm15 = vcmp.ge.s32.totalorder %v6424_v8, %v5492_v0 }
 0x208   :  { %vm243_vm5 = vmxor %vm8055_vm3, %vm4983_vm7 }
 0x209   :  { %4328 = vmatmul.mubr.msk.bf16.gmra.mrb[20].mxu1 %vm8285_vm9, %v352_v4  ;;  %v310_v4 = vsel %vm6349_vm8, 1.0, %v8165_v48  ;;  %vm8292_vm9 = vcmp.ge.s32.totalorder %v5957_v62, %v5476_v25  ;;  %vm195_vm8 = vcmp.ge.s32.totalorder %v6427_v51, %v5476_v25  ;;  %vm292_vm13 = vmand %vm143_vm15, %vm243_vm5  ;;  %vm8298_vm15 = vcmask 64512  }
 0x20a   :  { %4331 = vmatprep.mubr.msk.bf16.mxu1 %vm8239_vm2, %v8165_v48  ;;  %vm6447_vm1 = vmxor %vm8292_vm9, %vm4983_vm7  ;;  %v353_v26 = vpack.c.bf16 %v310_v4, %v309_v42  ;;  %v6476_v13 = vsel %vm292_vm13, 1.0, %v8165_v48  ;;  %vm8295_vm9 = vcmp.ge.s32.totalorder %v5974_v21, %v5476_v25  ;;  %vm145_vm5 = vcmp.ge.s32.totalorder %v6496_v1, %v5492_v0 }
 0x20b   :  { %vm244_vm14 = vmxor %vm195_vm8, %vm4983_vm7 }
 0x20c   :  { %vm293_vm12 = vmand %vm144_vm0, %vm244_vm14  ;;  %vm146_vm14 = vcmp.ge.s32.totalorder %v6499_v45, %v5492_v0 }
 0x20d   :  { %vm6484_vm3 = vmxor %vm8295_vm9, %vm4983_vm7  ;;  %v6489_v4 = vsel %vm293_vm12, 1.0, %v8165_v48  ;;  %vm8308_vm9 = vcmp.ge.s32.totalorder %v6045_v46, %v5476_v25 }
 0x20e   :  { %vm6514_vm0 = vmand %vm115_vm10, %vm6447_vm1  ;;  %vm197_vm1 = vcmp.ge.s32.totalorder %v6499_v45, %v5476_v25  ;;  %v8375_v45 = vld [vmem:[#allocation101_spill] sm:$0xff] }
 0x20f   :  { %vm246_vm13 = vmxor %vm197_vm1, %vm4983_vm7 }
 0x210   :  { %v2367_v38 = vpop.f32.mrb[4].mxu0  ;;  %vm295_vm12 = vmand %vm146_vm14, %vm246_vm13 }
 0x211   :  { %v4519_v40 = vadd.f32 %v6471_v60, %v2367_v38  ;;  %4332 = vmatmul.mubr.msk.bf16.gmra.mrb[24].mxu1 %vm8298_vm15, %v353_v26  ;;  %v2369_v30 = vpop.f32.mrb[5].mxu0  ;;  %v311_v38 = vsel %vm6417_vm4, 1.0, %v8165_v48  ;;  %vm6524_vm4 = vmand %vm116_vm11, %vm6484_vm3  ;;  %v6550_v62 = vsel %vm295_vm12, 1.0, %v8165_v48 }
 0x212   :  { %v2370_v47 = vpop.f32.mrb[6].mxu0  ;;  %4335 = vmatprep.mubr.msk.bf16.mxu1 %vm8239_vm2, %v8165_v48  ;;  %v312_v30 = vsel %vm6439_vm6, 1.0, %v8165_v48  ;;  %vm196_vm6 = vcmp.ge.s32.totalorder %v6496_v1, %v5476_v25  ;;  %vm8305_vm11 = vmmov %vm8298_vm15  ;;  %v600_v1 = vcvt.s32.f32 %v8375_v45 }
 0x213   :  { %v4520_v22 = vadd.f32 %v6471_v60, %v2370_v47  ;;  %v2372_v9 = vpop.f32.mrb[7].mxu0  ;;  %vm245_vm3 = vmxor %vm196_vm6, %vm4983_vm7  ;;  %v354_v20 = vpack.c.bf16 %v312_v30, %v311_v38  ;;  %v6557_v30 = vadd.s32 368, %v5474_v59 }
 0x214   :  { %v2565_v9 = vmax.f32 %v4519_v40, 0.0  ;;  %vm294_vm10 = vmand %vm145_vm5, %vm245_vm3 }
 0x215   :  { %v2566_v47 = vmax.f32 %v4520_v22, 0.0  ;;  %v6547_v42 = vsel %vm294_vm10, 1.0, %v8165_v48  ;;  %8306 = vst [vmem:[#allocation148_spill] sm:$0xff] %v6557_v30  ;;  %vm8309_vm15 = vmmov %vm8305_vm11  ;;  %vm198_vm5 = vcmp.ge.s32.totalorder %v6557_v30, %v5476_v25 }
 0x216   :  { %vm247_vm13 = vmxor %vm198_vm5, %vm4983_vm7 }
 0x217   :  { %v6544_v19 = vpack.c.bf16 %v2566_v47, %v2565_v9  ;;  %v6560_v9 = vadd.s32 376, %v5474_v59  ;;  %vm8311_vm10 = vmmov %vm8305_vm11 }
 0x218   :  { %v2375_v21 = vpop.f32.mrb[8].mxu0 }
 0x219   :  { %v4521_v40 = vadd.f32 %v6471_v60, %v2375_v21  ;;  %4336 = vmatmul.mubr.msk.bf16.gmra.mrb[28].mxu1 %vm8305_vm11, %v354_v20  ;;  %v2377_v22 = vpop.f32.mrb[9].mxu0  ;;  %8307 = vst [vmem:[#allocation149_spill] sm:$0xff] %v6560_v9  ;;  %v313_v21 = vsel %vm6514_vm0, 1.0, %v8165_v48  ;;  %v314_v20 = vsel %vm6524_vm4, 1.0, %v8165_v48  ;;  %vm8310_vm0 = vcmp.ge.s32.totalorder %v6042_v33, %v5476_v25 }
 0x21a   :  { %v2378_v47 = vpop.f32.mrb[10].mxu0  ;;  %4339 = vmatprep.mubr.msk.bf16.mxu1 %vm8239_vm2, %v8165_v48  ;;  %v406_v22 = vsel %vm8308_vm9, 1.0, %v8165_v48  ;;  %v405_v26 = vsel %vm8310_vm0, 1.0, %v8165_v48  ;;  %vm147_vm4 = vcmp.ge.s32.totalorder %v6557_v30, %v5492_v0  ;;  %vm148_vm14 = vcmp.ge.s32.totalorder %v6560_v9, %v5492_v0 }
 0x21b   :  { %v4522_v38 = vadd.f32 %v6471_v60, %v2378_v47  ;;  %v2380_v10 = vpop.f32.mrb[11].mxu0  ;;  %v522_v28 = vsel %vm8309_vm15, %v406_v22, 0.0  ;;  %vm199_vm3 = vcmp.ge.s32.totalorder %v6560_v9, %v5476_v25  ;;  %v355_v34 = vpack.c.bf16 %v314_v20, %v313_v21  ;;  %vm296_vm9 = vmand %vm147_vm4, %vm247_vm13 }
 0x21c   :  { %523 = vadd.xlane.f32.xlu1 %v522_v28  ;;  %v2567_v28 = vmax.f32 %v4521_v40, 0.0  ;;  %v519_v47 = vsel %vm8311_vm10, %v405_v26, 0.0  ;;  %vm248_vm12 = vmxor %vm199_vm3, %vm4983_vm7  ;;  %vm8312_vm11 = vcmp.ge.s32.totalorder %v6132_v16, %v5476_v25  ;;  %vm8317_vm13 = vcmp.ge.s32.totalorder %v6210_v32, %v5476_v25 }
 0x21d   :  { %v2568_v10 = vmax.f32 %v4522_v38, 0.0  ;;  %520 = vadd.xlane.f32.xlu0 %v519_v47  ;;  %v408_v22 = vsel %vm8312_vm11, 1.0, %v8165_v48  ;;  %vm8313_vm15 = vmmov %vm8311_vm10  ;;  %v6605_v38 = vsel %vm296_vm9, 1.0, %v8165_v48  ;;  %vm8314_vm10 = vcmp.ge.s32.totalorder %v6129_v3, %v5476_v25 }
 0x21e   :  { %v528_v40 = vsel %vm8313_vm15, %v408_v22, 0.0  ;;  %vm297_vm0 = vmand %vm148_vm14, %vm248_vm12  ;;  %v407_v26 = vsel %vm8314_vm10, 1.0, %v8165_v48  ;;  %vm8319_vm11 = vcmp.ge.s32.totalorder %v6207_v5, %v5476_v25  ;;  %vm8323_vm10 = vcmp.ge.s32.totalorder %v6284_v39, %v5476_v25 }
 0x21f   :  { %v6601_v46 = vpack.c.bf16 %v2568_v10, %v2567_v28  ;;  %v6608_v20 = vsel %vm297_vm0, 1.0, %v8165_v48  ;;  %vm8315_vm4 = vmmov %vm8313_vm15  ;;  %vm8321_vm15 = vcmp.ge.s32.totalorder %v6287_v36, %v5476_v25 }
 0x220   :  { %v2383_v21 = vpop.f32.mrb[12].mxu0  ;;  %529 = vadd.xlane.f32.xlu1 %v528_v40  ;;  %vm8316_vm14 = vmmov %vm8315_vm4  ;;  %v410_v40 = vsel %vm8317_vm13, 1.0, %v8165_v48  ;;  %v412_v32 = vsel %vm8321_vm15, 1.0, %v8165_v48  ;;  %vm8327_vm13 = vcmp.ge.s32.totalorder %v6359_v61, %v5476_v25 }
 0x221   :  { %v4523_v47 = vadd.f32 %v6471_v60, %v2383_v21  ;;  %4340 = vmatmul.mubr.msk.bf16.gmra.mrb[32].mxu1 %vm8315_vm4, %v355_v34  ;;  %v2385_v28 = vpop.f32.mrb[13].mxu0  ;;  %v525_v22 = vsel %vm8316_vm14, %v407_v26, 0.0  ;;  %vm8318_vm12 = vmmov %vm8315_vm4  ;;  %v409_v26 = vsel %vm8319_vm11, 1.0, %v8165_v48  ;;  %vm8329_vm11 = vcmp.ge.s32.totalorder %v6356_v37, %v5476_v25 }
 0x222   :  { %v2386_v16 = vpop.f32.mrb[14].mxu0  ;;  %4343 = vmatprep.mubr.msk.bf16.mxu1 %vm8239_vm2, %v8165_v48  ;;  %526 = vadd.xlane.f32.xlu0 %v525_v22  ;;  %v534_v34 = vsel %vm8318_vm12, %v410_v40, 0.0  ;;  %vm8320_vm9 = vmmov %vm8315_vm4 }
 0x223   :  { %v4524_v21 = vadd.f32 %v6471_v60, %v2386_v16  ;;  %v2388_v3 = vpop.f32.mrb[15].mxu0  ;;  %v2569_v28 = vmax.f32 %v4523_v47, 0.0  ;;  %v531_v22 = vsel %vm8320_vm9, %v409_v26, 0.0  ;;  %vm8322_vm0 = vmmov %vm8315_vm4  ;;  %v411_v47 = vsel %vm8323_vm10, 1.0, %v8165_v48 }
 0x224   :  { %535 = vadd.xlane.f32.xlu1 %v534_v34  ;;  %v540_v3 = vsel %vm8322_vm0, %v412_v32, 0.0  ;;  %v8324_v26 = vpack.c.bf16 %v5528_v17, %v5514_v58  ;;  %vm8325_vm4 = vmmov %vm8322_vm0  ;;  %v413_v58 = vsel %vm8329_vm11, 1.0, %v8165_v48 }
 0x225   :  { %v2570_v10 = vmax.f32 %v4524_v21, 0.0  ;;  %v4726_v21 = vld [vmem:[%s7902_s6 + $0x10] sm:$0xff]   ;;  %vm8326_vm14 = vmmov %vm8322_vm0 }
 0x226   :  { %532 = vadd.xlane.f32.xlu0 %v531_v22  ;;  %v537_v32 = vsel %vm8326_vm14, %v411_v47, 0.0  ;;  %v414_v22 = vsel %vm8327_vm13, 1.0, %v8165_v48  ;;  %4416 = vmatpush3.bf16.msra.mxu1 %v4726_v21  ;;  %vm8328_vm12 = vmmov %vm8322_vm0  ;;  %v4727_v47 = vld [vmem:[%s7902_s6 + $0x18] sm:$0xff]   ;;  %v416_v21 = vsel %vm195_vm8, 1.0, %v8165_v48 }
 0x227   :  { %v6636_v16 = vpack.c.bf16 %v2570_v10, %v2569_v28  ;;  %v546_v17 = vsel %vm8328_vm12, %v414_v22, 0.0  ;;  %4417 = vmatprep.subr.bf16.mxu1 %v8165_v48  ;;  %vm8330_vm9 = vmmov %vm8322_vm0 }
 0x228   :  { %v2391_v40 = vpop.f32.mrb[16].mxu0  ;;  %541 = vadd.xlane.f32.xlu1 %v540_v3  ;;  %vm8331_vm15 = vmmov %vm8322_vm0  ;;  %vm8332_vm0 = vcmp.ge.s32.totalorder %v6424_v8, %v5476_v25 }
 0x229   :  { %v4525_v34 = vadd.f32 %v6471_v60, %v2391_v40  ;;  %4344 = vmatmul.mubr.msk.bf16.gmra.mrb[36].mxu1 %vm8325_vm4, %v8324_v26  ;;  %v2393_v10 = vpop.f32.mrb[17].mxu0  ;;  %v552_v22 = vsel %vm8331_vm15, %v416_v21, 0.0  ;;  %vm8334_vm10 = vmmov %vm8325_vm4 }
 0x22a   :  { %v2394_v28 = vpop.f32.mrb[18].mxu0  ;;  %4347 = vmatprep.mubr.msk.bf16.mxu1 %vm8239_vm2, %v8165_v48  ;;  %538 = vadd.xlane.f32.xlu0 %v537_v32  ;;  %v543_v32 = vsel %vm8330_vm9, %v413_v58, 0.0  ;;  %vm8335_vm8 = vmmov %vm8325_vm4 }
 0x22b   :  { %v4526_v3 = vadd.f32 %v6471_v60, %v2394_v28  ;;  %v2396_v40 = vpop.f32.mrb[19].mxu0  ;;  %v2571_v26 = vmax.f32 %v4525_v34, 0.0  ;;  %4418 = vmatpush3.bf16.msra.mxu1 %v4727_v47  ;;  %v415_v34 = vsel %vm8332_vm0, 1.0, %v8165_v48  ;;  %vm8336_vm14 = vmmov %vm8325_vm4 }
 0x22c   :  { %547 = vadd.xlane.f32.xlu1 %v546_v17  ;;  %v8333_v17 = vpack.c.bf16 %v5588_v52, %v5574_v49  ;;  %v417_v49 = vsel %vm196_vm6, 1.0, %v8165_v48 }
 0x22d   :  { %v2572_v10 = vmax.f32 %v4526_v3, 0.0 }
 0x22e   :  { %544 = vadd.xlane.f32.xlu0 %v543_v32 }
 0x22f   :  { %v6673_v28 = vpack.c.bf16 %v2572_v10, %v2571_v26  ;;  %v549_v26 = vsel %vm8335_vm8, %v415_v34, 0.0  ;;  %v418_v10 = vsel %vm197_vm1, 1.0, %v8165_v48  ;;  %v555_v34 = vsel %vm8336_vm14, %v417_v49, 0.0  ;;  %vm8338_vm1 = vmmov %vm8325_vm4 }
 0x230   :  { %v2399_v40 = vpop.f32.mrb[20].mxu0  ;;  %553 = vadd.xlane.f32.xlu1 %v552_v22  ;;  %v558_v52 = vsel %vm8325_vm4, %v418_v10, 0.0  ;;  %vm8340_vm6 = vmmov %vm8338_vm1 }
 0x231   :  { %v4527_v3 = vadd.f32 %v6471_v60, %v2399_v40  ;;  %4348 = vmatmul.mubr.msk.bf16.gmra.mrb[40].mxu1 %vm8334_vm10, %v8333_v17  ;;  %v2401_v58 = vpop.f32.mrb[21].mxu0  ;;  %v420_v17 = vsel %vm199_vm3, 1.0, %v8165_v48  ;;  %vm8341_vm3 = vmmov %vm8338_vm1 }
 0x232   :  { %v2402_v47 = vpop.f32.mrb[22].mxu0  ;;  %4351 = vmatprep.mubr.msk.bf16.mxu1 %vm8239_vm2, %v8165_v48  ;;  %550 = vadd.xlane.f32.xlu0 %v549_v26  ;;  %v6706_v26 = vadd.s32 384, %v5474_v59  ;;  %v564_v10 = vsel %vm8338_vm1, %v420_v17, 0.0  ;;  %vm8342_vm12 = vmmov %vm8338_vm1 }
 0x233   :  { %v4528_v32 = vadd.f32 %v6471_v60, %v2402_v47  ;;  %v2404_v21 = vpop.f32.mrb[23].mxu0  ;;  %v2573_v22 = vmax.f32 %v4527_v3, 0.0  ;;  %v419_v3 = vsel %vm198_vm5, 1.0, %v8165_v48  ;;  %vm3231_vm5 = vcmask 393216   ;;  %vm8344_vm11 = vmmov %vm8338_vm1 }
 0x234   :  { %559 = vadd.xlane.f32.xlu1 %v558_v52  ;;  %8337 = vst [vmem:[#allocation150_spill] sm:$0xff] %v6706_v26  ;;  %v8339_v52 = vpack.c.bf16 %v5648_v15, %v5634_v63  ;;  %vm200_vm13 = vcmp.ge.s32.totalorder %v6706_v26, %v5476_v25  ;;  %vm8346_vm9 = vmmov %vm8338_vm1 }
 0x235   :  { %v2574_v40 = vmax.f32 %v4528_v32, 0.0  ;;  %v3027_v32 = vld [vmem:[%s7904_s8] sm:$0x1]  ;;  %v421_v63 = vsel %vm200_vm13, 1.0, %v8165_v48  ;;  %vm8348_vm15 = vmmov %vm8338_vm1 }
 0x236   :  { %556 = vadd.xlane.f32.xlu0 %v555_v34  ;;  %v3230_v34 = vand.u32 2147483647, %v3027_v32  ;;  %vm8350_vm0 = vmmov %vm8338_vm1 }
 0x237   :  { %v6703_v58 = vpack.c.bf16 %v2574_v40, %v2573_v22  ;;  %v561_v22 = vsel %vm8341_vm3, %v419_v3, 0.0  ;;  %v567_v3 = vsel %vm8342_vm12, %v421_v63, 0.0  ;;  %vm8352_vm10 = vmmov %vm8350_vm0  ;;  %vm149_vm12 = vcmp.ge.s32.totalorder %v6706_v26, %v5492_v0 }
 0x238   :  { %v2407_v47 = vpop.f32.mrb[24].mxu0  ;;  %565 = vadd.xlane.f32.xlu1 %v564_v10  ;;  %v3232_v15 = vsel %vm3231_vm5, %v3230_v34, 0.0  ;;  %vm8354_vm8 = vmmov %vm8350_vm0 }
 0x239   :  { %v4529_v21 = vadd.f32 %v6471_v60, %v2407_v47  ;;  %4352 = vmatmul.mubr.msk.bf16.gmra.mrb[44].mxu1 %vm8340_vm6, %v8339_v52  ;;  %v2409_v49 = vpop.f32.mrb[25].mxu0  ;;  %vm8356_vm4 = vmmov %vm8350_vm0 }
 0x23a   :  { %v2410_v40 = vpop.f32.mrb[26].mxu0  ;;  %4355 = vmatprep.mubr.msk.bf16.mxu1 %vm8239_vm2, %v8165_v48  ;;  %562 = vadd.xlane.f32.xlu0 %v561_v22  ;;  %v8343_v49 = vpack.c.bf16 %v5708_v43, %v5694_v57  ;;  %v8345_v43 = vpack.c.bf16 %v5768_v23, %v5754_v24  ;;  %v8347_v23 = vpack.c.bf16 %v5828_v6, %v5814_v7  ;;  %vm8358_vm14 = vmmov %vm8350_vm0 }
 0x23b   :  { %v4530_v17 = vadd.f32 %v6471_v60, %v2410_v40  ;;  %v2412_v9 = vpop.f32.mrb[27].mxu0  ;;  %v2575_v47 = vmax.f32 %v4529_v21, 0.0  ;;  %v8349_v6 = vpack.c.bf16 %v5920_v18, %v5894_v55  ;;  %v8351_v55 = vpack.c.bf16 %v6023_v35, %v5995_v14  ;;  %vm8360_vm1 = vmmov %vm8350_vm0 }
 0x23c   :  { %3233 = vadd.xlane.f32.xlu1 %v3232_v15  ;;  %v8353_v14 = vpack.c.bf16 %v6115_v56, %v6106_v53  ;;  %v8355_v53 = vpack.c.bf16 %v6193_v41, %v6184_v11  ;;  %v8357_v41 = vpack.c.bf16 %v6270_v2, %v6261_v54  ;;  %v8359_v54 = vpack.c.bf16 %v6344_v31, %v6335_v50  ;;  %vm8362_vm6 = vmmov %vm8350_vm0 }
 0x23d   :  { %v2576_v10 = vmax.f32 %v4530_v17, 0.0  ;;  %v8361_v50 = vpack.c.bf16 %v6412_v44, %v6409_v27  ;;  %vm8364_vm3 = vmmov %vm8350_vm0 }
 0x23e   :  { %568 = vadd.xlane.f32.xlu0 %v567_v3  ;;  %vm8366_vm5 = vmmov %vm8350_vm0 }
 0x23f   :  { %v6732_v32 = vpack.c.bf16 %v2576_v10, %v2575_v47 }
 0x240   :  { %v2415_v52 = vpop.f32.mrb[28].mxu0 }
 0x241   :  { %v4531_v9 = vadd.f32 %v6471_v60, %v2415_v52  ;;  %4356 = vmatmul.mubr.msk.bf16.gmra.mrb[48].mxu1 %vm8344_vm11, %v8343_v49  ;;  %v2417_v22 = vpop.f32.mrb[29].mxu0  ;;  %vm249_vm11 = vmxor %vm200_vm13, %vm4983_vm7  ;;  %vm8370_vm13 = vcmask 523264  }
 0x242   :  { %v2418_v40 = vpop.f32.mrb[30].mxu0  ;;  %4359 = vmatprep.mubr.msk.bf16.mxu1 %vm8239_vm2, %v8165_v48  ;;  %vm8369_vm7 = vmmov %vm8350_vm0 }
 0x243   :  { %v4532_v21 = vadd.f32 %v6471_v60, %v2418_v40  ;;  %v2420_v34 = vpop.f32.mrb[31].mxu0  ;;  %v2577_v17 = vmax.f32 %v4531_v9, 0.0 }
 0x245   :  { %v2578_v15 = vmax.f32 %v4532_v21, 0.0 }
 0x247   :  { %v6742_v63 = vpack.c.bf16 %v2578_v15, %v2577_v17 }
 0x248   :  { %v2423_v47 = vpop.f32.mrb[32].mxu0 }
 0x249   :  { %v4533_v10 = vadd.f32 %v6471_v60, %v2423_v47  ;;  %4360 = vmatmul.mubr.msk.bf16.gmra.mrb[52].mxu1 %vm8346_vm9, %v8345_v43  ;;  %v2425_v57 = vpop.f32.mrb[33].mxu0  ;;  %vm298_vm9 = vmand %vm149_vm12, %vm249_vm11 }
 0x24a   :  { %v2426_v3 = vpop.f32.mrb[34].mxu0  ;;  %4363 = vmatprep.mubr.msk.bf16.mxu1 %vm8239_vm2, %v8165_v48  ;;  %v347_v25 = vsel %vm298_vm9, 1.0, %v8165_v48 }
 0x24b   :  { %v4534_v52 = vadd.f32 %v6471_v60, %v2426_v3  ;;  %v2428_v49 = vpop.f32.mrb[35].mxu0  ;;  %v2579_v9 = vmax.f32 %v4533_v10, 0.0 }
 0x24d   :  { %v2580_v22 = vmax.f32 %v4534_v52, 0.0 }
 0x24f   :  { %v6752_v40 = vpack.c.bf16 %v2580_v22, %v2579_v9 }
 0x250   :  { %v2431_v21 = vpop.f32.mrb[36].mxu0 }
 0x251   :  { %v4535_v34 = vadd.f32 %v6471_v60, %v2431_v21  ;;  %4364 = vmatmul.mubr.msk.bf16.gmra.mrb[56].mxu1 %vm8348_vm15, %v8347_v23  ;;  %v2433_v24 = vpop.f32.mrb[37].mxu0  ;;  %vm8368_vm15 = vmmov %vm8350_vm0 }
 0x252   :  { %v2434_v17 = vpop.f32.mrb[38].mxu0  ;;  %4367 = vmatprep.mubr.msk.bf16.mxu1 %vm8239_vm2, %v8165_v48 }
 0x253   :  { %v4536_v15 = vadd.f32 %v6471_v60, %v2434_v17  ;;  %v2436_v47 = vpop.f32.mrb[39].mxu0  ;;  %v2581_v10 = vmax.f32 %v4535_v34, 0.0 }
 0x255   :  { %v2582_v43 = vmax.f32 %v4536_v15, 0.0 }
 0x257   :  { %v6762_v57 = vpack.c.bf16 %v2582_v43, %v2581_v10 }
 0x258   :  { %v2439_v3 = vpop.f32.mrb[40].mxu0 }
 0x259   :  { %v4537_v52 = vadd.f32 %v6471_v60, %v2439_v3  ;;  %4368 = vmatmul.mubr.msk.bf16.gmra.mrb[60].mxu1 %vm8350_vm0, %v8349_v6  ;;  %v2441_v7 = vpop.f32.mrb[41].mxu0 }
 0x25a   :  { %v2442_v49 = vpop.f32.mrb[42].mxu0  ;;  %4371 = vmatprep.mubr.msk.bf16.mxu1 %vm8239_vm2, %v8165_v48 }
 0x25b   :  { %v4538_v9 = vadd.f32 %v6471_v60, %v2442_v49  ;;  %v2444_v22 = vpop.f32.mrb[43].mxu0  ;;  %v2583_v21 = vmax.f32 %v4537_v52, 0.0 }
 0x25d   :  { %v2584_v34 = vmax.f32 %v4538_v9, 0.0 }
 0x25f   :  { %v6772_v23 = vpack.c.bf16 %v2584_v34, %v2583_v21 }
 0x260   :  { %v2447_v24 = vpop.f32.mrb[44].mxu0 }
 0x261   :  { %v4539_v17 = vadd.f32 %v6471_v60, %v2447_v24  ;;  %4372 = vmatmul.mubr.msk.bf16.gmra.mrb[64].mxu1 %vm8352_vm10, %v8351_v55  ;;  %v2449_v18 = vpop.f32.mrb[45].mxu0  ;;  %vm8373_vm10 = vmmov %vm8370_vm13 }
 0x262   :  { %v2450_v15 = vpop.f32.mrb[46].mxu0  ;;  %4375 = vmatprep.mubr.msk.bf16.mxu1 %vm8239_vm2, %v8165_v48 }
 0x263   :  { %v4540_v47 = vadd.f32 %v6471_v60, %v2450_v15  ;;  %v2452_v10 = vpop.f32.mrb[47].mxu0  ;;  %v2585_v43 = vmax.f32 %v4539_v17, 0.0 }
 0x265   :  { %v2586_v3 = vmax.f32 %v4540_v47, 0.0 }
 0x267   :  { %v6782_v52 = vpack.c.bf16 %v2586_v3, %v2585_v43 }
 0x268   :  { %v2455_v6 = vpop.f32.mrb[48].mxu0 }
 0x269   :  { %v4541_v7 = vadd.f32 %v6471_v60, %v2455_v6  ;;  %4376 = vmatmul.mubr.msk.bf16.gmra.mrb[68].mxu1 %vm8354_vm8, %v8353_v14  ;;  %v2457_v35 = vpop.f32.mrb[49].mxu0 }
 0x26a   :  { %v2458_v49 = vpop.f32.mrb[50].mxu0  ;;  %4379 = vmatprep.mubr.msk.bf16.mxu1 %vm8239_vm2, %v8165_v48 }
 0x26b   :  { %v4542_v9 = vadd.f32 %v6471_v60, %v2458_v49  ;;  %v2460_v22 = vpop.f32.mrb[51].mxu0  ;;  %v2587_v21 = vmax.f32 %v4541_v7, 0.0 }
 0x26d   :  { %v2588_v34 = vmax.f32 %v4542_v9, 0.0 }
 0x26f   :  { %v6792_v24 = vpack.c.bf16 %v2588_v34, %v2587_v21 }
 0x270   :  { %v2463_v17 = vpop.f32.mrb[52].mxu0 }
 0x271   :  { %v4543_v55 = vadd.f32 %v6471_v60, %v2463_v17  ;;  %4380 = vmatmul.mubr.msk.bf16.gmra.mrb[72].mxu1 %vm8356_vm4, %v8355_v53  ;;  %v2465_v56 = vpop.f32.mrb[53].mxu0  ;;  %vm1394_vm4 = vcmask 400384  }
 0x272   :  { %v2466_v18 = vpop.f32.mrb[54].mxu0  ;;  %4383 = vmatprep.mubr.msk.bf16.mxu1 %vm8239_vm2, %v8165_v48 }
 0x273   :  { %v4544_v15 = vadd.f32 %v6471_v60, %v2466_v18  ;;  %v2468_v47 = vpop.f32.mrb[55].mxu0  ;;  %v2589_v10 = vmax.f32 %v4543_v55, 0.0 }
 0x275   :  { %v2590_v43 = vmax.f32 %v4544_v15, 0.0 }
 0x277   :  { %v6802_v3 = vpack.c.bf16 %v2590_v43, %v2589_v10 }
 0x278   :  { %v2471_v6 = vpop.f32.mrb[56].mxu0 }
 0x279   :  { %v4545_v7 = vadd.f32 %v6471_v60, %v2471_v6  ;;  %4384 = vmatmul.mubr.msk.bf16.gmra.mrb[76].mxu1 %vm8358_vm14, %v8357_v41  ;;  %v2473_v11 = vpop.f32.mrb[57].mxu0 }
 0x27a   :  { %v2474_v14 = vpop.f32.mrb[58].mxu0  ;;  %4387 = vmatprep.mubr.msk.bf16.mxu1 %vm8239_vm2, %v8165_v48 }
 0x27b   :  { %v4546_v35 = vadd.f32 %v6471_v60, %v2474_v14  ;;  %v2476_v49 = vpop.f32.mrb[59].mxu0  ;;  %v2591_v9 = vmax.f32 %v4545_v7, 0.0  ;;  %v6831_v7 = vpop.xlane.xlu0 %472 }
 0x27c   :  { %v6834_v14 = vpop.xlane.xlu1 %424 }
 0x27d   :  { %v2592_v22 = vmax.f32 %v4546_v35, 0.0 }
 0x27f   :  { %v6812_v21 = vpack.c.bf16 %v2592_v22, %v2591_v9  ;;  %v6838_v27 = vpop.xlane.xlu0 %475 }
 0x280   :  { %v2479_v34 = vpop.f32.mrb[60].mxu0 }
 0x281   :  { %v4547_v17 = vadd.f32 %v6471_v60, %v2479_v34  ;;  %4388 = vmatmul.mubr.msk.bf16.gmra.mrb[80].mxu1 %vm8360_vm1, %v8359_v54  ;;  %v2481_v2 = vpop.f32.mrb[61].mxu0  ;;  %v8363_v34 = vpack.c.bf16 %v6489_v4, %v6476_v13  ;;  %v8365_v4 = vpack.c.bf16 %v6550_v62, %v6547_v42  ;;  %vm8378_vm1 = vmmov %vm8373_vm10 }
 0x282   :  { %v2482_v55 = vpop.f32.mrb[62].mxu0  ;;  %4391 = vmatprep.mubr.msk.bf16.mxu1 %vm8239_vm2, %v8165_v48  ;;  %v428_v2 = vpop.xlane.xlu1 %427  ;;  %vm8381_vm12 = vmmov %vm8378_vm1 }
 0x283   :  { %v4548_v53 = vadd.f32 %v6471_v60, %v2482_v55  ;;  %v2484_v56 = vpop.f32.mrb[63].mxu0  ;;  %v2593_v18 = vmax.f32 %v4547_v17, 0.0  ;;  %vm8384_vm9 = vmmov %vm8378_vm1 }
 0x285   :  { %v2594_v15 = vmax.f32 %v4548_v53, 0.0 }
 0x287   :  { %v6822_v47 = vpack.c.bf16 %v2594_v15, %v2593_v18  ;;  %v6848_v15 = vpop.xlane.xlu0 %478 }
 0x288   :  { %v2487_v10 = vpop.f32.mrb[64].mxu0 }
 0x289   :  { %v4549_v43 = vadd.f32 %v6471_v60, %v2487_v10  ;;  %4392 = vmatmul.mubr.msk.bf16.gmra.mrb[84].mxu1 %vm8362_vm6, %v8361_v50  ;;  %v2489_v31 = vpop.f32.mrb[65].mxu0  ;;  %v6852_v50 = vpop.xlane.xlu1 %481 }
 0x28a   :  { %v2490_v6 = vpop.f32.mrb[66].mxu0  ;;  %4395 = vmatprep.mubr.msk.bf16.mxu1 %vm8239_vm2, %v8165_v48 }
 0x28b   :  { %v4550_v41 = vadd.f32 %v6471_v60, %v2490_v6  ;;  %v2492_v11 = vpop.f32.mrb[67].mxu0  ;;  %v2595_v35 = vmax.f32 %v4549_v43, 0.0 }
 0x28d   :  { %v2596_v49 = vmax.f32 %v4550_v41, 0.0 }
 0x28f   :  { %v6836_v9 = vpack.c.bf16 %v2596_v49, %v2595_v35  ;;  %v431_v35 = vpop.xlane.xlu0 %430  ;;  %v434_v49 = vpop.xlane.xlu1 %433 }
 0x290   :  { %v2495_v22 = vpop.f32.mrb[68].mxu0  ;;  %v648_v26 = vmul.f32 49.0, %v431_v35 }
 0x291   :  { %v4551_v44 = vadd.f32 %v6471_v60, %v2495_v22  ;;  %4396 = vmatmul.mubr.msk.bf16.gmra.mrb[88].mxu1 %vm8364_vm3, %v8363_v34  ;;  %v2497_v17 = vpop.f32.mrb[69].mxu0 }
 0x292   :  { %v2498_v54 = vpop.f32.mrb[70].mxu0  ;;  %4399 = vmatprep.mubr.msk.bf16.mxu1 %vm8239_vm2, %v8165_v48  ;;  %v8367_v17 = vpack.c.bf16 %v6608_v20, %v6605_v38 }
 0x293   :  { %v4552_v55 = vadd.f32 %v6471_v60, %v2498_v54  ;;  %v2500_v53 = vpop.f32.mrb[71].mxu0  ;;  %v2597_v56 = vmax.f32 %v4551_v44, 0.0 }
 0x295   :  { %v2598_v18 = vmax.f32 %v4552_v55, 0.0  ;;  %v6878_v55 = vpop.xlane.xlu0 %484 }
 0x297   :  { %v6850_v10 = vpack.c.bf16 %v2598_v18, %v2597_v56  ;;  %v6881_v18 = vpop.xlane.xlu1 %487 }
 0x298   :  { %v2503_v43 = vpop.f32.mrb[72].mxu0 }
 0x299   :  { %v4553_v13 = vadd.f32 %v6471_v60, %v2503_v43  ;;  %4400 = vmatmul.mubr.msk.bf16.gmra.mrb[92].mxu1 %vm8366_vm5, %v8365_v4  ;;  %v2505_v31 = vpop.f32.mrb[73].mxu0  ;;  %v372_v4 = vpack.c.bf16 %v347_v25, %v347_v25  ;;  %v596_v25 = vcvt.s32.f32 %v5474_v59 }
 0x29a   :  { %v2506_v6 = vpop.f32.mrb[74].mxu0  ;;  %4403 = vmatprep.mubr.msk.bf16.mxu1 %vm8239_vm2, %v8165_v48  ;;  %v437_v31 = vpop.xlane.xlu0 %436 }
 0x29b   :  { %v4554_v41 = vadd.f32 %v6471_v60, %v2506_v6  ;;  %v2508_v11 = vpop.f32.mrb[75].mxu0  ;;  %v2599_v62 = vmax.f32 %v4553_v13, 0.0  ;;  %v650_v51 = vmul.f32 49.0, %v437_v31 }
 0x29d   :  { %v2600_v42 = vmax.f32 %v4554_v41, 0.0 }
 0x29f   :  { %v6868_v22 = vpack.c.bf16 %v2600_v42, %v2599_v62  ;;  %v6889_v62 = vpop.xlane.xlu1 %439 }
 0x2a0   :  { %v2511_v44 = vpop.f32.mrb[76].mxu0 }
 0x2a1   :  { %v4555_v34 = vadd.f32 %v6471_v60, %v2511_v44  ;;  %4404 = vmatmul.mubr.msk.bf16.gmra.mrb[96].mxu1 %vm8368_vm15, %v8367_v17  ;;  %v2513_v0 = vpop.f32.mrb[77].mxu0 }
 0x2a2   :  { %v2514_v54 = vpop.f32.mrb[78].mxu0  ;;  %4407 = vmatprep.mubr.msk.bf16.mxu1 %vm8239_vm2, %v8165_v48  ;;  %v6892_v0 = vpop.xlane.xlu0 %490 }
 0x2a3   :  { %v4556_v53 = vadd.f32 %v6471_v60, %v2514_v54  ;;  %v2516_v56 = vpop.f32.mrb[79].mxu0  ;;  %v2601_v43 = vmax.f32 %v4555_v34, 0.0 }
 0x2a5   :  { %v2602_v13 = vmax.f32 %v4556_v53, 0.0  ;;  %v646_v53 = vmul.f32 49.0, %v6834_v14 }
 0x2a7   :  { %v6883_v38 = vpack.c.bf16 %v2602_v13, %v2601_v43  ;;  %v6898_v43 = vpop.xlane.xlu1 %493  ;;  %v695_v14 = vsub.f32 %v596_v25, %v646_v53 }
 0x2a8   :  { %v2519_v20 = vpop.f32.mrb[80].mxu0 }
 0x2a9   :  { %v4557_v6 = vadd.f32 %v6471_v60, %v2519_v20  ;;  %4408 = vmatmul.mubr.msk.bf16.gmra.mrb[100].mxu1 %vm8369_vm7, %v372_v4  ;;  %v2521_v41 = vpop.f32.mrb[81].mxu0  ;;  %v597_v20 = vcvt.s32.f32 %v5489_v29 }
 0x2aa   :  { %v2522_v11 = vpop.f32.mrb[82].mxu0  ;;  %4419 = vmatprep.mubr.msk.bf16.mxu1 %vm8239_vm2, %v8165_v48 }
 0x2ab   :  { %v4558_v42 = vadd.f32 %v6471_v60, %v2522_v11  ;;  %v2524_v44 = vpop.f32.mrb[83].mxu0  ;;  %v2603_v34 = vmax.f32 %v4557_v6, 0.0  ;;  %v647_v6 = vmul.f32 49.0, %v428_v2  ;;  %v8372_v2 = vld [vmem:[#allocation95_spill] sm:$0xff] }
 0x2ac   :  { %v6908_v44 = vcvt.s32.f32 %v5465_v12  ;;  %v598_v59 = vcvt.s32.f32 %v8372_v2 }
 0x2ad   :  { %v2604_v17 = vmax.f32 %v4558_v42, 0.0 }
 0x2ae   :  { %vm744_vm0 = vcmp.eq.f32.partialorder %v695_v14, %v6908_v44 }
 0x2af   :  { %v6894_v54 = vpack.c.bf16 %v2604_v17, %v2603_v34  ;;  %v6910_v34 = vpop.xlane.xlu0 %442 }
 0x2b0   :  { %v2527_v56 = vpop.f32.mrb[84].mxu0 }
 0x2b1   :  { %v4559_v13 = vadd.f32 %v6471_v60, %v2527_v56  ;;  %v2529_v4 = vpop.f32.mrb[85].mxu0  ;;  %4420 = vmatmul.mubr.msk.bf16.vlgmr.msra.gmra.mrb[104].mxu1 %vm8370_vm13, %v6544_v19  ;;  %v6912_v19 = vpop.xlane.xlu1 %445  ;;  %vm8387_vm13 = vmmov %vm8378_vm1 }
 0x2b2   :  { %v2530_v41 = vpop.f32.mrb[86].mxu0  ;;  %4423 = vmatprep.mubr.msk.bf16.mxu1 %vm8239_vm2, %v8165_v48  ;;  %v696_v4 = vsub.f32 %v597_v20, %v647_v6  ;;  %v649_v6 = vmul.f32 49.0, %v434_v49 }
 0x2b3   :  { %v4560_v11 = vadd.f32 %v6471_v60, %v2530_v41  ;;  %v2532_v42 = vpop.f32.mrb[87].mxu0  ;;  %v2605_v17 = vmax.f32 %v4559_v13, 0.0  ;;  %v8374_v13 = vld [vmem:[#allocation96_spill] sm:$0xff]  ;;  %v6926_v14 = vpop.xlane.xlu0 %496 }
 0x2b4   :  { %vm745_vm8 = vcmp.eq.f32.partialorder %v696_v4, %v6908_v44  ;;  %v599_v20 = vcvt.s32.f32 %v8374_v13  ;;  %v793_v42 = vsel %vm744_vm0, 1.0, %v8165_v48 }
 0x2b5   :  { %v2606_v56 = vmax.f32 %v4560_v11, 0.0  ;;  %v6930_v4 = vpop.xlane.xlu1 %499 }
 0x2b6   :  { %v698_v12 = vsub.f32 %v599_v20, %v649_v6 }
 0x2b7   :  { %v6914_v29 = vpack.c.bf16 %v2606_v56, %v2605_v17  ;;  %v697_v56 = vsub.f32 %v598_v59, %v648_v26 }
 0x2b8   :  { %v2535_v41 = vpop.f32.mrb[88].mxu0  ;;  %vm747_vm6 = vcmp.eq.f32.partialorder %v698_v12, %v6908_v44 }
 0x2b9   :  { %8371 = vst [vmem:[#allocation151_spill] sm:$0xff] %v6914_v29  ;;  %v4561_v25 = vadd.f32 %v6471_v60, %v2535_v41  ;;  %v2537_v53 = vpop.f32.mrb[89].mxu0  ;;  %4424 = vmatmul.mubr.msk.bf16.gmra.mrb[108].mxu1 %vm8373_vm10, %v6601_v46  ;;  %v794_v46 = vsel %vm745_vm8, 1.0, %v8165_v48  ;;  %vm746_vm14 = vcmp.eq.f32.partialorder %v697_v56, %v6908_v44  ;;  %v8377_v29 = vld [vmem:[#allocation102_spill] sm:$0xff]  ;;  %v699_v56 = vsub.f32 %v600_v1, %v650_v51  ;;  %vm8390_vm8 = vmmov %vm8378_vm1 }
 0x2ba   :  { %v2538_v11 = vpop.f32.mrb[90].mxu0  ;;  %4427 = vmatprep.mubr.msk.bf16.mxu1 %vm8239_vm2, %v8165_v48  ;;  %v795_v31 = vsel %vm746_vm14, 1.0, %v8165_v48 }
 0x2bb   :  { %v4562_v35 = vadd.f32 %v6471_v60, %v2538_v11  ;;  %v2540_v17 = vpop.f32.mrb[91].mxu0  ;;  %v2607_v41 = vmax.f32 %v4561_v25, 0.0  ;;  %v601_v25 = vcvt.s32.f32 %v8377_v29  ;;  %vm748_vm3 = vcmp.eq.f32.partialorder %v699_v56, %v6908_v44 }
 0x2bc   :  { %v1147_v2 = vpop.f32.mrb[4].mxu1 }
 0x2bd   :  { %v2608_v49 = vmax.f32 %v4562_v35, 0.0  ;;  %v1345_v53 = vmul.f32 %v1147_v2, %v793_v42  ;;  %v4313_v13 = vpop.f32.mrb[5].mxu1  ;;  %v651_v42 = vmul.f32 49.0, %v6889_v62  ;;  %v449_v35 = vpop.xlane.xlu0 %448 }
 0x2be   :  { %v1150_v30 = vpop.f32.mrb[6].mxu1  ;;  %v452_v62 = vpop.xlane.xlu1 %451 }
 0x2bf   :  { %v6933_v8 = vpack.c.bf16 %v2608_v49, %v2607_v41  ;;  %v1346_v11 = vmul.f32 %v1150_v30, %v794_v46  ;;  %v4314_v17 = vpop.f32.mrb[7].mxu1  ;;  %v1395_v59 = vsel %vm1394_vm4, %v1345_v53, 0.0  ;;  %v796_v41 = vsel %vm747_vm6, 1.0, %v8165_v48  ;;  %vm8393_vm6 = vmmov %vm8390_vm8 }
 0x2c0   :  { %1396 = vadd.xlane.f32.xlu1 %v1395_v59  ;;  %v2543_v26 = vpop.f32.mrb[92].mxu0  ;;  %v8379_v17 = vld [vmem:[#allocation107_spill] sm:$0xff] }
 0x2c1   :  { %8376 = vst [vmem:[#allocation95_spill] sm:$0xff] %v6933_v8  ;;  %v4563_v20 = vadd.f32 %v6471_v60, %v2543_v26  ;;  %v2545_v6 = vpop.f32.mrb[93].mxu0  ;;  %4428 = vmatmul.mubr.msk.bf16.gmra.mrb[112].mxu1 %vm8378_vm1, %v6636_v16  ;;  %v1398_v45 = vsel %vm1394_vm4, %v1346_v11, 0.0  ;;  %v700_v16 = vsub.f32 %v601_v25, %v651_v42  ;;  %v602_v1 = vcvt.s32.f32 %v8379_v17  ;;  %v6951_v51 = vpop.xlane.xlu0 %502 }
 0x2c2   :  { %1399 = vadd.xlane.f32.xlu0 %v1398_v45  ;;  %v2546_v30 = vpop.f32.mrb[94].mxu0  ;;  %4431 = vmatprep.mubr.msk.bf16.mxu1 %vm8239_vm2, %v8165_v48  ;;  %v6958_v42 = vpop.xlane.xlu1 %505 }
 0x2c3   :  { %v4564_v29 = vadd.f32 %v6471_v60, %v2546_v30  ;;  %v2548_v2 = vpop.f32.mrb[95].mxu0  ;;  %v2609_v49 = vmax.f32 %v4563_v20, 0.0  ;;  %v652_v30 = vmul.f32 49.0, %v6910_v34  ;;  %vm749_vm5 = vcmp.eq.f32.partialorder %v700_v16, %v6908_v44 }
 0x2c4   :  { %v1155_v46 = vpop.f32.mrb[8].mxu1  ;;  %v8382_v2 = vld [vmem:[#allocation108_spill] sm:$0xff] }
 0x2c5   :  { %v2610_v53 = vmax.f32 %v4564_v29, 0.0  ;;  %v1347_v13 = vmul.f32 %v1155_v46, %v795_v31  ;;  %v4317_v12 = vpop.f32.mrb[9].mxu1  ;;  %v603_v46 = vcvt.s32.f32 %v8382_v2  ;;  %v455_v17 = vpop.xlane.xlu0 %454  ;;  %v654_v2 = vmul.f32 49.0, %v449_v35  ;;  %v8385_v35 = vld [vmem:[#allocation114_spill] sm:$0xff] }
 0x2c6   :  { %v1158_v11 = vpop.f32.mrb[10].mxu1  ;;  %v701_v12 = vsub.f32 %v602_v1, %v652_v30 }
 0x2c7   :  { %v6953_v59 = vpack.c.bf16 %v2610_v53, %v2609_v49  ;;  %v1348_v26 = vmul.f32 %v1158_v11, %v796_v41  ;;  %v4318_v6 = vpop.f32.mrb[11].mxu1  ;;  %v1401_v45 = vsel %vm1394_vm4, %v1347_v13, 0.0  ;;  %v653_v41 = vmul.f32 49.0, %v6912_v19 }
 0x2c8   :  { %1402 = vadd.xlane.f32.xlu1 %v1401_v45  ;;  %v2551_v25 = vpop.f32.mrb[96].mxu0  ;;  %v797_v49 = vsel %vm748_vm3, 1.0, %v8165_v48  ;;  %v798_v11 = vsel %vm749_vm5, 1.0, %v8165_v48  ;;  %vm750_vm11 = vcmp.eq.f32.partialorder %v701_v12, %v6908_v44 }
 0x2c9   :  { %8380 = vst [vmem:[#allocation96_spill] sm:$0xff] %v6953_v59  ;;  %v4565_v20 = vadd.f32 %v6471_v60, %v2551_v25  ;;  %v2553_v31 = vpop.f32.mrb[97].mxu0  ;;  %4432 = vmatmul.mubr.msk.bf16.gmra.mrb[116].mxu1 %vm8381_vm12, %v6673_v28  ;;  %v1404_v29 = vsel %vm1394_vm4, %v1348_v26, 0.0  ;;  %v702_v25 = vsub.f32 %v603_v46, %v653_v41  ;;  %v458_v59 = vpop.xlane.xlu1 %457  ;;  %v605_v41 = vcvt.s32.f32 %v8385_v35  ;;  %vm8397_vm12 = vmmov %vm8393_vm6 }
 0x2ca   :  { %1405 = vadd.xlane.f32.xlu0 %v1404_v29  ;;  %v2554_v34 = vpop.f32.mrb[98].mxu0  ;;  %4435 = vmatprep.mubr.msk.bf16.mxu1 %vm8239_vm2, %v8165_v48  ;;  %v8383_v31 = vld [vmem:[#allocation113_spill] sm:$0xff]  ;;  %v6990_v12 = vpop.xlane.xlu0 %508  ;;  %v657_v35 = vmul.f32 49.0, %v458_v59 }
 0x2cb   :  { %v4566_v53 = vadd.f32 %v6471_v60, %v2554_v34  ;;  %v2556_v13 = vpop.f32.mrb[99].mxu0  ;;  %v2611_v19 = vmax.f32 %v4565_v20, 0.0  ;;  %v604_v29 = vcvt.s32.f32 %v8383_v31  ;;  %vm751_vm15 = vcmp.eq.f32.partialorder %v702_v25, %v6908_v44 }
 0x2cc   :  { %v1163_v28 = vpop.f32.mrb[12].mxu1  ;;  %v655_v34 = vmul.f32 49.0, %v452_v62 }
 0x2cd   :  { %v2612_v26 = vmax.f32 %v4566_v53, 0.0  ;;  %v1349_v6 = vmul.f32 %v1163_v28, %v797_v49  ;;  %v4321_v45 = vpop.f32.mrb[13].mxu1  ;;  %v799_v53 = vsel %vm750_vm11, 1.0, %v8165_v48  ;;  %v703_v13 = vsub.f32 %v604_v29, %v654_v2  ;;  %v8386_v29 = vld [vmem:[#allocation119_spill] sm:$0xff] }
 0x2ce   :  { %v1166_v56 = vpop.f32.mrb[14].mxu1  ;;  %v704_v45 = vsub.f32 %v605_v41, %v655_v34  ;;  %v606_v2 = vcvt.s32.f32 %v8386_v29  ;;  %v8391_v29 = vld [vmem:[#allocation126_spill] sm:$0xff] }
 0x2cf   :  { %v6976_v8 = vpack.c.bf16 %v2612_v26, %v2611_v19  ;;  %v1350_v60 = vmul.f32 %v1166_v56, %v798_v11  ;;  %v4322_v1 = vpop.f32.mrb[15].mxu1  ;;  %v1407_v30 = vsel %vm1394_vm4, %v1349_v6, 0.0  ;;  %v6993_v19 = vpop.xlane.xlu1 %511  ;;  %vm752_vm7 = vcmp.eq.f32.partialorder %v703_v13, %v6908_v44 }
 0x2d0   :  { %1408 = vadd.xlane.f32.xlu1 %v1407_v30  ;;  %v6980_v16 = vpop.f32.mrb[100].mxu0  ;;  %v461_v1 = vpop.xlane.xlu0 %460  ;;  %vm753_vm0 = vcmp.eq.f32.partialorder %v704_v45, %v6908_v44  ;;  %v801_v41 = vsel %vm752_vm7, 1.0, %v8165_v48 }
 0x2d1   :  { %v2561_v20 = vpop.f32.mrb[101].mxu0  ;;  %4436 = vmatmul.mubr.msk.bf16.gmra.mrb[120].mxu1 %vm8384_vm9, %v6703_v58  ;;  %v1410_v46 = vsel %vm1394_vm4, %v1350_v60, 0.0  ;;  %v800_v58 = vsel %vm751_vm15, 1.0, %v8165_v48  ;;  %v656_v60 = vmul.f32 49.0, %v455_v17  ;;  %vm8400_vm15 = vmmov %vm8393_vm6 }
 0x2d2   :  { %1411 = vadd.xlane.f32.xlu0 %v1410_v46  ;;  %v2562_v49 = vpop.f32.mrb[102].mxu0  ;;  %4439 = vmatprep.mubr.msk.bf16.mxu1 %vm8239_vm2, %v8165_v48  ;;  %v8388_v20 = vld [vmem:[#allocation120_spill] sm:$0xff] }
 0x2d3   :  { %v2563_v28 = vpop.f32.mrb[103].mxu0  ;;  %v607_v46 = vcvt.s32.f32 %v8388_v20  ;;  %v464_v34 = vpop.xlane.xlu1 %463  ;;  %v705_v17 = vsub.f32 %v606_v2, %v656_v60  ;;  %v609_v2 = vcvt.s32.f32 %v8391_v29 }
 0x2d4   :  { %v1171_v11 = vpop.f32.mrb[16].mxu1  ;;  %v7008_v45 = vpop.xlane.xlu0 %514  ;;  %v659_v60 = vmul.f32 49.0, %v464_v34 }
 0x2d5   :  { %v1351_v26 = vmul.f32 %v1171_v11, %v799_v53  ;;  %v4325_v6 = vpop.f32.mrb[17].mxu1  ;;  %v802_v53 = vsel %vm753_vm0, 1.0, %v8165_v48  ;;  %v706_v28 = vsub.f32 %v607_v46, %v657_v35  ;;  %vm754_vm10 = vcmp.eq.f32.partialorder %v705_v17, %v6908_v44  ;;  %vm8403_vm0 = vmmov %vm8393_vm6 }
 0x2d6   :  { %v1174_v62 = vpop.f32.mrb[18].mxu1  ;;  %v658_v6 = vmul.f32 49.0, %v461_v1  ;;  %v803_v1 = vsel %vm754_vm10, 1.0, %v8165_v48  ;;  %v708_v17 = vsub.f32 %v609_v2, %v659_v60 }
 0x2d7   :  { %v1352_v25 = vmul.f32 %v1174_v62, %v800_v58  ;;  %v4326_v56 = vpop.f32.mrb[19].mxu1  ;;  %v1413_v31 = vsel %vm1394_vm4, %v1351_v26, 0.0  ;;  %v8389_v58 = vld [vmem:[#allocation125_spill] sm:$0xff]  ;;  %vm755_vm14 = vcmp.eq.f32.partialorder %v706_v28, %v6908_v44  ;;  %v8392_v28 = vld [vmem:[#allocation131_spill] sm:$0xff] }
 0x2d8   :  { %1414 = vadd.xlane.f32.xlu1 %v1413_v31  ;;  %v608_v26 = vcvt.s32.f32 %v8389_v58  ;;  %v7012_v56 = vpop.xlane.xlu1 %517  ;;  %v804_v46 = vsel %vm755_vm14, 1.0, %v8165_v48  ;;  %v467_v35 = vpop.xlane.xlu0 %466  ;;  %vm757_vm3 = vcmp.eq.f32.partialorder %v708_v17, %v6908_v44  ;;  %vm8406_vm14 = vmmov %vm8403_vm0 }
 0x2d9   :  { %4440 = vmatmul.mubr.msk.bf16.gmra.mrb[124].mxu1 %vm8387_vm13, %v6732_v32  ;;  %v1416_v30 = vsel %vm1394_vm4, %v1352_v25, 0.0  ;;  %v660_v58 = vmul.f32 49.0, %v467_v35  ;;  %v806_v2 = vsel %vm757_vm3, 1.0, %v8165_v48  ;;  %v662_v35 = vmul.f32 49.0, %v6831_v7  ;;  %vm8409_vm3 = vmmov %vm8403_vm0 }
 0x2da   :  { %1417 = vadd.xlane.f32.xlu0 %v1416_v30  ;;  %4443 = vmatprep.mubr.msk.bf16.mxu1 %vm8239_vm2, %v8165_v48  ;;  %v707_v30 = vsub.f32 %v608_v26, %v658_v6  ;;  %v8394_v6 = vld [vmem:[#allocation132_spill] sm:$0xff] }
 0x2dc   :  { %v1179_v49 = vpop.f32.mrb[20].mxu1  ;;  %vm756_vm1 = vcmp.eq.f32.partialorder %v707_v30, %v6908_v44  ;;  %v8395_v30 = vld [vmem:[#allocation87_spill] sm:$0xff] }
 0x2dd   :  { %v1353_v13 = vmul.f32 %v1179_v49, %v801_v41  ;;  %v4329_v32 = vpop.f32.mrb[21].mxu1 }
 0x2de   :  { %v1182_v11 = vpop.f32.mrb[22].mxu1 }
 0x2df   :  { %v1354_v59 = vmul.f32 %v1182_v11, %v802_v53  ;;  %v4330_v62 = vpop.f32.mrb[23].mxu1  ;;  %v1419_v25 = vsel %vm1394_vm4, %v1353_v13, 0.0  ;;  %v470_v53 = vpop.xlane.xlu1 %469  ;;  %v610_v11 = vcvt.s32.f32 %v8392_v28 }
 0x2e0   :  { %1420 = vadd.xlane.f32.xlu1 %v1419_v25  ;;  %v661_v62 = vmul.f32 49.0, %v470_v53  ;;  %v805_v25 = vsel %vm756_vm1, 1.0, %v8165_v48  ;;  %v8396_v53 = vld [vmem:[#allocation89_spill] sm:$0xff] }
 0x2e1   :  { %4444 = vmatmul.mubr.msk.bf16.gmra.mrb[128].mxu1 %vm8390_vm8, %v6742_v63  ;;  %v1422_v31 = vsel %vm1394_vm4, %v1354_v59, 0.0  ;;  %v611_v59 = vcvt.s32.f32 %v8394_v6 }
 0x2e2   :  { %1423 = vadd.xlane.f32.xlu0 %v1422_v31  ;;  %4447 = vmatprep.mubr.msk.bf16.mxu1 %vm8239_vm2, %v8165_v48  ;;  %v709_v31 = vsub.f32 %v610_v11, %v660_v58 }
 0x2e4   :  { %v1187_v20 = vpop.f32.mrb[24].mxu1  ;;  %vm758_vm5 = vcmp.eq.f32.partialorder %v709_v31, %v6908_v44  ;;  %v664_v31 = vmul.f32 49.0, %v6848_v15 }
 0x2e5   :  { %v1355_v41 = vmul.f32 %v1187_v20, %v803_v1  ;;  %v4333_v63 = vpop.f32.mrb[25].mxu1  ;;  %v612_v20 = vcvt.s32.f32 %v8395_v30  ;;  %v807_v7 = vsel %vm758_vm5, 1.0, %v8165_v48  ;;  %v665_v30 = vmul.f32 49.0, %v6852_v50 }
 0x2e6   :  { %v1190_v49 = vpop.f32.mrb[26].mxu1 }
 0x2e7   :  { %v1356_v13 = vmul.f32 %v1190_v49, %v804_v46  ;;  %v4334_v34 = vpop.f32.mrb[27].mxu1  ;;  %v1425_v32 = vsel %vm1394_vm4, %v1355_v41, 0.0  ;;  %v7039_v49 = vpop.xlane.xlu1 %523  ;;  %v711_v28 = vsub.f32 %v612_v20, %v662_v35 }
 0x2e8   :  { %1426 = vadd.xlane.f32.xlu1 %v1425_v32  ;;  %v663_v34 = vmul.f32 49.0, %v6838_v27 }
 0x2e9   :  { %4448 = vmatmul.mubr.msk.bf16.gmra.mrb[132].mxu1 %vm8393_vm6, %v6752_v40  ;;  %v1428_v26 = vsel %vm1394_vm4, %v1356_v13, 0.0  ;;  %v710_v40 = vsub.f32 %v611_v59, %v661_v62  ;;  %v613_v13 = vcvt.s32.f32 %v8396_v53  ;;  %v8398_v59 = vld [vmem:[#allocation91_spill] sm:$0xff]  ;;  %vm760_vm9 = vcmp.eq.f32.partialorder %v711_v28, %v6908_v44 }
 0x2ea   :  { %1429 = vadd.xlane.f32.xlu0 %v1428_v26  ;;  %4451 = vmatprep.mubr.msk.bf16.mxu1 %vm8239_vm2, %v8165_v48  ;;  %v614_v62 = vcvt.s32.f32 %v8398_v59  ;;  %v809_v15 = vsel %vm760_vm9, 1.0, %v8165_v48 }
 0x2eb   :  { %vm759_vm11 = vcmp.eq.f32.partialorder %v710_v40, %v6908_v44  ;;  %v712_v26 = vsub.f32 %v613_v13, %v663_v34 }
 0x2ec   :  { %v1195_v29 = vpop.f32.mrb[28].mxu1  ;;  %v808_v58 = vsel %vm759_vm11, 1.0, %v8165_v48  ;;  %vm8412_vm11 = vmmov %vm8403_vm0 }
 0x2ed   :  { %v1357_v60 = vmul.f32 %v1195_v29, %v805_v25  ;;  %v4337_v1 = vpop.f32.mrb[29].mxu1  ;;  %v7052_v25 = vpop.xlane.xlu1 %529  ;;  %vm761_vm7 = vcmp.eq.f32.partialorder %v712_v26, %v6908_v44 }
 0x2ee   :  { %v1198_v46 = vpop.f32.mrb[30].mxu1  ;;  %v8399_v1 = vld [vmem:[#allocation93_spill] sm:$0xff] }
 0x2ef   :  { %v1358_v41 = vmul.f32 %v1198_v46, %v806_v2  ;;  %v4338_v63 = vpop.f32.mrb[31].mxu1  ;;  %v1431_v17 = vsel %vm1394_vm4, %v1357_v60, 0.0  ;;  %v615_v40 = vcvt.s32.f32 %v8399_v1  ;;  %v713_v46 = vsub.f32 %v614_v62, %v664_v31 }
 0x2f0   :  { %1432 = vadd.xlane.f32.xlu1 %v1431_v17 }
 0x2f1   :  { %4452 = vmatmul.mubr.msk.bf16.gmra.mrb[136].mxu1 %vm8397_vm12, %v6762_v57  ;;  %v1434_v32 = vsel %vm1394_vm4, %v1358_v41, 0.0  ;;  %v810_v41 = vsel %vm761_vm7, 1.0, %v8165_v48  ;;  %v7067_v63 = vpop.xlane.xlu1 %535  ;;  %v714_v50 = vsub.f32 %v615_v40, %v665_v30  ;;  %vm762_vm13 = vcmp.eq.f32.partialorder %v713_v46, %v6908_v44  ;;  %vm8415_vm7 = vmmov %vm8403_vm0 }
 0x2f2   :  { %1435 = vadd.xlane.f32.xlu0 %v1434_v32  ;;  %4455 = vmatprep.mubr.msk.bf16.mxu1 %vm8239_vm2, %v8165_v48  ;;  %v666_v32 = vmul.f32 49.0, %v6878_v55  ;;  %v811_v55 = vsel %vm762_vm13, 1.0, %v8165_v48  ;;  %v668_v40 = vmul.f32 49.0, %v6892_v0 }
 0x2f3   :  { %vm763_vm10 = vcmp.eq.f32.partialorder %v714_v50, %v6908_v44  ;;  %v669_v50 = vmul.f32 49.0, %v6898_v43 }
 0x2f4   :  { %v1203_v11 = vpop.f32.mrb[32].mxu1  ;;  %v812_v31 = vsel %vm763_vm10, 1.0, %v8165_v48  ;;  %vm8418_vm10 = vmmov %vm8409_vm3 }
 0x2f5   :  { %v1359_v6 = vmul.f32 %v1203_v11, %v807_v7  ;;  %v4341_v27 = vpop.f32.mrb[33].mxu1  ;;  %v7082_v59 = vpop.xlane.xlu1 %541 }
 0x2f6   :  { %v1206_v57 = vpop.f32.mrb[34].mxu1 }
 0x2f7   :  { %v1360_v29 = vmul.f32 %v1206_v57, %v808_v58  ;;  %v4342_v2 = vpop.f32.mrb[35].mxu1  ;;  %v1437_v60 = vsel %vm1394_vm4, %v1359_v6, 0.0  ;;  %v8402_v58 = vld [vmem:[#allocation99_spill] sm:$0xff]  ;;  %v667_v6 = vmul.f32 49.0, %v6881_v18 }
 0x2f8   :  { %1438 = vadd.xlane.f32.xlu0 %v1437_v60  ;;  %v617_v26 = vcvt.s32.f32 %v8402_v58  ;;  %v670_v58 = vmul.f32 49.0, %v6926_v14 }
 0x2f9   :  { %4456 = vmatmul.mubr.msk.bf16.gmra.mrb[140].mxu1 %vm8400_vm15, %v6772_v23  ;;  %v1440_v20 = vsel %vm1394_vm4, %v1360_v29, 0.0  ;;  %v8401_v23 = vld [vmem:[#allocation97_spill] sm:$0xff]  ;;  %v7089_v46 = vpop.xlane.xlu1 %547 }
 0x2fa   :  { %1441 = vadd.xlane.f32.xlu1 %v1440_v20  ;;  %4459 = vmatprep.mubr.msk.bf16.mxu1 %vm8239_vm2, %v8165_v48  ;;  %v616_v13 = vcvt.s32.f32 %v8401_v23  ;;  %v716_v18 = vsub.f32 %v617_v26, %v667_v6 }
 0x2fc   :  { %v1211_v35 = vpop.f32.mrb[36].mxu1  ;;  %v715_v62 = vsub.f32 %v616_v13, %v666_v32  ;;  %vm765_vm1 = vcmp.eq.f32.partialorder %v716_v18, %v6908_v44 }
 0x2fd   :  { %v1361_v17 = vmul.f32 %v1211_v35, %v809_v15  ;;  %v4345_v53 = vpop.f32.mrb[37].mxu1  ;;  %v8405_v35 = vld [vmem:[#allocation105_spill] sm:$0xff]  ;;  %v814_v13 = vsel %vm765_vm1, 1.0, %v8165_v48  ;;  %vm8420_vm1 = vmmov %vm8409_vm3 }
 0x2fe   :  { %v1214_v34 = vpop.f32.mrb[38].mxu1  ;;  %vm764_vm8 = vcmp.eq.f32.partialorder %v715_v62, %v6908_v44 }
 0x2ff   :  { %v1362_v7 = vmul.f32 %v1214_v34, %v810_v41  ;;  %v4346_v28 = vpop.f32.mrb[39].mxu1  ;;  %v1443_v11 = vsel %vm1394_vm4, %v1361_v17, 0.0  ;;  %v619_v41 = vcvt.s32.f32 %v8405_v35  ;;  %v813_v0 = vsel %vm764_vm8, 1.0, %v8165_v48 }
 0x300   :  { %1444 = vadd.xlane.f32.xlu1 %v1443_v11  ;;  %v7102_v11 = vpop.xlane.xlu1 %553 }
 0x301   :  { %4460 = vmatmul.mubr.msk.bf16.gmra.mrb[144].mxu1 %vm8403_vm0, %v6782_v52  ;;  %v1446_v27 = vsel %vm1394_vm4, %v1362_v7, 0.0  ;;  %v8404_v52 = vld [vmem:[#allocation103_spill] sm:$0xff]  ;;  %v718_v34 = vsub.f32 %v619_v41, %v669_v50  ;;  %v8407_v7 = vld [vmem:[#allocation109_spill] sm:$0xff] }
 0x302   :  { %1447 = vadd.xlane.f32.xlu0 %v1446_v27  ;;  %4463 = vmatprep.mubr.msk.bf16.mxu1 %vm8239_vm2, %v8165_v48  ;;  %v618_v60 = vcvt.s32.f32 %v8404_v52  ;;  %v620_v28 = vcvt.s32.f32 %v8407_v7  ;;  %v8411_v50 = vld [vmem:[#allocation117_spill] sm:$0xff] }
 0x303   :  { %vm767_vm5 = vcmp.eq.f32.partialorder %v718_v34, %v6908_v44 }
 0x304   :  { %v1219_v57 = vpop.f32.mrb[40].mxu1  ;;  %v717_v53 = vsub.f32 %v618_v60, %v668_v40  ;;  %v719_v18 = vsub.f32 %v620_v28, %v670_v58  ;;  %v7117_v52 = vpop.xlane.xlu1 %559  ;;  %v674_v58 = vmul.f32 49.0, %v6990_v12 }
 0x305   :  { %v1363_v29 = vmul.f32 %v1219_v57, %v811_v55  ;;  %v4349_v2 = vpop.f32.mrb[41].mxu1  ;;  %v8408_v55 = vld [vmem:[#allocation111_spill] sm:$0xff]  ;;  %v671_v57 = vmul.f32 49.0, %v6930_v4 }
 0x306   :  { %v1222_v1 = vpop.f32.mrb[42].mxu1  ;;  %vm766_vm6 = vcmp.eq.f32.partialorder %v717_v53, %v6908_v44  ;;  %v621_v62 = vcvt.s32.f32 %v8408_v55  ;;  %v816_v2 = vsel %vm767_vm5, 1.0, %v8165_v48  ;;  %vm768_vm12 = vcmp.eq.f32.partialorder %v719_v18, %v6908_v44  ;;  %v8414_v55 = vld [vmem:[#allocation123_spill] sm:$0xff]  ;;  %vm8423_vm5 = vmmov %vm8420_vm1 }
 0x307   :  { %v1364_v30 = vmul.f32 %v1222_v1, %v812_v31  ;;  %v4350_v20 = vpop.f32.mrb[43].mxu1  ;;  %v1449_v15 = vsel %vm1394_vm4, %v1363_v29, 0.0  ;;  %v815_v14 = vsel %vm766_vm6, 1.0, %v8165_v48 }
 0x308   :  { %1450 = vadd.xlane.f32.xlu1 %v1449_v15  ;;  %v720_v4 = vsub.f32 %v621_v62, %v671_v57  ;;  %v672_v20 = vmul.f32 49.0, %v6951_v51  ;;  %v817_v51 = vsel %vm768_vm12, 1.0, %v8165_v48  ;;  %v625_v62 = vcvt.s32.f32 %v8414_v55 }
 0x309   :  { %4464 = vmatmul.mubr.msk.bf16.gmra.mrb[148].mxu1 %vm8406_vm14, %v6792_v24  ;;  %v1452_v17 = vsel %vm1394_vm4, %v1364_v30, 0.0 }
 0x30a   :  { %1453 = vadd.xlane.f32.xlu0 %v1452_v17  ;;  %4467 = vmatprep.mubr.msk.bf16.mxu1 %vm8239_vm2, %v8165_v48  ;;  %v623_v17 = vcvt.s32.f32 %v8411_v50  ;;  %vm769_vm9 = vcmp.eq.f32.partialorder %v720_v4, %v6908_v44  ;;  %v8417_v50 = vld [vmem:[#allocation129_spill] sm:$0xff] }
 0x30c   :  { %v1227_v23 = vpop.f32.mrb[44].mxu1 }
 0x30d   :  { %v1365_v32 = vmul.f32 %v1227_v23, %v813_v0  ;;  %v4353_v43 = vpop.f32.mrb[45].mxu1  ;;  %v673_v0 = vmul.f32 49.0, %v6958_v42  ;;  %v7132_v23 = vpop.xlane.xlu1 %565 }
 0x30e   :  { %v1230_v24 = vpop.f32.mrb[46].mxu1 }
 0x30f   :  { %v1366_v26 = vmul.f32 %v1230_v24, %v814_v13  ;;  %v4354_v6 = vpop.f32.mrb[47].mxu1  ;;  %v1455_v27 = vsel %vm1394_vm4, %v1365_v32, 0.0  ;;  %v818_v32 = vsel %vm769_vm9, 1.0, %v8165_v48  ;;  %v722_v42 = vsub.f32 %v623_v17, %v673_v0  ;;  %vm8425_vm9 = vmmov %vm8420_vm1 }
 0x310   :  { %1456 = vadd.xlane.f32.xlu1 %v1455_v27  ;;  %v627_v17 = vcvt.s32.f32 %v8417_v50  ;;  %v677_v0 = vmul.f32 49.0, %v7012_v56 }
 0x311   :  { %4468 = vmatmul.mubr.msk.bf16.gmra.mrb[152].mxu1 %vm8409_vm3, %v6802_v3  ;;  %v1458_v31 = vsel %vm1394_vm4, %v1366_v26, 0.0  ;;  %v8410_v3 = vld [vmem:[#allocation115_spill] sm:$0xff]  ;;  %v3234_v57 = vpop.xlane.xlu1 %3233  ;;  %vm771_vm13 = vcmp.eq.f32.partialorder %v722_v42, %v6908_v44 }
 0x312   :  { %1459 = vadd.xlane.f32.xlu0 %v1458_v31  ;;  %4471 = vmatprep.mubr.msk.bf16.mxu1 %vm8239_vm2, %v8165_v48  ;;  %v622_v40 = vcvt.s32.f32 %v8410_v3  ;;  %v675_v31 = vmul.f32 49.0, %v6993_v19  ;;  %v3235_v12 = vrot.slane %v3234_v57, 4  ;;  %v820_v4 = vsel %vm771_vm13, 1.0, %v8165_v48  ;;  %vm8426_vm13 = vmmov %vm8420_vm1 }
 0x313   :  { %v726_v56 = vsub.f32 %v627_v17, %v677_v0 }
 0x314   :  { %v1235_v29 = vpop.f32.mrb[48].mxu1  ;;  %v721_v13 = vsub.f32 %v622_v40, %v672_v20  ;;  %v3236_v3 = vadd.f32 %v3235_v12, %v3234_v57  ;;  %v676_v20 = vmul.f32 49.0, %v7008_v45 }
 0x315   :  { %v1367_v60 = vmul.f32 %v1235_v29, %v815_v14  ;;  %v4357_v1 = vpop.f32.mrb[49].mxu1  ;;  %vm775_vm6 = vcmp.eq.f32.partialorder %v726_v56, %v6908_v44 }
 0x316   :  { %v1238_v30 = vpop.f32.mrb[50].mxu1  ;;  %vm770_vm15 = vcmp.eq.f32.partialorder %v721_v13, %v6908_v44 }
 0x317   :  { %v1368_v15 = vmul.f32 %v1238_v30, %v816_v2  ;;  %v4358_v35 = vpop.f32.mrb[51].mxu1  ;;  %v1461_v41 = vsel %vm1394_vm4, %v1367_v60, 0.0  ;;  %v819_v18 = vsel %vm770_vm15, 1.0, %v8165_v48  ;;  %v724_v60 = vsub.f32 %v625_v62, %v675_v31  ;;  %v8419_v62 = vld [vmem:[#allocation134_spill] sm:$0xff] }
 0x318   :  { %1462 = vadd.xlane.f32.xlu1 %v1461_v41  ;;  %v629_v57 = vcvt.s32.f32 %v8419_v62  ;;  %v679_v31 = vmul.f32 49.0, %v7039_v49 }
 0x319   :  { %4472 = vmatmul.mubr.msk.bf16.gmra.mrb[156].mxu1 %vm8412_vm11, %v6812_v21  ;;  %v1464_v53 = vsel %vm1394_vm4, %v1368_v15, 0.0  ;;  %v8413_v21 = vld [vmem:[#allocation121_spill] sm:$0xff]  ;;  %vm773_vm8 = vcmp.eq.f32.partialorder %v724_v60, %v6908_v44 }
 0x31a   :  { %1465 = vadd.xlane.f32.xlu0 %v1464_v53  ;;  %4475 = vmatprep.mubr.msk.bf16.mxu1 %vm8239_vm2, %v8165_v48  ;;  %v624_v28 = vcvt.s32.f32 %v8413_v21  ;;  %v822_v42 = vsel %vm773_vm8, 1.0, %v8165_v48  ;;  %v8421_v60 = vld [vmem:[#allocation137_spill] sm:$0xff]  ;;  %vm8428_vm8 = vmmov %vm8420_vm1 }
 0x31c   :  { %v1243_v34 = vpop.f32.mrb[52].mxu1  ;;  %v723_v29 = vsub.f32 %v624_v28, %v674_v58  ;;  %v628_v28 = vcvt.s32.f32 %v6042_v33 }
 0x31d   :  { %v1369_v43 = vmul.f32 %v1243_v34, %v817_v51  ;;  %v4361_v7 = vpop.f32.mrb[53].mxu1  ;;  %v3237_v51 = vrot.slane %v3236_v3, 2 }
 0x31e   :  { %v1246_v24 = vpop.f32.mrb[54].mxu1  ;;  %vm772_vm0 = vcmp.eq.f32.partialorder %v723_v29, %v6908_v44  ;;  %v824_v29 = vsel %vm775_vm6, 1.0, %v8165_v48  ;;  %vm8432_vm6 = vmmov %vm8423_vm5 }
 0x31f   :  { %v1370_v26 = vmul.f32 %v1246_v24, %v818_v32  ;;  %v4362_v6 = vpop.f32.mrb[55].mxu1  ;;  %v1467_v27 = vsel %vm1394_vm4, %v1369_v43, 0.0  ;;  %v821_v45 = vsel %vm772_vm0, 1.0, %v8165_v48  ;;  %v3238_v34 = vadd.f32 %v3237_v51, %v3236_v3  ;;  %v521_v43 = vpop.xlane.xlu0 %520 }
 0x320   :  { %1468 = vadd.xlane.f32.xlu1 %v1467_v27  ;;  %v678_v24 = vmul.f32 49.0, %v521_v43 }
 0x321   :  { %4476 = vmatmul.mubr.msk.bf16.gmra.mrb[160].mxu1 %vm8415_vm7, %v6822_v47  ;;  %v1470_v14 = vsel %vm1394_vm4, %v1370_v26, 0.0  ;;  %v8416_v47 = vld [vmem:[#allocation127_spill] sm:$0xff]  ;;  %v3239_v21 = vrot.slane %v3238_v34, 1 }
 0x322   :  { %1471 = vadd.xlane.f32.xlu0 %v1470_v14  ;;  %4479 = vmatprep.mubr.msk.bf16.mxu1 %vm8239_vm2, %v8165_v48  ;;  %v626_v40 = vcvt.s32.f32 %v8416_v47  ;;  %v727_v12 = vsub.f32 %v628_v28, %v678_v24 }
 0x323   :  { %v3240_v55 = vadd.f32 %v3239_v21, %v3238_v34  ;;  %v683_v21 = vmul.f32 49.0, %v7067_v63 }
 0x324   :  { %v1251_v2 = vpop.f32.mrb[56].mxu1  ;;  %v725_v13 = vsub.f32 %v626_v40, %v676_v20  ;;  %vm776_vm3 = vcmp.eq.f32.partialorder %v727_v12, %v6908_v44  ;;  %v8422_v20 = vld [vmem:[#allocation138_spill] sm:$0xff]  ;;  %v635_v12 = vcvt.s32.f32 %v6287_v36 }
 0x325   :  { %v1371_v19 = vmul.f32 %v1251_v2, %v819_v18  ;;  %v4365_v1 = vpop.f32.mrb[57].mxu1  ;;  %4668 = vpush %v3240_v55  ;;  %v728_v2 = vsub.f32 %v629_v57, %v679_v31  ;;  %v825_v50 = vsel %vm776_vm3, 1.0, %v8165_v48  ;;  %v634_v55 = vcvt.s32.f32 %v6284_v39 }
 0x326   :  { %v1254_v30 = vpop.f32.mrb[58].mxu1  ;;  %vm774_vm14 = vcmp.eq.f32.partialorder %v725_v13, %v6908_v44  ;;  %v632_v13 = vcvt.s32.f32 %v6207_v5 }
 0x327   :  { %v1372_v15 = vmul.f32 %v1254_v30, %v820_v4  ;;  %v4366_v35 = vpop.f32.mrb[59].mxu1  ;;  %v1473_v41 = vsel %vm1394_vm4, %v1371_v19, 0.0  ;;  %v823_v33 = vsel %vm774_vm14, 1.0, %v8165_v48  ;;  %v527_v19 = vpop.xlane.xlu0 %526  ;;  %vm777_vm12 = vcmp.eq.f32.partialorder %v728_v2, %v6908_v44 }
 0x328   :  { %1474 = vadd.xlane.f32.xlu1 %v1473_v41  ;;  %v680_v3 = vmul.f32 49.0, %v527_v19  ;;  %v681_v35 = vmul.f32 49.0, %v7052_v25 }
 0x329   :  { %4480 = vmatmul.mubr.msk.bf16.gmra.mrb[164].mxu1 %vm8418_vm10, %v6836_v9  ;;  %v1476_v53 = vsel %vm1394_vm4, %v1372_v15, 0.0  ;;  %v631_v15 = vcvt.s32.f32 %v8422_v20  ;;  %v687_v20 = vmul.f32 49.0, %v7089_v46 }
 0x32a   :  { %1477 = vadd.xlane.f32.xlu0 %v1476_v53  ;;  %4483 = vmatprep.mubr.msk.bf16.mxu1 %vm8239_vm2, %v8165_v48  ;;  %v826_v53 = vsel %vm777_vm12, 1.0, %v8165_v48  ;;  %vm8436_vm12 = vmmov %vm8432_vm6 }
 0x32b   :  { %v730_v51 = vsub.f32 %v631_v15, %v681_v35  ;;  %v8427_v15 = vld [vmem:[#allocation151_spill] sm:$0xff] }
 0x32c   :  { %v1259_v32 = vpop.f32.mrb[60].mxu1 }
 0x32d   :  { %v1373_v7 = vmul.f32 %v1259_v32, %v821_v45  ;;  %v4369_v9 = vpop.f32.mrb[61].mxu1  ;;  %vm779_vm15 = vcmp.eq.f32.partialorder %v730_v51, %v6908_v44 }
 0x32e   :  { %v1262_v58 = vpop.f32.mrb[62].mxu1 }
 0x32f   :  { %v1374_v26 = vmul.f32 %v1262_v58, %v822_v42  ;;  %v4370_v6 = vpop.f32.mrb[63].mxu1  ;;  %v1479_v27 = vsel %vm1394_vm4, %v1373_v7, 0.0  ;;  %v8424_v7 = vld [vmem:[#allocation141_spill] sm:$0xff] }
 0x330   :  { %1480 = vadd.xlane.f32.xlu1 %v1479_v27  ;;  %v633_v9 = vcvt.s32.f32 %v8424_v7  ;;  %v8431_v7 = vld [vmem:[#allocation95_spill] sm:$0xff] }
 0x331   :  { %4484 = vmatmul.mubr.msk.bf16.gmra.mrb[168].mxu1 %vm8420_vm1, %v6850_v10  ;;  %v1482_v14 = vsel %vm1394_vm4, %v1374_v26, 0.0  ;;  %v630_v10 = vcvt.s32.f32 %v8421_v60  ;;  %v828_v26 = vsel %vm779_vm15, 1.0, %v8165_v48  ;;  %vm8439_vm15 = vmmov %vm8432_vm6 }
 0x332   :  { %1483 = vadd.xlane.f32.xlu0 %v1482_v14  ;;  %4487 = vmatprep.mubr.msk.bf16.mxu1 %vm8239_vm2, %v8165_v48  ;;  %v732_v6 = vsub.f32 %v633_v9, %v683_v21 }
 0x333   :  { %v729_v17 = vsub.f32 %v630_v10, %v680_v3  ;;  %v636_v10 = vcvt.s32.f32 %v6356_v37 }
 0x334   :  { %v1267_v18 = vpop.f32.mrb[64].mxu1  ;;  %vm781_vm0 = vcmp.eq.f32.partialorder %v732_v6, %v6908_v44  ;;  %v8433_v6 = vld [vmem:[#allocation146_spill] sm:$0xff] }
 0x335   :  { %v1375_v49 = vmul.f32 %v1267_v18, %v823_v33  ;;  %v4373_v4 = vpop.f32.mrb[65].mxu1  ;;  %vm778_vm11 = vcmp.eq.f32.partialorder %v729_v17, %v6908_v44  ;;  %v685_v18 = vmul.f32 49.0, %v7082_v59 }
 0x336   :  { %v1270_v1 = vpop.f32.mrb[66].mxu1  ;;  %v827_v5 = vsel %vm778_vm11, 1.0, %v8165_v48  ;;  %v830_v4 = vsel %vm781_vm0, 1.0, %v8165_v48 }
 0x337   :  { %v1376_v47 = vmul.f32 %v1270_v1, %v824_v29  ;;  %v4374_v40 = vpop.f32.mrb[67].mxu1  ;;  %v1485_v30 = vsel %vm1394_vm4, %v1375_v49, 0.0  ;;  %v734_v36 = vsub.f32 %v635_v12, %v685_v18  ;;  %v691_v12 = vmul.f32 49.0, %v7117_v52  ;;  %v8435_v18 = vld [vmem:[#allocation96_spill] sm:$0xff] }
 0x338   :  { %1486 = vadd.xlane.f32.xlu0 %v1485_v30  ;;  %v637_v30 = vcvt.s32.f32 %v6359_v61 }
 0x339   :  { %4488 = vmatmul.mubr.msk.bf16.gmra.mrb[172].mxu1 %vm8423_vm5, %v6868_v22  ;;  %v1488_v41 = vsel %vm1394_vm4, %v1376_v47, 0.0  ;;  %v533_v22 = vpop.xlane.xlu0 %532  ;;  %vm783_vm14 = vcmp.eq.f32.partialorder %v734_v36, %v6908_v44 }
 0x33a   :  { %1489 = vadd.xlane.f32.xlu1 %v1488_v41  ;;  %4491 = vmatprep.mubr.msk.bf16.mxu1 %vm8239_vm2, %v8165_v48  ;;  %v682_v32 = vmul.f32 49.0, %v533_v22  ;;  %v832_v17 = vsel %vm783_vm14, 1.0, %v8165_v48  ;;  %v736_v61 = vsub.f32 %v637_v30, %v687_v20 }
 0x33c   :  { %v1275_v0 = vpop.f32.mrb[68].mxu1  ;;  %v731_v24 = vsub.f32 %v632_v13, %v682_v32  ;;  %vm785_vm3 = vcmp.eq.f32.partialorder %v736_v61, %v6908_v44 }
 0x33d   :  { %v1377_v45 = vmul.f32 %v1275_v0, %v825_v50  ;;  %v4377_v25 = vpop.f32.mrb[69].mxu1 }
 0x33e   :  { %v1278_v34 = vpop.f32.mrb[70].mxu1  ;;  %vm780_vm7 = vcmp.eq.f32.partialorder %v731_v24, %v6908_v44  ;;  %v834_v24 = vsel %vm785_vm3, 1.0, %v8165_v48 }
 0x33f   :  { %v1378_v42 = vmul.f32 %v1278_v34, %v826_v53  ;;  %v4378_v56 = vpop.f32.mrb[71].mxu1  ;;  %v1491_v43 = vsel %vm1394_vm4, %v1377_v45, 0.0  ;;  %v829_v39 = vsel %vm780_vm7, 1.0, %v8165_v48  ;;  %v8429_v53 = vld [vmem:[#allocation144_spill] sm:$0xff] }
 0x340   :  { %1492 = vadd.xlane.f32.xlu0 %v1491_v43  ;;  %v638_v51 = vcvt.s32.f32 %v8429_v53  ;;  %v689_v43 = vmul.f32 49.0, %v7102_v11 }
 0x341   :  { %4492 = vmatmul.mubr.msk.bf16.gmra.mrb[176].mxu1 %vm8425_vm9, %v6883_v38  ;;  %v1494_v28 = vsel %vm1394_vm4, %v1378_v42, 0.0  ;;  %v539_v38 = vpop.xlane.xlu0 %538  ;;  %v8430_v42 = vld [vmem:[#allocation145_spill] sm:$0xff] }
 0x342   :  { %1495 = vadd.xlane.f32.xlu1 %v1494_v28  ;;  %4495 = vmatprep.mubr.msk.bf16.mxu1 %vm8239_vm2, %v8165_v48  ;;  %v684_v57 = vmul.f32 49.0, %v539_v38  ;;  %v639_v56 = vcvt.s32.f32 %v8430_v42 }
 0x344   :  { %v1283_v58 = vpop.f32.mrb[72].mxu1  ;;  %v733_v2 = vsub.f32 %v634_v55, %v684_v57 }
 0x345   :  { %v1379_v27 = vmul.f32 %v1283_v58, %v827_v5  ;;  %v4381_v63 = vpop.f32.mrb[73].mxu1  ;;  %v738_v58 = vsub.f32 %v639_v56, %v689_v43 }
 0x346   :  { %v1286_v62 = vpop.f32.mrb[74].mxu1  ;;  %vm782_vm10 = vcmp.eq.f32.partialorder %v733_v2, %v6908_v44 }
 0x347   :  { %v1380_v31 = vmul.f32 %v1286_v62, %v828_v26  ;;  %v4382_v14 = vpop.f32.mrb[75].mxu1  ;;  %v1497_v33 = vsel %vm1394_vm4, %v1379_v27, 0.0  ;;  %v831_v37 = vsel %vm782_vm10, 1.0, %v8165_v48  ;;  %v640_v27 = vcvt.s32.f32 %v8433_v6 }
 0x348   :  { %1498 = vadd.xlane.f32.xlu0 %v1497_v33  ;;  %v8434_v14 = vld [vmem:[#allocation147_spill] sm:$0xff]  ;;  %vm787_vm11 = vcmp.eq.f32.partialorder %v738_v58, %v6908_v44 }
 0x349   :  { %4496 = vmatmul.mubr.msk.bf16.gmra.mrb[180].mxu1 %vm8426_vm13, %v6894_v54  ;;  %v1500_v29 = vsel %vm1394_vm4, %v1380_v31, 0.0  ;;  %v545_v54 = vpop.xlane.xlu0 %544  ;;  %v641_v33 = vcvt.s32.f32 %v8434_v14  ;;  %vm8441_vm13 = vmmov %vm8432_vm6 }
 0x34a   :  { %1501 = vadd.xlane.f32.xlu1 %v1500_v29  ;;  %4499 = vmatprep.mubr.msk.bf16.mxu1 %vm8239_vm2, %v8165_v48  ;;  %v686_v1 = vmul.f32 49.0, %v545_v54 }
 0x34b   :  { %v740_v36 = vsub.f32 %v641_v33, %v691_v12 }
 0x34c   :  { %v1291_v49 = vpop.f32.mrb[76].mxu1  ;;  %v735_v41 = vsub.f32 %v636_v10, %v686_v1  ;;  %v8437_v10 = vld [vmem:[#allocation148_spill] sm:$0xff] }
 0x34d   :  { %v1381_v60 = vmul.f32 %v1291_v49, %v829_v39  ;;  %v4385_v59 = vpop.f32.mrb[77].mxu1  ;;  %v551_v45 = vpop.xlane.xlu0 %550  ;;  %v642_v54 = vcvt.s32.f32 %v8437_v10  ;;  %vm789_vm7 = vcmp.eq.f32.partialorder %v740_v36, %v6908_v44 }
 0x34e   :  { %v1294_v19 = vpop.f32.mrb[78].mxu1  ;;  %v688_v13 = vmul.f32 49.0, %v551_v45  ;;  %vm784_vm1 = vcmp.eq.f32.partialorder %v735_v41, %v6908_v44  ;;  %v1397_v14 = vpop.xlane.xlu1 %1396 }
 0x34f   :  { %v1382_v3 = vmul.f32 %v1294_v19, %v830_v4  ;;  %v4386_v47 = vpop.f32.mrb[79].mxu1  ;;  %v1503_v40 = vsel %vm1394_vm4, %v1381_v60, 0.0  ;;  %v833_v21 = vsel %vm784_vm1, 1.0, %v8165_v48  ;;  %v836_v4 = vsel %vm787_vm11, 1.0, %v8165_v48 }
 0x350   :  { %1504 = vadd.xlane.f32.xlu0 %v1503_v40  ;;  %v737_v28 = vsub.f32 %v638_v51, %v688_v13 }
 0x351   :  { %4500 = vmatmul.mubr.msk.bf16.gmra.mrb[184].mxu1 %vm8428_vm8, %v8427_v15  ;;  %v1506_v35 = vsel %vm1394_vm4, %v1382_v3, 0.0  ;;  %v557_v63 = vpop.xlane.xlu0 %556  ;;  %v4926_v3 = vld [vmem:[%s7901_s5] ss:$0 sm:$0xff]  ;;  %v8438_v15 = vld [vmem:[#allocation149_spill] sm:$0xff] }
 0x352   :  { %1507 = vadd.xlane.f32.xlu1 %v1506_v35  ;;  %4503 = vmatprep.mubr.msk.bf16.mxu1 %vm8239_vm2, %v8165_v48  ;;  %v690_v38 = vmul.f32 49.0, %v557_v63  ;;  %vm786_vm5 = vcmp.eq.f32.partialorder %v737_v28, %v6908_v44  ;;  %v4567_v47 = vadd.f32 %v4926_v3, %v6980_v16  ;;  %v643_v35 = vcvt.s32.f32 %v8438_v15 }
 0x353   :  { %v835_v39 = vsel %vm786_vm5, 1.0, %v8165_v48 }
 0x354   :  { %v1299_v50 = vpop.f32.mrb[80].mxu1  ;;  %v739_v2 = vsub.f32 %v640_v27, %v690_v38 }
 0x355   :  { %v1383_v0 = vmul.f32 %v1299_v50, %v831_v37  ;;  %v4389_v46 = vpop.f32.mrb[81].mxu1  ;;  %v563_v60 = vpop.xlane.xlu0 %562  ;;  %v693_v37 = vmul.f32 49.0, %v7132_v23  ;;  %v2613_v50 = vmax.f32 %v4567_v47, 0.0 }
 0x356   :  { %v1302_v25 = vpop.f32.mrb[82].mxu1  ;;  %v692_v19 = vmul.f32 49.0, %v563_v60  ;;  %vm788_vm9 = vcmp.eq.f32.partialorder %v739_v2, %v6908_v44 }
 0x357   :  { %v1384_v22 = vmul.f32 %v1302_v25, %v832_v17  ;;  %v4390_v34 = vpop.f32.mrb[83].mxu1  ;;  %v1509_v32 = vsel %vm1394_vm4, %v1383_v0, 0.0  ;;  %v837_v16 = vsel %vm788_vm9, 1.0, %v8165_v48  ;;  %v838_v0 = vsel %vm789_vm7, 1.0, %v8165_v48 }
 0x358   :  { %1510 = vadd.xlane.f32.xlu0 %v1509_v32  ;;  %v741_v17 = vsub.f32 %v642_v54, %v692_v19  ;;  %v742_v46 = vsub.f32 %v643_v35, %v693_v37 }
 0x359   :  { %4504 = vmatmul.mubr.msk.bf16.gmra.mrb[188].mxu1 %vm8432_vm6, %v8431_v7  ;;  %v1512_v9 = vsel %vm1394_vm4, %v1384_v22, 0.0  ;;  %v569_v23 = vpop.xlane.xlu0 %568  ;;  %v2638_v22 = vpack.c.bf16 %v2613_v50, %v2613_v50 }
 0x35a   :  { %1513 = vadd.xlane.f32.xlu1 %v1512_v9  ;;  %4507 = vmatprep.mubr.msk.bf16.mxu1 %vm8239_vm2, %v8165_v48  ;;  %v694_v25 = vmul.f32 49.0, %v569_v23  ;;  %vm791_vm0 = vcmp.eq.f32.partialorder %v742_v46, %v6908_v44 }
 0x35c   :  { %v1307_v5 = vpop.f32.mrb[84].mxu1 }
 0x35d   :  { %v1385_v26 = vmul.f32 %v1307_v5, %v833_v21  ;;  %v4393_v11 = vpop.f32.mrb[85].mxu1  ;;  %v840_v21 = vsel %vm791_vm0, 1.0, %v8165_v48 }
 0x35e   :  { %v1310_v55 = vpop.f32.mrb[86].mxu1 }
 0x35f   :  { %v1386_v62 = vmul.f32 %v1310_v55, %v834_v24  ;;  %v4394_v57 = vpop.f32.mrb[87].mxu1  ;;  %v1515_v31 = vsel %vm1394_vm4, %v1385_v26, 0.0 }
 0x360   :  { %1516 = vadd.xlane.f32.xlu0 %v1515_v31 }
 0x361   :  { %4508 = vmatmul.mubr.msk.bf16.gmra.mrb[192].mxu1 %vm8436_vm12, %v8435_v18  ;;  %v1518_v29 = vsel %vm1394_vm4, %v1386_v62, 0.0  ;;  %vm8446_vm12 = vcmask 64512  }
 0x362   :  { %1519 = vadd.xlane.f32.xlu1 %v1518_v29  ;;  %4511 = vmatprep.mubr.msk.bf16.mxu1 %vm8239_vm2, %v8165_v48  ;;  %v1400_v29 = vpop.xlane.xlu0 %1399 }
 0x364   :  { %v1315_v49 = vpop.f32.mrb[88].mxu1 }
 0x365   :  { %v1387_v52 = vmul.f32 %v1315_v49, %v835_v39  ;;  %v4397_v59 = vpop.f32.mrb[89].mxu1  ;;  %v1403_v49 = vpop.xlane.xlu1 %1402 }
 0x366   :  { %v1318_v1 = vpop.f32.mrb[90].mxu1  ;;  %v1406_v59 = vpop.xlane.xlu0 %1405 }
 0x367   :  { %v1388_v40 = vmul.f32 %v1318_v1, %v836_v4  ;;  %v4398_v30 = vpop.f32.mrb[91].mxu1  ;;  %v1521_v20 = vsel %vm1394_vm4, %v1387_v52, 0.0  ;;  %v7287_v52 = vld [vmem:[%s7904_s8] ss:$0 sm:$0xff]  ;;  %s4669_s8 = spop %4668 }
 0x368   :  { %1522 = vadd.xlane.f32.xlu0 %v1521_v20 }
 0x369   :  { %4512 = vmatmul.mubr.msk.bf16.gmra.mrb[196].mxu1 %vm8439_vm15, %v6976_v8  ;;  %v1524_v41 = vsel %vm1394_vm4, %v1388_v40, 0.0  ;;  %v8440_v8 = vld [vmem:[#allocation150_spill] sm:$0xff]  ;;  %v1409_v40 = vpop.xlane.xlu1 %1408 }
 0x36a   :  { %1525 = vadd.xlane.f32.xlu1 %v1524_v41  ;;  %4515 = vmatprep.mubr.msk.bf16.mxu1 %vm8239_vm2, %v8165_v48  ;;  %v644_v45 = vcvt.s32.f32 %v8440_v8  ;;  %vm790_vm2 = vcmp.eq.f32.partialorder %v741_v17, %v6908_v44  ;;  %v1412_v41 = vpop.xlane.xlu0 %1411 }
 0x36b   :  { %v839_v43 = vsel %vm790_vm2, 1.0, %v8165_v48  ;;  %vm8451_vm2 = vmmov %vm8446_vm12 }
 0x36c   :  { %v1323_v61 = vpop.f32.mrb[92].mxu1  ;;  %v743_v7 = vsub.f32 %v644_v45, %v694_v25 }
 0x36d   :  { %v1389_v53 = vmul.f32 %v1323_v61, %v837_v16  ;;  %v4401_v51 = vpop.f32.mrb[93].mxu1 }
 0x36e   :  { %v1326_v13 = vpop.f32.mrb[94].mxu1  ;;  %vm792_vm10 = vcmp.eq.f32.partialorder %v743_v7, %v6908_v44 }
 0x36f   :  { %v1390_v34 = vmul.f32 %v1326_v13, %v838_v0  ;;  %v4402_v32 = vpop.f32.mrb[95].mxu1  ;;  %v1527_v42 = vsel %vm1394_vm4, %v1389_v53, 0.0  ;;  %v841_v27 = vsel %vm792_vm10, 1.0, %v8165_v48  ;;  %v1415_v53 = vpop.xlane.xlu1 %1414 }
 0x370   :  { %1528 = vadd.xlane.f32.xlu0 %v1527_v42 }
 0x371   :  { %4516 = vmatmul.mubr.msk.bf16.gmra.mrb[200].mxu1 %vm8441_vm13, %v2638_v22  ;;  %v1530_v56 = vsel %vm1394_vm4, %v1390_v34, 0.0  ;;  %v1418_v22 = vpop.xlane.xlu0 %1417 }
 0x372   :  { %1531 = vadd.xlane.f32.xlu1 %v1530_v56 }
 0x374   :  { %v1331_v9 = vpop.f32.mrb[96].mxu1 }
 0x375   :  { %v1391_v28 = vmul.f32 %v1331_v9, %v839_v43  ;;  %v4405_v5 = vpop.f32.mrb[97].mxu1 }
 0x376   :  { %v1334_v24 = vpop.f32.mrb[98].mxu1 }
 0x377   :  { %v1392_v58 = vmul.f32 %v1334_v24, %v840_v21  ;;  %v4406_v26 = vpop.f32.mrb[99].mxu1  ;;  %v1533_v11 = vsel %vm1394_vm4, %v1391_v28, 0.0  ;;  %v1421_v21 = vpop.xlane.xlu1 %1420 }
 0x378   :  { %1534 = vadd.xlane.f32.xlu0 %v1533_v11  ;;  %v1424_v11 = vpop.xlane.xlu0 %1423 }
 0x379   :  { %v1536_v6 = vsel %vm1394_vm4, %v1392_v58, 0.0 }
 0x37a   :  { %1537 = vadd.xlane.f32.xlu1 %v1536_v6 }
 0x37c   :  { %v1339_v63 = vpop.f32.mrb[100].mxu1 }
 0x37d   :  { %v1393_v55 = vmul.f32 %v1339_v63, %v841_v27  ;;  %v4409_v38 = vpop.f32.mrb[101].mxu1 }
 0x37e   :  { %v1342_v62 = vpop.f32.mrb[102].mxu1 }
 0x37f   :  { %v4410_v57 = vpop.f32.mrb[103].mxu1  ;;  %v1539_v31 = vsel %vm1394_vm4, %v1393_v55, 0.0 }
 0x380   :  { %1540 = vadd.xlane.f32.xlu0 %v1539_v31  ;;  %v1427_v31 = vpop.xlane.xlu1 %1426 }
 0x384   :  { %v2780_v33 = vpop.f32.mrb[104].mxu1 }
 0x385   :  { %v2781_v12 = vadd.f32 %v2780_v33, %v1397_v14  ;;  %v4421_v18 = vpop.f32.mrb[105].mxu1 }
 0x386   :  { %v2783_v44 = vpop.f32.mrb[106].mxu1 }
 0x387   :  { %4728 = vtanh.f32 %v2781_v12  ;;  %v2784_v39 = vadd.f32 %v2783_v44, %v1400_v29  ;;  %v4422_v2 = vpop.f32.mrb[107].mxu1  ;;  %v1430_v44 = vpop.xlane.xlu0 %1429 }
 0x389   :  { %4730 = vtanh.f32 %v2784_v39 }
 0x38c   :  { %v2788_v4 = vpop.f32.mrb[108].mxu1 }
 0x38d   :  { %v2789_v36 = vadd.f32 %v2788_v4, %v1403_v49  ;;  %v4425_v60 = vpop.f32.mrb[109].mxu1 }
 0x38e   :  { %v2791_v10 = vpop.f32.mrb[110].mxu1 }
 0x38f   :  { %4732 = vtanh.f32 %v2789_v36  ;;  %v2792_v54 = vadd.f32 %v2791_v10, %v1406_v59  ;;  %v4426_v19 = vpop.f32.mrb[111].mxu1  ;;  %v1433_v10 = vpop.xlane.xlu1 %1432 }
 0x391   :  { %v4729_v1 = vpop.eup %4728  ;;  %4734 = vtanh.f32 %v2792_v54 }
 0x392   :  { %v3034_v3 = vmul.f32 %v7287_v52, %v4729_v1 }
 0x393   :  { %v4731_v47 = vpop.eup %4730 }
 0x394   :  { %v2796_v30 = vpop.f32.mrb[112].mxu1  ;;  %v3083_v20 = vsel %vm1394_vm4, %v3034_v3, 0.0  ;;  %v3035_v15 = vmul.f32 %v7287_v52, %v4731_v47 }
 0x395   :  { %v2797_v35 = vadd.f32 %v2796_v30, %v1409_v40  ;;  %3084 = vadd.xlane.f32.xlu1 %v3083_v20  ;;  %v4429_v37 = vpop.f32.mrb[113].mxu1  ;;  %v1436_v40 = vpop.xlane.xlu0 %1435 }
 0x396   :  { %v2799_v16 = vpop.f32.mrb[114].mxu1  ;;  %v3086_v50 = vsel %vm1394_vm4, %v3035_v15, 0.0 }
 0x397   :  { %4736 = vtanh.f32 %v2797_v35  ;;  %v2800_v17 = vadd.f32 %v2799_v16, %v1412_v41  ;;  %3087 = vadd.xlane.f32.xlu0 %v3086_v50  ;;  %v4430_v61 = vpop.f32.mrb[115].mxu1 }
 0x399   :  { %v4733_v0 = vpop.eup %4732  ;;  %4738 = vtanh.f32 %v2800_v17  ;;  %v1439_v50 = vpop.xlane.xlu0 %1438 }
 0x39a   :  { %v3036_v46 = vmul.f32 %v7287_v52, %v4733_v0 }
 0x39b   :  { %v4735_v23 = vpop.eup %4734 }
 0x39c   :  { %v2804_v51 = vpop.f32.mrb[116].mxu1  ;;  %v3089_v8 = vsel %vm1394_vm4, %v3036_v46, 0.0  ;;  %v3037_v45 = vmul.f32 %v7287_v52, %v4735_v23 }
 0x39d   :  { %v2805_v25 = vadd.f32 %v2804_v51, %v1415_v53  ;;  %3090 = vadd.xlane.f32.xlu1 %v3089_v8  ;;  %v4433_v13 = vpop.f32.mrb[117].mxu1  ;;  %v1442_v53 = vpop.xlane.xlu1 %1441 }
 0x39e   :  { %v2807_v34 = vpop.f32.mrb[118].mxu1  ;;  %v3092_v32 = vsel %vm1394_vm4, %v3037_v45, 0.0 }
 0x39f   :  { %4740 = vtanh.f32 %v2805_v25  ;;  %v2808_v42 = vadd.f32 %v2807_v34, %v1418_v22  ;;  %3093 = vadd.xlane.f32.xlu0 %v3092_v32  ;;  %v4434_v56 = vpop.f32.mrb[119].mxu1 }
 0x3a1   :  { %v4737_v43 = vpop.eup %4736  ;;  %4742 = vtanh.f32 %v2808_v42  ;;  %v1445_v32 = vpop.xlane.xlu1 %1444 }
 0x3a2   :  { %v3038_v7 = vmul.f32 %v7287_v52, %v4737_v43 }
 0x3a3   :  { %v4739_v9 = vpop.eup %4738 }
 0x3a4   :  { %v2812_v28 = vpop.f32.mrb[120].mxu1  ;;  %v3095_v5 = vsel %vm1394_vm4, %v3038_v7, 0.0  ;;  %v3039_v24 = vmul.f32 %v7287_v52, %v4739_v9 }
 0x3a5   :  { %v2813_v58 = vadd.f32 %v2812_v28, %v1421_v21  ;;  %3096 = vadd.xlane.f32.xlu1 %v3095_v5  ;;  %v4437_v26 = vpop.f32.mrb[121].mxu1  ;;  %v1448_v21 = vpop.xlane.xlu0 %1447 }
 0x3a6   :  { %v2815_v6 = vpop.f32.mrb[122].mxu1  ;;  %v3098_v27 = vsel %vm1394_vm4, %v3039_v24, 0.0 }
 0x3a7   :  { %4744 = vtanh.f32 %v2813_v58  ;;  %v2816_v63 = vadd.f32 %v2815_v6, %v1424_v11  ;;  %3099 = vadd.xlane.f32.xlu0 %v3098_v27  ;;  %v4438_v55 = vpop.f32.mrb[123].mxu1  ;;  %v1451_v6 = vpop.xlane.xlu1 %1450 }
 0x3a9   :  { %v4741_v38 = vpop.eup %4740  ;;  %4746 = vtanh.f32 %v2816_v63 }
 0x3aa   :  { %v3040_v62 = vmul.f32 %v7287_v52, %v4741_v38 }
 0x3ab   :  { %v4743_v57 = vpop.eup %4742 }
 0x3ac   :  { %v2820_v14 = vpop.f32.mrb[124].mxu1  ;;  %v3101_v33 = vsel %vm1394_vm4, %v3040_v62, 0.0  ;;  %v3041_v12 = vmul.f32 %v7287_v52, %v4743_v57  ;;  %v1454_v62 = vpop.xlane.xlu0 %1453 }
 0x3ad   :  { %v2821_v18 = vadd.f32 %v2820_v14, %v1427_v31  ;;  %3102 = vadd.xlane.f32.xlu1 %v3101_v33  ;;  %v4441_v29 = vpop.f32.mrb[125].mxu1 }
 0x3ae   :  { %v2823_v39 = vpop.f32.mrb[126].mxu1  ;;  %v3104_v2 = vsel %vm1394_vm4, %v3041_v12, 0.0  ;;  %v1457_v29 = vpop.xlane.xlu1 %1456 }
 0x3af   :  { %4748 = vtanh.f32 %v2821_v18  ;;  %v2824_v49 = vadd.f32 %v2823_v39, %v1430_v44  ;;  %3105 = vadd.xlane.f32.xlu0 %v3104_v2  ;;  %v4442_v4 = vpop.f32.mrb[127].mxu1 }
 0x3b1   :  { %v4745_v36 = vpop.eup %4744  ;;  %4750 = vtanh.f32 %v2824_v49 }
 0x3b2   :  { %v3042_v60 = vmul.f32 %v7287_v52, %v4745_v36  ;;  %v1460_v36 = vpop.xlane.xlu0 %1459 }
 0x3b3   :  { %v4747_v59 = vpop.eup %4746 }
 0x3b4   :  { %v2828_v54 = vpop.f32.mrb[128].mxu1  ;;  %v3107_v19 = vsel %vm1394_vm4, %v3042_v60, 0.0  ;;  %v3043_v1 = vmul.f32 %v7287_v52, %v4747_v59 }
 0x3b5   :  { %v2829_v3 = vadd.f32 %v2828_v54, %v1433_v10  ;;  %3108 = vadd.xlane.f32.xlu1 %v3107_v19  ;;  %v4445_v47 = vpop.f32.mrb[129].mxu1 }
 0x3b6   :  { %v2831_v30 = vpop.f32.mrb[130].mxu1  ;;  %v3110_v20 = vsel %vm1394_vm4, %v3043_v1, 0.0  ;;  %v1463_v47 = vpop.xlane.xlu1 %1462 }
 0x3b7   :  { %4752 = vtanh.f32 %v2829_v3  ;;  %v2832_v15 = vadd.f32 %v2831_v30, %v1436_v40  ;;  %3111 = vadd.xlane.f32.xlu0 %v3110_v20  ;;  %v4446_v35 = vpop.f32.mrb[131].mxu1 }
 0x3b9   :  { %v4749_v37 = vpop.eup %4748  ;;  %4754 = vtanh.f32 %v2832_v15 }
 0x3ba   :  { %v3044_v41 = vmul.f32 %v7287_v52, %v4749_v37  ;;  %v1466_v37 = vpop.xlane.xlu0 %1465 }
 0x3bb   :  { %v4751_v16 = vpop.eup %4750 }
 0x3bc   :  { %v2836_v17 = vpop.f32.mrb[132].mxu1  ;;  %v3113_v61 = vsel %vm1394_vm4, %v3044_v41, 0.0  ;;  %v3045_v0 = vmul.f32 %v7287_v52, %v4751_v16 }
 0x3bd   :  { %v2837_v46 = vadd.f32 %v2836_v17, %v1439_v50  ;;  %3114 = vadd.xlane.f32.xlu1 %v3113_v61  ;;  %v4449_v23 = vpop.f32.mrb[133].mxu1 }
 0x3be   :  { %v2839_v51 = vpop.f32.mrb[134].mxu1  ;;  %v3116_v8 = vsel %vm1394_vm4, %v3045_v0, 0.0  ;;  %v1469_v23 = vpop.xlane.xlu1 %1468 }
 0x3bf   :  { %4756 = vtanh.f32 %v2837_v46  ;;  %v7313_v45 = vadd.f32 %v2839_v51, %v1442_v53  ;;  %3117 = vadd.xlane.f32.xlu0 %v3116_v8  ;;  %v4450_v25 = vpop.f32.mrb[135].mxu1 }
 0x3c1   :  { %v4753_v13 = vpop.eup %4752 }
 0x3c2   :  { %v3046_v22 = vmul.f32 %v7287_v52, %v4753_v13 }
 0x3c3   :  { %v4755_v34 = vpop.eup %4754 }
 0x3c4   :  { %v2844_v42 = vpop.f32.mrb[136].mxu1  ;;  %v3119_v56 = vsel %vm1394_vm4, %v3046_v22, 0.0  ;;  %v3047_v43 = vmul.f32 %v7287_v52, %v4755_v34  ;;  %v1472_v22 = vpop.xlane.xlu0 %1471 }
 0x3c5   :  { %v2845_v7 = vadd.f32 %v2844_v42, %v1445_v32  ;;  %3120 = vadd.xlane.f32.xlu1 %v3119_v56  ;;  %v4453_v9 = vpop.f32.mrb[137].mxu1 }
 0x3c6   :  { %v2847_v28 = vpop.f32.mrb[138].mxu1  ;;  %v3122_v5 = vsel %vm1394_vm4, %v3047_v43, 0.0 }
 0x3c7   :  { %4758 = vtanh.f32 %v2845_v7  ;;  %v2848_v24 = vadd.f32 %v2847_v28, %v1448_v21  ;;  %3123 = vadd.xlane.f32.xlu0 %v3122_v5  ;;  %v4454_v58 = vpop.f32.mrb[139].mxu1  ;;  %v1475_v21 = vpop.xlane.xlu1 %1474 }
 0x3c9   :  { %v4757_v26 = vpop.eup %4756  ;;  %4760 = vtanh.f32 %v2848_v24 }
 0x3ca   :  { %v3048_v11 = vmul.f32 %v7287_v52, %v4757_v26 }
 0x3cc   :  { %v2852_v27 = vpop.f32.mrb[140].mxu1  ;;  %v3125_v63 = vsel %vm1394_vm4, %v3048_v11, 0.0  ;;  %v1478_v11 = vpop.xlane.xlu0 %1477 }
 0x3cd   :  { %v2853_v55 = vadd.f32 %v2852_v27, %v1451_v6  ;;  %3126 = vadd.xlane.f32.xlu1 %v3125_v63  ;;  %v4457_v38 = vpop.f32.mrb[141].mxu1 }
 0x3ce   :  { %v2855_v57 = vpop.f32.mrb[142].mxu1 }
 0x3cf   :  { %4762 = vtanh.f32 %v2853_v55  ;;  %v2856_v31 = vadd.f32 %v2855_v57, %v1454_v62  ;;  %v4458_v14 = vpop.f32.mrb[143].mxu1 }
 0x3d1   :  { %v4759_v33 = vpop.eup %4758  ;;  %4764 = vtanh.f32 %v2856_v31  ;;  %v1481_v31 = vpop.xlane.xlu1 %1480 }
 0x3d2   :  { %v3050_v12 = vmul.f32 %v7287_v52, %v4759_v33 }
 0x3d3   :  { %v4761_v18 = vpop.eup %4760 }
 0x3d4   :  { %v2860_v44 = vpop.f32.mrb[144].mxu1  ;;  %v3131_v39 = vsel %vm1394_vm4, %v3050_v12, 0.0  ;;  %v3051_v2 = vmul.f32 %v7287_v52, %v4761_v18 }
 0x3d5   :  { %v2861_v49 = vadd.f32 %v2860_v44, %v1457_v29  ;;  %3132 = vadd.xlane.f32.xlu1 %v3131_v39  ;;  %v4461_v4 = vpop.f32.mrb[145].mxu1  ;;  %v1484_v44 = vpop.xlane.xlu0 %1483 }
 0x3d6   :  { %v2863_v60 = vpop.f32.mrb[146].mxu1  ;;  %v3134_v59 = vsel %vm1394_vm4, %v3051_v2, 0.0 }
 0x3d7   :  { %4766 = vtanh.f32 %v2861_v49  ;;  %v2864_v10 = vadd.f32 %v2863_v60, %v1460_v36  ;;  %3135 = vadd.xlane.f32.xlu0 %v3134_v59  ;;  %v4462_v54 = vpop.f32.mrb[147].mxu1 }
 0x3d9   :  { %v4763_v19 = vpop.eup %4762  ;;  %4768 = vtanh.f32 %v2864_v10  ;;  %v1487_v10 = vpop.xlane.xlu0 %1486 }
 0x3da   :  { %v3052_v1 = vmul.f32 %v7287_v52, %v4763_v19 }
 0x3db   :  { %v4765_v3 = vpop.eup %4764 }
 0x3dc   :  { %v2868_v40 = vpop.f32.mrb[148].mxu1  ;;  %v3137_v30 = vsel %vm1394_vm4, %v3052_v1, 0.0  ;;  %v3053_v20 = vmul.f32 %v7287_v52, %v4765_v3 }
 0x3dd   :  { %v2869_v15 = vadd.f32 %v2868_v40, %v1463_v47  ;;  %3138 = vadd.xlane.f32.xlu1 %v3137_v30  ;;  %v4465_v35 = vpop.f32.mrb[149].mxu1  ;;  %v1490_v40 = vpop.xlane.xlu1 %1489 }
 0x3de   :  { %v2871_v41 = vpop.f32.mrb[150].mxu1  ;;  %v3140_v16 = vsel %vm1394_vm4, %v3053_v20, 0.0 }
 0x3df   :  { %4770 = vtanh.f32 %v2869_v15  ;;  %v2872_v50 = vadd.f32 %v2871_v41, %v1466_v37  ;;  %3141 = vadd.xlane.f32.xlu0 %v3140_v16  ;;  %v4466_v17 = vpop.f32.mrb[151].mxu1 }
 0x3e1   :  { %v4767_v61 = vpop.eup %4766  ;;  %4772 = vtanh.f32 %v2872_v50  ;;  %v1493_v50 = vpop.xlane.xlu0 %1492 }
 0x3e2   :  { %v3054_v0 = vmul.f32 %v7287_v52, %v4767_v61 }
 0x3e3   :  { %v4769_v46 = vpop.eup %4768 }
 0x3e4   :  { %v2876_v53 = vpop.f32.mrb[152].mxu1  ;;  %v3143_v51 = vsel %vm1394_vm4, %v3054_v0, 0.0  ;;  %v3055_v8 = vmul.f32 %v7287_v52, %v4769_v46 }
 0x3e5   :  { %v2877_v25 = vadd.f32 %v2876_v53, %v1469_v23  ;;  %3144 = vadd.xlane.f32.xlu1 %v3143_v51  ;;  %v4469_v13 = vpop.f32.mrb[153].mxu1  ;;  %v1496_v53 = vpop.xlane.xlu1 %1495 }
 0x3e6   :  { %v2879_v34 = vpop.f32.mrb[154].mxu1  ;;  %v3146_v32 = vsel %vm1394_vm4, %v3055_v8, 0.0 }
 0x3e7   :  { %4774 = vtanh.f32 %v2877_v25  ;;  %v2880_v42 = vadd.f32 %v2879_v34, %v1472_v22  ;;  %3147 = vadd.xlane.f32.xlu0 %v3146_v32  ;;  %v4470_v56 = vpop.f32.mrb[155].mxu1 }
 0x3e9   :  { %v4771_v43 = vpop.eup %4770  ;;  %4776 = vtanh.f32 %v2880_v42  ;;  %v1499_v42 = vpop.xlane.xlu0 %1498 }
 0x3ea   :  { %v3056_v7 = vmul.f32 %v7287_v52, %v4771_v43 }
 0x3eb   :  { %v4773_v9 = vpop.eup %4772 }
 0x3ec   :  { %v2884_v28 = vpop.f32.mrb[156].mxu1  ;;  %v3149_v5 = vsel %vm1394_vm4, %v3056_v7, 0.0  ;;  %v3057_v24 = vmul.f32 %v7287_v52, %v4773_v9 }
 0x3ed   :  { %v2885_v58 = vadd.f32 %v2884_v28, %v1475_v21  ;;  %3150 = vadd.xlane.f32.xlu1 %v3149_v5  ;;  %v4473_v26 = vpop.f32.mrb[157].mxu1  ;;  %v1502_v28 = vpop.xlane.xlu1 %1501 }
 0x3ee   :  { %v2887_v6 = vpop.f32.mrb[158].mxu1  ;;  %v3152_v27 = vsel %vm1394_vm4, %v3057_v24, 0.0 }
 0x3ef   :  { %4778 = vtanh.f32 %v2885_v58  ;;  %v2888_v63 = vadd.f32 %v2887_v6, %v1478_v11  ;;  %3153 = vadd.xlane.f32.xlu0 %v3152_v27  ;;  %v4474_v55 = vpop.f32.mrb[159].mxu1 }
 0x3f1   :  { %v4775_v38 = vpop.eup %4774  ;;  %4780 = vtanh.f32 %v2888_v63 }
 0x3f2   :  { %v3058_v62 = vmul.f32 %v7287_v52, %v4775_v38  ;;  %v1505_v38 = vpop.xlane.xlu0 %1504 }
 0x3f3   :  { %v4777_v57 = vpop.eup %4776 }
 0x3f4   :  { %v2892_v14 = vpop.f32.mrb[160].mxu1  ;;  %v3155_v33 = vsel %vm1394_vm4, %v3058_v62, 0.0  ;;  %v3059_v12 = vmul.f32 %v7287_v52, %v4777_v57 }
 0x3f5   :  { %v2893_v18 = vadd.f32 %v2892_v14, %v1481_v31  ;;  %3156 = vadd.xlane.f32.xlu1 %v3155_v33  ;;  %v4477_v29 = vpop.f32.mrb[161].mxu1 }
 0x3f6   :  { %v2895_v39 = vpop.f32.mrb[162].mxu1  ;;  %v3158_v2 = vsel %vm1394_vm4, %v3059_v12, 0.0  ;;  %v1508_v12 = vpop.xlane.xlu1 %1507 }
 0x3f7   :  { %4782 = vtanh.f32 %v2893_v18  ;;  %v2896_v49 = vadd.f32 %v2895_v39, %v1484_v44  ;;  %3159 = vadd.xlane.f32.xlu0 %v3158_v2  ;;  %v4478_v4 = vpop.f32.mrb[163].mxu1 }
 0x3f9   :  { %v4779_v36 = vpop.eup %4778  ;;  %4784 = vtanh.f32 %v2896_v49 }
 0x3fa   :  { %v3060_v60 = vmul.f32 %v7287_v52, %v4779_v36  ;;  %v1511_v36 = vpop.xlane.xlu0 %1510 }
 0x3fb   :  { %v4781_v59 = vpop.eup %4780 }
 0x3fc   :  { %v2900_v54 = vpop.f32.mrb[164].mxu1  ;;  %v3161_v19 = vsel %vm1394_vm4, %v3060_v60, 0.0  ;;  %v3061_v1 = vmul.f32 %v7287_v52, %v4781_v59 }
 0x3fd   :  { %v2901_v3 = vadd.f32 %v2900_v54, %v1487_v10  ;;  %3162 = vadd.xlane.f32.xlu1 %v3161_v19  ;;  %v4481_v47 = vpop.f32.mrb[165].mxu1 }
 0x3fe   :  { %v2903_v30 = vpop.f32.mrb[166].mxu1  ;;  %v3164_v20 = vsel %vm1394_vm4, %v3061_v1, 0.0  ;;  %v1514_v1 = vpop.xlane.xlu1 %1513 }
 0x3ff   :  { %4786 = vtanh.f32 %v2901_v3  ;;  %v2904_v15 = vadd.f32 %v2903_v30, %v1490_v40  ;;  %3165 = vadd.xlane.f32.xlu0 %v3164_v20  ;;  %v4482_v35 = vpop.f32.mrb[167].mxu1 }
 0x400   :  { %4788 = vtanh.f32 %v7313_v45 }
 0x401   :  { %v4783_v37 = vpop.eup %4782  ;;  %4790 = vtanh.f32 %v2904_v15 }
 0x402   :  { %v3062_v41 = vmul.f32 %v7287_v52, %v4783_v37  ;;  %v1517_v37 = vpop.xlane.xlu0 %1516 }
 0x403   :  { %v4785_v16 = vpop.eup %4784 }
 0x404   :  { %v2908_v17 = vpop.f32.mrb[168].mxu1  ;;  %v3167_v61 = vsel %vm1394_vm4, %v3062_v41, 0.0  ;;  %v3063_v0 = vmul.f32 %v7287_v52, %v4785_v16 }
 0x405   :  { %v2909_v46 = vadd.f32 %v2908_v17, %v1493_v50  ;;  %3168 = vadd.xlane.f32.xlu1 %v3167_v61  ;;  %v4485_v23 = vpop.f32.mrb[169].mxu1 }
 0x406   :  { %v2911_v51 = vpop.f32.mrb[170].mxu1  ;;  %v3170_v8 = vsel %vm1394_vm4, %v3063_v0, 0.0  ;;  %v1520_v0 = vpop.xlane.xlu1 %1519 }
 0x407   :  { %4792 = vtanh.f32 %v2909_v46  ;;  %v2912_v45 = vadd.f32 %v2911_v51, %v1496_v53  ;;  %3171 = vadd.xlane.f32.xlu0 %v3170_v8  ;;  %v4486_v25 = vpop.f32.mrb[171].mxu1 }
 0x409   :  { %v4787_v13 = vpop.eup %4786  ;;  %4794 = vtanh.f32 %v2912_v45 }
 0x40a   :  { %v4789_v22 = vpop.eup %4788  ;;  %v3064_v34 = vmul.f32 %v7287_v52, %v4787_v13  ;;  %v1523_v13 = vpop.xlane.xlu0 %1522 }
 0x40b   :  { %v4791_v32 = vpop.eup %4790  ;;  %v3049_v58 = vmul.f32 %v7287_v52, %v4789_v22 }
 0x40c   :  { %v2916_v56 = vpop.f32.mrb[172].mxu1  ;;  %v3173_v43 = vsel %vm1394_vm4, %v3064_v34, 0.0  ;;  %v3065_v7 = vmul.f32 %v7287_v52, %v4791_v32 }
 0x40d   :  { %v2917_v9 = vadd.f32 %v2916_v56, %v1499_v42  ;;  %3174 = vadd.xlane.f32.xlu1 %v3173_v43  ;;  %v4489_v21 = vpop.f32.mrb[173].mxu1  ;;  %v3128_v27 = vsel %vm1394_vm4, %v3049_v58, 0.0  ;;  %v1526_v43 = vpop.xlane.xlu1 %1525 }
 0x40e   :  { %v2919_v5 = vpop.f32.mrb[174].mxu1  ;;  %v3176_v24 = vsel %vm1394_vm4, %v3065_v7, 0.0 }
 0x40f   :  { %4796 = vtanh.f32 %v2917_v9  ;;  %v2920_v26 = vadd.f32 %v2919_v5, %v1502_v28  ;;  %3177 = vadd.xlane.f32.xlu0 %v3176_v24  ;;  %v4490_v11 = vpop.f32.mrb[175].mxu1  ;;  %v8442_v5 = vld [vmem:[#allocation86_spill] sm:$0xff] }
 0x410   :  { %v578_v24 = vadd.s32 1, %v8442_v5 }
 0x411   :  { %v4793_v6 = vpop.eup %4792  ;;  %4798 = vtanh.f32 %v2920_v26  ;;  %v8443_v26 = vld [vmem:[#allocation83_spill] sm:$0xff] }
 0x412   :  { %v3066_v63 = vmul.f32 %v7287_v52, %v4793_v6  ;;  %v570_v11 = vadd.s32 128, %v8443_v26  ;;  %v7375_v6 = vmul.u32 49, %v8442_v5 }
 0x413   :  { %v4795_v55 = vpop.eup %4794  ;;  %3129 = vadd.xlane.f32.xlu0 %v3128_v27  ;;  %v7377_v27 = vmul.u32 49, %v578_v24 }
 0x414   :  { %v2924_v62 = vpop.f32.mrb[176].mxu1  ;;  %v3179_v57 = vsel %vm1394_vm4, %v3066_v63, 0.0  ;;  %v3067_v31 = vmul.f32 %v7287_v52, %v4795_v55  ;;  %vm575_vm8 = vcmp.ge.s32.totalorder %v570_v11, %v7375_v6  ;;  %vm574_vm11 = vcmp.ge.s32.totalorder %v8443_v26, %v7375_v6 }
 0x415   :  { %v2925_v14 = vadd.f32 %v2924_v62, %v1505_v38  ;;  %3180 = vadd.xlane.f32.xlu1 %v3179_v57  ;;  %v4493_v33 = vpop.f32.mrb[177].mxu1  ;;  %v1529_v38 = vpop.xlane.xlu0 %1528  ;;  %vm581_vm14 = vcmp.lt.s32.totalorder %v570_v11, %v7377_v27  ;;  %vm580_vm9 = vcmp.lt.s32.totalorder %v8443_v26, %v7377_v27 }
 0x416   :  { %v2927_v18 = vpop.f32.mrb[178].mxu1  ;;  %v3182_v29 = vsel %vm1394_vm4, %v3067_v31, 0.0  ;;  %vm585_vm1 = vmand %vm575_vm8, %vm581_vm14  ;;  %v1532_v33 = vpop.xlane.xlu1 %1531  ;;  %vm8459_vm8 = vcmask 1043456  }
 0x417   :  { %4800 = vtanh.f32 %v2925_v14  ;;  %v2928_v44 = vadd.f32 %v2927_v18, %v1508_v12  ;;  %3183 = vadd.xlane.f32.xlu0 %v3182_v29  ;;  %v4494_v39 = vpop.f32.mrb[179].mxu1  ;;  %vm7384_vm6 = vmpackc.low %vm585_vm1, %vm585_vm1  ;;  %v8549_v29 = vld [vmem:[#allocation62_spill] sm:$0xff] }
 0x418   :  { %vm584_vm15 = vmand %vm574_vm11, %vm580_vm9 }
 0x419   :  { %v4797_v2 = vpop.eup %4796  ;;  %4802 = vtanh.f32 %v2928_v44  ;;  %vm7534_vm7 = vmpackc.low %vm584_vm15, %vm584_vm15 }
 0x41a   :  { %v3068_v49 = vmul.f32 %v7287_v52, %v4797_v2  ;;  %v4984_v2 = vmov 1.0|1.0   ;;  %vm8464_vm1 = vmmov %vm8459_vm8 }
 0x41b   :  { %v4799_v4 = vpop.eup %4798  ;;  %4064 = vmatprep.mubr.msk.bf16.mxu1 %vm7384_vm6, %v4984_v2  ;;  %vm8527_vm11 = vmmov %vm8451_vm2 }
 0x41c   :  { %v2932_v60 = vpop.f32.mrb[180].mxu1  ;;  %v3185_v59 = vsel %vm1394_vm4, %v3068_v49, 0.0  ;;  %v3069_v10 = vmul.f32 %v7287_v52, %v4799_v4 }
 0x41d   :  { %v2933_v54 = vadd.f32 %v2932_v60, %v1511_v36  ;;  %3186 = vadd.xlane.f32.xlu1 %v3185_v59  ;;  %v4497_v19 = vpop.f32.mrb[181].mxu1  ;;  %v1535_v59 = vpop.xlane.xlu0 %1534 }
 0x41e   :  { %v2935_v3 = vpop.f32.mrb[182].mxu1  ;;  %v3188_v47 = vsel %vm1394_vm4, %v3069_v10, 0.0 }
 0x41f   :  { %4804 = vtanh.f32 %v2933_v54  ;;  %v2936_v40 = vadd.f32 %v2935_v3, %v1514_v1  ;;  %3189 = vadd.xlane.f32.xlu0 %v3188_v47  ;;  %v4498_v30 = vpop.f32.mrb[183].mxu1  ;;  %v1538_v3 = vpop.xlane.xlu1 %1537 }
 0x421   :  { %v4801_v20 = vpop.eup %4800  ;;  %4806 = vtanh.f32 %v2936_v40 }
 0x422   :  { %v3070_v15 = vmul.f32 %v7287_v52, %v4801_v20 }
 0x423   :  { %v4803_v35 = vpop.eup %4802 }
 0x424   :  { %v2940_v41 = vpop.f32.mrb[184].mxu1  ;;  %v3191_v16 = vsel %vm1394_vm4, %v3070_v15, 0.0  ;;  %v3071_v50 = vmul.f32 %v7287_v52, %v4803_v35 }
 0x425   :  { %v2941_v17 = vadd.f32 %v2940_v41, %v1517_v37  ;;  %3192 = vadd.xlane.f32.xlu1 %v3191_v16  ;;  %v4501_v61 = vpop.f32.mrb[185].mxu1  ;;  %v3085_v37 = vpop.xlane.xlu1 %3084 }
 0x426   :  { %v2943_v46 = vpop.f32.mrb[186].mxu1  ;;  %v3194_v23 = vsel %vm1394_vm4, %v3071_v50, 0.0  ;;  %v1541_v50 = vpop.xlane.xlu0 %1540 }
 0x427   :  { %v2944_v53 = vadd.f32 %v2943_v46, %v1520_v0  ;;  %3195 = vadd.xlane.f32.xlu0 %v3194_v23  ;;  %v4502_v51 = vpop.f32.mrb[187].mxu1  ;;  %4808 = vtanh.f32 %v2941_v17 }
 0x429   :  { %v4805_v8 = vpop.eup %4804  ;;  %4810 = vtanh.f32 %v2944_v53 }
 0x42a   :  { %v3072_v45 = vmul.f32 %v7287_v52, %v4805_v8  ;;  %v3091_v23 = vpop.xlane.xlu1 %3090 }
 0x42b   :  { %v4807_v25 = vpop.eup %4806 }
 0x42c   :  { %v2948_v22 = vpop.f32.mrb[188].mxu1  ;;  %v3197_v34 = vsel %vm1394_vm4, %v3072_v45, 0.0  ;;  %v3073_v32 = vmul.f32 %v7287_v52, %v4807_v25  ;;  %v3088_v45 = vpop.xlane.xlu0 %3087 }
 0x42d   :  { %v2949_v42 = vadd.f32 %v2948_v22, %v1523_v13  ;;  %3198 = vadd.xlane.f32.xlu1 %v3197_v34  ;;  %v4505_v56 = vpop.f32.mrb[189].mxu1 }
 0x42e   :  { %v2951_v7 = vpop.f32.mrb[190].mxu1  ;;  %v3200_v9 = vsel %vm1394_vm4, %v3073_v32, 0.0 }
 0x42f   :  { %v2952_v21 = vadd.f32 %v2951_v7, %v1526_v43  ;;  %3201 = vadd.xlane.f32.xlu0 %v3200_v9  ;;  %v4506_v28 = vpop.f32.mrb[191].mxu1  ;;  %4812 = vtanh.f32 %v2949_v42 }
 0x430   :  { %v3094_v42 = vpop.xlane.xlu0 %3093 }
 0x431   :  { %v4809_v58 = vpop.eup %4808  ;;  %4814 = vtanh.f32 %v2952_v21 }
 0x432   :  { %v3074_v63 = vmul.f32 %v7287_v52, %v4809_v58  ;;  %v7400_v22 = vpop.xlane.xlu1 %3096 }
 0x433   :  { %v4811_v55 = vpop.eup %4810 }
 0x434   :  { %v2956_v62 = vpop.f32.mrb[192].mxu1  ;;  %v3203_v31 = vsel %vm1394_vm4, %v3074_v63, 0.0  ;;  %v3075_v18 = vmul.f32 %v7287_v52, %v4811_v55  ;;  %v3100_v21 = vpop.xlane.xlu0 %3099 }
 0x435   :  { %v2957_v57 = vadd.f32 %v2956_v62, %v1529_v38  ;;  %v4509_v14 = vpop.f32.mrb[193].mxu1  ;;  %3204 = vadd.xlane.f32.xlu1 %v3203_v31 }
 0x436   :  { %v2959_v12 = vpop.f32.mrb[194].mxu1  ;;  %v3206_v49 = vsel %vm1394_vm4, %v3075_v18, 0.0 }
 0x437   :  { %v2960_v44 = vadd.f32 %v2959_v12, %v1532_v33  ;;  %v4510_v39 = vpop.f32.mrb[195].mxu1  ;;  %4816 = vtanh.f32 %v2957_v57  ;;  %3207 = vadd.xlane.f32.xlu0 %v3206_v49  ;;  %v7422_v57 = vstv %s4669_s8 }
 0x438   :  { %v3243_v33 = vsub.f32 %v3085_v37, %v7422_v57 }
 0x439   :  { %v4813_v4 = vpop.eup %4812  ;;  %4818 = vtanh.f32 %v2960_v44 }
 0x43a   :  { %v3076_v36 = vmul.f32 %v7287_v52, %v4813_v4  ;;  %v7405_v7 = vpop.xlane.xlu1 %3102 }
 0x43b   :  { %v4815_v60 = vpop.eup %4814 }
 0x43c   :  { %v2964_v10 = vpop.f32.mrb[196].mxu1  ;;  %v3209_v19 = vsel %vm1394_vm4, %v3076_v36, 0.0  ;;  %v3077_v40 = vmul.f32 %v7287_v52, %v4815_v60  ;;  %v7411_v58 = vpop.xlane.xlu0 %3105  ;;  %v3292_v36 = vmul.f32 1.442695, %v3243_v33  ;;  %v3246_v60 = vsub.f32 %v3094_v42, %v7422_v57 }
 0x43d   :  { %v2965_v54 = vadd.f32 %v2964_v10, %v1535_v59  ;;  %v4513_v1 = vpop.f32.mrb[197].mxu1  ;;  %3210 = vadd.xlane.f32.xlu1 %v3209_v19  ;;  %v3245_v10 = vsub.f32 %v3091_v23, %v7422_v57 }
 0x43e   :  { %v2967_v47 = vpop.f32.mrb[198].mxu1  ;;  %v3212_v15 = vsel %vm1394_vm4, %v3077_v40, 0.0  ;;  %v3298_v19 = vmul.f32 1.442695, %v3246_v60 }
 0x43f   :  { %v2968_v30 = vadd.f32 %v2967_v47, %v1538_v3  ;;  %v4514_v20 = vpop.f32.mrb[199].mxu1  ;;  %4820 = vtanh.f32 %v2965_v54  ;;  %3213 = vadd.xlane.f32.xlu0 %v3212_v15 }
 0x440   :  { %v3248_v20 = vsub.f32 %v3100_v21, %v7422_v57 }
 0x441   :  { %v4817_v35 = vpop.eup %4816  ;;  %4822 = vtanh.f32 %v2968_v30  ;;  %v3296_v30 = vmul.f32 1.442695, %v3245_v10 }
 0x442   :  { %v3078_v41 = vmul.f32 %v7287_v52, %v4817_v35  ;;  %v7408_v5 = vpop.xlane.xlu1 %3108 }
 0x443   :  { %v4819_v16 = vpop.eup %4818 }
 0x444   :  { %v2972_v17 = vpop.f32.mrb[200].mxu1  ;;  %v3215_v0 = vsel %vm1394_vm4, %v3078_v41, 0.0  ;;  %v3079_v51 = vmul.f32 %v7287_v52, %v4819_v16  ;;  %v7416_v55 = vpop.xlane.xlu0 %3111  ;;  %v3247_v41 = vsub.f32 %v7400_v22, %v7422_v57  ;;  %v3250_v22 = vsub.f32 %v7411_v58, %v7422_v57 }
 0x445   :  { %v2973_v61 = vadd.f32 %v2972_v17, %v1541_v50  ;;  %v4517_v46 = vpop.f32.mrb[201].mxu1  ;;  %3216 = vadd.xlane.f32.xlu1 %v3215_v0  ;;  %v572_v50 = vadd.s32 384, %v8443_v26 }
 0x446   :  { %v2975_v53 = vpop.f32.mrb[202].mxu1  ;;  %v3218_v25 = vsel %vm1394_vm4, %v3079_v51, 0.0  ;;  %v3306_v21 = vmul.f32 1.442695, %v3250_v22 }
 0x447   :  { %v4518_v8 = vpop.f32.mrb[203].mxu1  ;;  %4824 = vtanh.f32 %v2973_v61  ;;  %3219 = vadd.xlane.f32.xlu0 %v3218_v25  ;;  %v3302_v61 = vmul.f32 1.442695, %v3248_v20  ;;  %vm583_vm3 = vcmp.lt.s32.totalorder %v572_v50, %v7377_v27  ;;  %v3300_v25 = vmul.f32 1.442695, %v3247_v41 }
 0x449   :  { %v4821_v13 = vpop.eup %4820 }
 0x44a   :  { %v3080_v34 = vmul.f32 %v7287_v52, %v4821_v13  ;;  %v7414_v63 = vpop.xlane.xlu1 %3114 }
 0x44b   :  { %v4823_v32 = vpop.eup %4822 }
 0x44c   :  { %v3221_v56 = vsel %vm1394_vm4, %v3080_v34, 0.0  ;;  %v3081_v43 = vmul.f32 %v7287_v52, %v4823_v32  ;;  %v7420_v62 = vpop.xlane.xlu0 %3117 }
 0x44d   :  { %3222 = vadd.xlane.f32.xlu1 %v3221_v56 }
 0x44e   :  { %v3224_v9 = vsel %vm1394_vm4, %v3081_v43, 0.0 }
 0x44f   :  { %3225 = vadd.xlane.f32.xlu0 %v3224_v9 }
 0x451   :  { %v4825_v28 = vpop.eup %4824 }
 0x452   :  { %v3082_v24 = vmul.f32 %v7287_v52, %v4825_v28  ;;  %v7418_v38 = vpop.xlane.xlu1 %3120  ;;  %v3244_v52 = vsub.f32 %v3088_v45, %v7422_v57 }
 0x453   :  { %v3255_v22 = vsub.f32 %v7418_v38, %v7422_v57 }
 0x454   :  { %v3227_v11 = vsel %vm1394_vm4, %v3082_v24, 0.0  ;;  %v7427_v14 = vpop.xlane.xlu0 %3123  ;;  %v3294_v18 = vmul.f32 1.442695, %v3244_v52  ;;  %vm577_vm4 = vcmp.ge.s32.totalorder %v572_v50, %v7375_v6 }
 0x455   :  { %3228 = vadd.xlane.f32.xlu1 %v3227_v11  ;;  %vm587_vm5 = vmand %vm577_vm4, %vm583_vm3 }
 0x456   :  { %4826 = vpow2.f32 %v3294_v18  ;;  %v591_v13 = vsel %vm587_vm5, 1.0, %v8165_v48  ;;  %v3249_v48 = vsub.f32 %v7405_v7, %v7422_v57  ;;  %v3252_v7 = vsub.f32 %v7416_v55, %v7422_v57  ;;  %vm8469_vm4 = vmmov %vm8451_vm2 }
 0x457   :  { %v7453_v32 = vpack.c.bf16 %v591_v13, %v591_v13  ;;  %vm8493_vm3 = vmmov %vm8464_vm1 }
 0x458   :  { %v3304_v18 = vmul.f32 1.442695, %v3249_v48  ;;  %vm8498_vm5 = vmmov %vm8451_vm2 }
 0x459   :  { %4074 = vmatprep.mubr.msk.bf16.mxu0 %vm8446_vm12, %v7453_v32  ;;  %vm8522_vm12 = vmmov %vm8464_vm1 }
 0x45a   :  { %v7424_v31 = vpop.xlane.xlu1 %3126 }
 0x460   :  { %v4827_v35 = vpop.eup %4826 }
 0x462   :  { %v3133_v12 = vpop.xlane.xlu1 %3132 }
 0x463   :  { %v3259_v44 = vsub.f32 %v3133_v12, %v7422_v57 }
 0x464   :  { %v3136_v39 = vpop.xlane.xlu0 %3135 }
 0x465   :  { %v3324_v49 = vmul.f32 1.442695, %v3259_v44  ;;  %v3260_v4 = vsub.f32 %v3136_v39, %v7422_v57 }
 0x467   :  { %v3326_v59 = vmul.f32 1.442695, %v3260_v4  ;;  %4828 = vpow2.f32 %v3324_v49  ;;  %v3251_v4 = vsub.f32 %v7408_v5, %v7422_v57  ;;  %v3254_v5 = vsub.f32 %v7420_v62, %v7422_v57 }
 0x469   :  { %4830 = vpow2.f32 %v3326_v59  ;;  %v3310_v59 = vmul.f32 1.442695, %v3252_v7 }
 0x46a   :  { %4832 = vpow2.f32 %v3292_v36  ;;  %v3139_v54 = vpop.xlane.xlu1 %3138 }
 0x46b   :  { %v3261_v1 = vsub.f32 %v3139_v54, %v7422_v57  ;;  %4834 = vpow2.f32 %v3298_v19 }
 0x46c   :  { %v3142_v3 = vpop.xlane.xlu0 %3141 }
 0x46d   :  { %v3328_v47 = vmul.f32 1.442695, %v3261_v1  ;;  %v3262_v40 = vsub.f32 %v3142_v3, %v7422_v57 }
 0x46f   :  { %v3330_v15 = vmul.f32 1.442695, %v3262_v40  ;;  %4836 = vpow2.f32 %v3328_v47  ;;  %v3308_v40 = vmul.f32 1.442695, %v3251_v4 }
 0x471   :  { %4838 = vpow2.f32 %v3330_v15  ;;  %v4829_v37 = vpop.eup %4828 }
 0x472   :  { %4840 = vpow2.f32 %v3296_v30  ;;  %v3145_v16 = vpop.xlane.xlu1 %3144 }
 0x473   :  { %v4831_v17 = vpop.eup %4830  ;;  %v3263_v0 = vsub.f32 %v3145_v16, %v7422_v57  ;;  %4842 = vpow2.f32 %v3302_v61  ;;  %v3314_v16 = vmul.f32 1.442695, %v3254_v5 }
 0x474   :  { %v4833_v46 = vpop.eup %4832  ;;  %v3148_v23 = vpop.xlane.xlu0 %3147  ;;  %v7441_v53 = vpack.c.bf16 %v4831_v17, %v4829_v37 }
 0x475   :  { %v3332_v51 = vmul.f32 1.442695, %v3263_v0  ;;  %v3264_v8 = vsub.f32 %v3148_v23, %v7422_v57  ;;  %v7446_v45 = vpack.c.bf16 %v4827_v35, %v4833_v46  ;;  %v4835_v42 = vpop.eup %4834  ;;  %v3253_v35 = vsub.f32 %v7414_v63, %v7422_v57 }
 0x476   :  { %4167 = vmatprep.subr.bf16.mxu1 %v7441_v53  ;;  %v3256_v63 = vsub.f32 %v7427_v14, %v7422_v57 }
 0x477   :  { %v3334_v34 = vmul.f32 1.442695, %v3264_v8  ;;  %4168 = vmatpush3.bf16.msra.mxu1 %v7446_v45  ;;  %4844 = vpow2.f32 %v3332_v51  ;;  %v3312_v51 = vmul.f32 1.442695, %v3253_v35 }
 0x479   :  { %4846 = vpow2.f32 %v3334_v34  ;;  %v4837_v56 = vpop.eup %4836 }
 0x47a   :  { %4848 = vpow2.f32 %v3300_v25  ;;  %v3151_v43 = vpop.xlane.xlu1 %3150 }
 0x47b   :  { %v4839_v9 = vpop.eup %4838  ;;  %v3265_v28 = vsub.f32 %v3151_v43, %v7422_v57  ;;  %4850 = vpow2.f32 %v3306_v21 }
 0x47c   :  { %v4841_v24 = vpop.eup %4840  ;;  %v3154_v58 = vpop.xlane.xlu0 %3153  ;;  %v7460_v11 = vpack.c.bf16 %v4839_v9, %v4837_v56  ;;  %v3318_v56 = vmul.f32 1.442695, %v3256_v63 }
 0x47d   :  { %v3336_v52 = vmul.f32 1.442695, %v3265_v28  ;;  %v3266_v33 = vsub.f32 %v3154_v58, %v7422_v57  ;;  %v7463_v12 = vpack.c.bf16 %v4835_v42, %v4841_v24  ;;  %v4843_v39 = vpop.eup %4842  ;;  %v3316_v58 = vmul.f32 1.442695, %v3255_v22 }
 0x47e   :  { %4169 = vmatprep.subr.bf16.mxu1 %v7460_v11 }
 0x47f   :  { %v3338_v44 = vmul.f32 1.442695, %v3266_v33  ;;  %4170 = vmatpush3.bf16.msra.mxu1 %v7463_v12  ;;  %4852 = vpow2.f32 %v3336_v52 }
 0x481   :  { %4854 = vpow2.f32 %v3338_v44  ;;  %v4845_v49 = vpop.eup %4844 }
 0x482   :  { %4856 = vpow2.f32 %v3304_v18  ;;  %v3157_v36 = vpop.xlane.xlu1 %3156 }
 0x483   :  { %v4847_v60 = vpop.eup %4846  ;;  %v3267_v10 = vsub.f32 %v3157_v36, %v7422_v57  ;;  %4858 = vpow2.f32 %v3310_v59 }
 0x484   :  { %v4849_v54 = vpop.eup %4848  ;;  %v3160_v19 = vpop.xlane.xlu0 %3159  ;;  %v7472_v1 = vpack.c.bf16 %v4847_v60, %v4845_v49  ;;  %v3257_v49 = vsub.f32 %v7424_v31, %v7422_v57 }
 0x485   :  { %v3340_v55 = vmul.f32 1.442695, %v3267_v10  ;;  %v3268_v3 = vsub.f32 %v3160_v19, %v7422_v57  ;;  %v7475_v47 = vpack.c.bf16 %v4843_v39, %v4849_v54  ;;  %v4851_v20 = vpop.eup %4850 }
 0x486   :  { %4171 = vmatprep.subr.bf16.mxu1 %v7472_v1  ;;  %v3320_v19 = vmul.f32 1.442695, %v3257_v49 }
 0x487   :  { %v3342_v30 = vmul.f32 1.442695, %v3268_v3  ;;  %4172 = vmatpush3.bf16.msra.mxu1 %v7475_v47  ;;  %4860 = vpow2.f32 %v3340_v55 }
 0x489   :  { %4862 = vpow2.f32 %v3342_v30  ;;  %v4853_v15 = vpop.eup %4852 }
 0x48a   :  { %4864 = vpow2.f32 %v3308_v40  ;;  %v3163_v37 = vpop.xlane.xlu1 %3162 }
 0x48b   :  { %v4855_v41 = vpop.eup %4854  ;;  %v3269_v50 = vsub.f32 %v3163_v37, %v7422_v57  ;;  %4866 = vpow2.f32 %v3314_v16 }
 0x48c   :  { %v4857_v17 = vpop.eup %4856  ;;  %v3166_v61 = vpop.xlane.xlu0 %3165  ;;  %v7484_v0 = vpack.c.bf16 %v4855_v41, %v4853_v15 }
 0x48d   :  { %v3344_v62 = vmul.f32 1.442695, %v3269_v50  ;;  %v3270_v46 = vsub.f32 %v3166_v61, %v7422_v57  ;;  %v7487_v23 = vpack.c.bf16 %v4851_v20, %v4857_v17  ;;  %v4859_v25 = vpop.eup %4858 }
 0x48e   :  { %4173 = vmatprep.subr.bf16.mxu1 %v7484_v0 }
 0x48f   :  { %v3346_v8 = vmul.f32 1.442695, %v3270_v46  ;;  %4174 = vmatpush3.bf16.msra.mxu1 %v7487_v23  ;;  %4868 = vpow2.f32 %v3344_v62 }
 0x491   :  { %4870 = vpow2.f32 %v3346_v8  ;;  %v4861_v13 = vpop.eup %4860 }
 0x492   :  { %4872 = vpow2.f32 %v3312_v51  ;;  %v3169_v34 = vpop.xlane.xlu1 %3168 }
 0x493   :  { %v4863_v42 = vpop.eup %4862  ;;  %v3271_v48 = vsub.f32 %v3169_v34, %v7422_v57  ;;  %4874 = vpow2.f32 %v3318_v56 }
 0x494   :  { %v4865_v43 = vpop.eup %4864  ;;  %v3172_v9 = vpop.xlane.xlu0 %3171  ;;  %v7496_v21 = vpack.c.bf16 %v4863_v42, %v4861_v13 }
 0x495   :  { %v3348_v14 = vmul.f32 1.442695, %v3271_v48  ;;  %v3272_v28 = vsub.f32 %v3172_v9, %v7422_v57  ;;  %v7499_v24 = vpack.c.bf16 %v4859_v25, %v4865_v43  ;;  %v4867_v38 = vpop.eup %4866 }
 0x496   :  { %4175 = vmatprep.subr.bf16.mxu1 %v7496_v21 }
 0x497   :  { %v3350_v52 = vmul.f32 1.442695, %v3272_v28  ;;  %4176 = vmatpush3.bf16.msra.mxu1 %v7499_v24  ;;  %4876 = vpow2.f32 %v3348_v14 }
 0x499   :  { %4878 = vpow2.f32 %v3350_v52  ;;  %v4869_v33 = vpop.eup %4868  ;;  %v8449_v52 = vmov 0  }
 0x49a   :  { %4880 = vpow2.f32 %v3316_v58  ;;  %v3175_v18 = vpop.xlane.xlu1 %3174 }
 0x49b   :  { %v4871_v7 = vpop.eup %4870  ;;  %v3273_v44 = vsub.f32 %v3175_v18, %v7422_v57 }
 0x49c   :  { %v4873_v39 = vpop.eup %4872  ;;  %v3178_v4 = vpop.xlane.xlu0 %3177  ;;  %v7506_v36 = vpack.c.bf16 %v4871_v7, %v4869_v33 }
 0x49d   :  { %v3352_v60 = vmul.f32 1.442695, %v3273_v44  ;;  %v3274_v59 = vsub.f32 %v3178_v4, %v7422_v57  ;;  %v7509_v10 = vpack.c.bf16 %v4867_v38, %v4873_v39  ;;  %v4875_v3 = vpop.eup %4874  ;;  %v8450_v44 = vld [vmem:[#allocation41_spill] sm:$0xff] }
 0x49e   :  { %4177 = vmatprep.subr.bf16.mxu1 %v7506_v36 }
 0x49f   :  { %v3354_v54 = vmul.f32 1.442695, %v3274_v59  ;;  %4178 = vmatpush3.bf16.msra.mxu1 %v7509_v10  ;;  %4882 = vpow2.f32 %v3352_v60 }
 0x4a0   :  { %v3130_v55 = vpop.xlane.xlu0 %3129 }
 0x4a1   :  { %4884 = vpow2.f32 %v3354_v54  ;;  %v3258_v31 = vsub.f32 %v3130_v55, %v7422_v57  ;;  %v4877_v40 = vpop.eup %4876 }
 0x4a2   :  { %v3181_v5 = vpop.xlane.xlu1 %3180  ;;  %4886 = vpow2.f32 %v3320_v19 }
 0x4a3   :  { %v4879_v30 = vpop.eup %4878  ;;  %v3322_v20 = vmul.f32 1.442695, %v3258_v31  ;;  %v3275_v15 = vsub.f32 %v3181_v5, %v7422_v57 }
 0x4a4   :  { %v4881_v35 = vpop.eup %4880  ;;  %v3184_v37 = vpop.xlane.xlu0 %3183  ;;  %v7515_v41 = vpack.c.bf16 %v4879_v30, %v4877_v40  ;;  %v8452_v40 = vld [vmem:[#allocation43_spill] sm:$0xff] }
 0x4a5   :  { %4888 = vpow2.f32 %v3322_v20  ;;  %v3356_v16 = vmul.f32 1.442695, %v3275_v15  ;;  %v3276_v50 = vsub.f32 %v3184_v37, %v7422_v57  ;;  %v7518_v17 = vpack.c.bf16 %v4875_v3, %v4881_v35 }
 0x4a6   :  { %4179 = vmatprep.subr.bf16.mxu1 %v7515_v41 }
 0x4a7   :  { %v3358_v61 = vmul.f32 1.442695, %v3276_v50  ;;  %4180 = vmatpush3.bf16.msra.mxu1 %v7518_v17  ;;  %4890 = vpow2.f32 %v3356_v16 }
 0x4a9   :  { %4892 = vpow2.f32 %v3358_v61  ;;  %v4883_v62 = vpop.eup %4882 }
 0x4aa   :  { %v3187_v46 = vpop.xlane.xlu1 %3186 }
 0x4ab   :  { %v4885_v51 = vpop.eup %4884  ;;  %v3277_v63 = vsub.f32 %v3187_v46, %v7422_v57 }
 0x4ac   :  { %v3190_v8 = vpop.xlane.xlu0 %3189  ;;  %v7523_v25 = vpack.c.bf16 %v4885_v51, %v4883_v62  ;;  %v4887_v34 = vpop.eup %4886  ;;  %v8453_v62 = vld [vmem:[#allocation45_spill] sm:$0xff] }
 0x4ad   :  { %v3360_v13 = vmul.f32 1.442695, %v3277_v63  ;;  %v3278_v22 = vsub.f32 %v3190_v8, %v7422_v57 }
 0x4ae   :  { %4181 = vmatprep.subr.bf16.mxu1 %v7523_v25 }
 0x4af   :  { %v4889_v42 = vpop.eup %4888  ;;  %v3362_v56 = vmul.f32 1.442695, %v3278_v22  ;;  %4894 = vpow2.f32 %v3360_v13 }
 0x4b0   :  { %v7531_v48 = vpack.c.bf16 %v4889_v42, %v4887_v34 }
 0x4b1   :  { %4896 = vpow2.f32 %v3362_v56  ;;  %v4891_v43 = vpop.eup %4890 }
 0x4b2   :  { %4182 = vmatpush3.bf16.msra.mxu1 %v7531_v48  ;;  %v3193_v9 = vpop.xlane.xlu1 %3192 }
 0x4b3   :  { %v4893_v28 = vpop.eup %4892  ;;  %v3279_v58 = vsub.f32 %v3193_v9, %v7422_v57  ;;  %3461 = vmatprep.subr.bf16.mxu1 %v8449_v52  ;;  %v8454_v9 = vld [vmem:[#allocation47_spill] sm:$0xff] }
 0x4b4   :  { %v3196_v38 = vpop.xlane.xlu0 %3195  ;;  %v7540_v33 = vpack.c.bf16 %v4893_v28, %v4891_v43 }
 0x4b5   :  { %v3364_v18 = vmul.f32 1.442695, %v3279_v58  ;;  %v3280_v7 = vsub.f32 %v3196_v38, %v7422_v57  ;;  %4066 = vmatmul.mubr.msk.bf16.vlgmr.msra.gmra.mrb[204].mxu1 %vm7534_vm7, %v4984_v2 }
 0x4b6   :  { %3462 = vmatpush1.bf16.msra.mxu1 %v7540_v33  ;;  %v3518_v39 = vmul.bf16 %v7540_v33, %v8450_v44  ;;  %4067 = vmatprep.mubr.msk.bf16.mxu1 %vm8451_vm2, %v7453_v32 }
 0x4b7   :  { %v3366_v49 = vmul.f32 1.442695, %v3280_v7  ;;  %3463 = vmatprep.subr.bf16.mxu1 %v8449_v52  ;;  %4898 = vpow2.f32 %v3364_v18 }
 0x4b8   :  { %3571 = vmatpush1.bf16.msra.mxu0 %v3518_v39 }
 0x4b9   :  { %4900 = vpow2.f32 %v3366_v49  ;;  %3572 = vmatprep.subr.bf16.mxu0 %v8449_v52  ;;  %v4895_v4 = vpop.eup %4894 }
 0x4ba   :  { %v3199_v60 = vpop.xlane.xlu1 %3198 }
 0x4bb   :  { %v4897_v59 = vpop.eup %4896  ;;  %v3281_v54 = vsub.f32 %v3199_v60, %v7422_v57 }
 0x4bc   :  { %v3202_v19 = vpop.xlane.xlu0 %3201  ;;  %v7554_v55 = vpack.c.bf16 %v4897_v59, %v4895_v4 }
 0x4bd   :  { %v3368_v3 = vmul.f32 1.442695, %v3281_v54  ;;  %v3282_v31 = vsub.f32 %v3202_v19, %v7422_v57  ;;  %v8455_v54 = vld [vmem:[#allocation49_spill] sm:$0xff] }
 0x4be   :  { %3464 = vmatpush1.bf16.msra.mxu1 %v7554_v55  ;;  %v3519_v5 = vmul.bf16 %v7554_v55, %v8452_v40 }
 0x4bf   :  { %v3370_v30 = vmul.f32 1.442695, %v3282_v31  ;;  %3465 = vmatprep.subr.bf16.mxu1 %v8449_v52  ;;  %4902 = vpow2.f32 %v3368_v3 }
 0x4c0   :  { %3573 = vmatpush1.bf16.msra.mxu0 %v3519_v5 }
 0x4c1   :  { %4904 = vpow2.f32 %v3370_v30  ;;  %3574 = vmatprep.subr.bf16.mxu0 %v8449_v52  ;;  %v4899_v20 = vpop.eup %4898 }
 0x4c2   :  { %v3205_v35 = vpop.xlane.xlu1 %3204 }
 0x4c3   :  { %v4901_v15 = vpop.eup %4900  ;;  %v3283_v37 = vsub.f32 %v3205_v35, %v7422_v57 }
 0x4c4   :  { %v7563_v16 = vpack.c.bf16 %v4901_v15, %v4899_v20  ;;  %v3208_v61 = vpop.xlane.xlu0 %3207 }
 0x4c5   :  { %v3372_v50 = vmul.f32 1.442695, %v3283_v37  ;;  %v3284_v51 = vsub.f32 %v3208_v61, %v7422_v57  ;;  %v8456_v61 = vld [vmem:[#allocation51_spill] sm:$0xff] }
 0x4c6   :  { %3466 = vmatpush1.bf16.msra.mxu1 %v7563_v16  ;;  %v3520_v46 = vmul.bf16 %v7563_v16, %v8453_v62 }
 0x4c7   :  { %3467 = vmatprep.subr.bf16.mxu1 %v8449_v52  ;;  %v3374_v63 = vmul.f32 1.442695, %v3284_v51  ;;  %4906 = vpow2.f32 %v3372_v50 }
 0x4c8   :  { %3575 = vmatpush1.bf16.msra.mxu0 %v3520_v46 }
 0x4c9   :  { %3576 = vmatprep.subr.bf16.mxu0 %v8449_v52  ;;  %v4903_v8 = vpop.eup %4902  ;;  %4908 = vpow2.f32 %v3374_v63 }
 0x4ca   :  { %v3211_v22 = vpop.xlane.xlu1 %3210 }
 0x4cb   :  { %v4905_v13 = vpop.eup %4904  ;;  %v3285_v34 = vsub.f32 %v3211_v22, %v7422_v57 }
 0x4cc   :  { %v7572_v42 = vpack.c.bf16 %v4905_v13, %v4903_v8  ;;  %v3214_v43 = vpop.xlane.xlu0 %3213 }
 0x4cd   :  { %v3376_v56 = vmul.f32 1.442695, %v3285_v34  ;;  %v3286_v58 = vsub.f32 %v3214_v43, %v7422_v57  ;;  %v8457_v34 = vld [vmem:[#allocation53_spill] sm:$0xff] }
 0x4ce   :  { %3468 = vmatpush1.bf16.msra.mxu1 %v7572_v42  ;;  %v3521_v28 = vmul.bf16 %v7572_v42, %v8454_v9 }
 0x4cf   :  { %3469 = vmatprep.subr.bf16.mxu1 %v8449_v52  ;;  %v3378_v38 = vmul.f32 1.442695, %v3286_v58  ;;  %4910 = vpow2.f32 %v3376_v56  ;;  %v8458_v58 = vld [vmem:[#allocation55_spill] sm:$0xff] }
 0x4d0   :  { %3577 = vmatpush1.bf16.msra.mxu0 %v3521_v28  ;;  %v571_v28 = vadd.s32 256, %v8443_v26 }
 0x4d1   :  { %3578 = vmatprep.subr.bf16.mxu0 %v8449_v52  ;;  %4912 = vpow2.f32 %v3378_v38  ;;  %v4907_v7 = vpop.eup %4906 }
 0x4d2   :  { %v3217_v18 = vpop.xlane.xlu1 %3216  ;;  %vm576_vm13 = vcmp.ge.s32.totalorder %v571_v28, %v7375_v6  ;;  %vm582_vm0 = vcmp.lt.s32.totalorder %v571_v28, %v7377_v27 }
 0x4d3   :  { %v3287_v44 = vsub.f32 %v3217_v18, %v7422_v57  ;;  %v4909_v39 = vpop.eup %4908  ;;  %vm586_vm10 = vmand %vm576_vm13, %vm582_vm0 }
 0x4d4   :  { %v3220_v4 = vpop.xlane.xlu0 %3219  ;;  %v7581_v60 = vpack.c.bf16 %v4909_v39, %v4907_v7  ;;  %vm7624_vm14 = vmpackc.low %vm586_vm10, %vm586_vm10 }
 0x4d5   :  { %v3380_v49 = vmul.f32 1.442695, %v3287_v44  ;;  %v3288_v59 = vsub.f32 %v3220_v4, %v7422_v57  ;;  %v8460_v44 = vld [vmem:[#allocation25_spill] sm:$0xff] }
 0x4d6   :  { %3470 = vmatpush1.bf16.msra.mxu1 %v7581_v60  ;;  %v3522_v19 = vmul.bf16 %v7581_v60, %v8455_v54  ;;  %v3510_v39 = vmul.bf16 %v7441_v53, %v8460_v44  ;;  %v8480_v44 = vld [vmem:[#allocation48_spill] sm:$0xff] }
 0x4d7   :  { %v3382_v3 = vmul.f32 1.442695, %v3288_v59  ;;  %3471 = vmatprep.subr.bf16.mxu1 %v8449_v52  ;;  %4914 = vpow2.f32 %v3380_v49  ;;  %v8461_v49 = vld [vmem:[#allocation57_spill] sm:$0xff] }
 0x4d8   :  { %3579 = vmatpush1.bf16.msra.mxu0 %v3522_v19  ;;  %v8465_v59 = vld [vmem:[#allocation9_spill] sm:$0xff]  ;;  %v8466_v19 = vld [vmem:[#allocation27_spill] sm:$0xff] }
 0x4d9   :  { %4916 = vpow2.f32 %v3382_v3  ;;  %3580 = vmatprep.subr.bf16.mxu0 %v8449_v52  ;;  %v4911_v40 = vpop.eup %4910  ;;  %v3502_v54 = vmul.bf16 %v7446_v45, %v8465_v59  ;;  %v3511_v3 = vmul.bf16 %v7460_v11, %v8466_v19 }
 0x4da   :  { %v3223_v31 = vpop.xlane.xlu1 %3222 }
 0x4db   :  { %v3289_v5 = vsub.f32 %v3223_v31, %v7422_v57  ;;  %v4913_v30 = vpop.eup %4912  ;;  %v8467_v31 = vld [vmem:[#allocation40_spill] sm:$0xff] }
 0x4dc   :  { %v3226_v20 = vpop.xlane.xlu0 %3225  ;;  %v7591_v37 = vpack.c.bf16 %v4913_v30, %v4911_v40  ;;  %v3633_v40 = vmul.bf16 %v7540_v33, %v8467_v31 }
 0x4dd   :  { %v3384_v15 = vmul.f32 1.442695, %v3289_v5  ;;  %v3290_v35 = vsub.f32 %v3226_v20, %v7422_v57  ;;  %v8468_v5 = vld [vmem:[#allocation11_spill] sm:$0xff]  ;;  %v8470_v20 = vld [vmem:[#allocation29_spill] sm:$0xff] }
 0x4de   :  { %3472 = vmatpush1.bf16.msra.mxu1 %v7591_v37  ;;  %v3523_v62 = vmul.bf16 %v7591_v37, %v8456_v61  ;;  %v3503_v30 = vmul.bf16 %v7463_v12, %v8468_v5  ;;  %v8472_v61 = vld [vmem:[#allocation13_spill] sm:$0xff] }
 0x4df   :  { %v3386_v50 = vmul.f32 1.442695, %v3290_v35  ;;  %4918 = vpow2.f32 %v3384_v15  ;;  %3473 = vmatprep.subr.bf16.mxu1 %v8449_v52  ;;  %v3512_v15 = vmul.bf16 %v7472_v1, %v8470_v20  ;;  %v8471_v35 = vld [vmem:[#allocation42_spill] sm:$0xff] }
 0x4e0   :  { %3581 = vmatpush1.bf16.msra.mxu0 %v3523_v62  ;;  %v3504_v62 = vmul.bf16 %v7475_v47, %v8472_v61 }
 0x4e1   :  { %4920 = vpow2.f32 %v3386_v50  ;;  %3582 = vmatprep.subr.bf16.mxu0 %v8449_v52  ;;  %v4915_v51 = vpop.eup %4914  ;;  %v3634_v50 = vmul.bf16 %v7554_v55, %v8471_v35 }
 0x4e2   :  { %v3229_v46 = vpop.xlane.xlu1 %3228 }
 0x4e3   :  { %v3291_v63 = vsub.f32 %v3229_v46, %v7422_v57  ;;  %v4917_v8 = vpop.eup %4916  ;;  %v8473_v46 = vld [vmem:[#allocation31_spill] sm:$0xff] }
 0x4e4   :  { %v7599_v22 = vpack.c.bf16 %v4917_v8, %v4915_v51  ;;  %v3513_v51 = vmul.bf16 %v7484_v0, %v8473_v46 }
 0x4e5   :  { %v3388_v13 = vmul.f32 1.442695, %v3291_v63  ;;  %v8474_v63 = vld [vmem:[#allocation44_spill] sm:$0xff] }
 0x4e6   :  { %3474 = vmatpush1.bf16.msra.mxu1 %v7599_v22  ;;  %v3524_v56 = vmul.bf16 %v7599_v22, %v8457_v34  ;;  %v3635_v8 = vmul.bf16 %v7563_v16, %v8474_v63 }
 0x4e7   :  { %4922 = vpow2.f32 %v3388_v13  ;;  %3475 = vmatprep.subr.bf16.mxu1 %v8449_v52  ;;  %v8475_v13 = vld [vmem:[#allocation15_spill] sm:$0xff] }
 0x4e8   :  { %3583 = vmatpush1.bf16.msra.mxu0 %v3524_v56  ;;  %v3505_v34 = vmul.bf16 %v7487_v23, %v8475_v13  ;;  %v8476_v56 = vld [vmem:[#allocation33_spill] sm:$0xff] }
 0x4e9   :  { %v4919_v43 = vpop.eup %4918  ;;  %3584 = vmatprep.subr.bf16.mxu0 %v8449_v52 }
 0x4eb   :  { %v4921_v9 = vpop.eup %4920 }
 0x4ec   :  { %v7607_v57 = vpack.c.bf16 %v4921_v9, %v4919_v43  ;;  %v3514_v43 = vmul.bf16 %v7496_v21, %v8476_v56  ;;  %v8477_v9 = vld [vmem:[#allocation46_spill] sm:$0xff] }
 0x4ed   :  { %v3636_v28 = vmul.bf16 %v7572_v42, %v8477_v9  ;;  %v8494_v9 = vld [vmem:[#allocation10_spill] sm:$0xff] }
 0x4ee   :  { %3476 = vmatpush1.bf16.msra.mxu1 %v7607_v57  ;;  %v3525_v38 = vmul.bf16 %v7607_v57, %v8458_v58  ;;  %v8478_v58 = vld [vmem:[#allocation17_spill] sm:$0xff] }
 0x4ef   :  { %3477 = vmatprep.subr.bf16.mxu1 %v8449_v52 }
 0x4f0   :  { %3585 = vmatpush1.bf16.msra.mxu0 %v3525_v38  ;;  %v3506_v38 = vmul.bf16 %v7499_v24, %v8478_v58  ;;  %v8495_v58 = vld [vmem:[#allocation28_spill] sm:$0xff] }
 0x4f1   :  { %v4923_v18 = vpop.eup %4922  ;;  %3586 = vmatprep.subr.bf16.mxu0 %v8449_v52 }
 0x4f2   :  { %v7616_v7 = vpack.c.bf16 %v4923_v18, %v4923_v18  ;;  %v8479_v18 = vld [vmem:[#allocation35_spill] sm:$0xff] }
 0x4f4   :  { %v3419_v26 = vsel %vm8459_vm8, %v7616_v7, 0  ;;  %v3526_v4 = vmul.bf16 %v7616_v7, %v8461_v49  ;;  %v8481_v49 = vld [vmem:[#allocation19_spill] sm:$0xff] }
 0x4f5   :  { %3478 = vmatpush1.bf16.msra.mxu1 %v3419_v26  ;;  %v3515_v26 = vmul.bf16 %v7506_v36, %v8479_v18  ;;  %v8496_v18 = vld [vmem:[#allocation104_spill] sm:$0xff] }
 0x4f6   :  { %4189 = vmatprep.subr.bf16.mxu1 %v3510_v39  ;;  %v3528_v27 = vsel %vm8464_vm1, %v3526_v4, 0  ;;  %v3637_v39 = vmul.bf16 %v7581_v60, %v8480_v44  ;;  %v3507_v4 = vmul.bf16 %v7509_v10, %v8481_v49  ;;  %v8497_v44 = vld [vmem:[#allocation12_spill] sm:$0xff]  ;;  %v8499_v49 = vld [vmem:[#allocation30_spill] sm:$0xff] }
 0x4f7   :  { %3587 = vmatpush1.bf16.msra.mxu0 %v3528_v27  ;;  %v8482_v27 = vld [vmem:[#allocation37_spill] sm:$0xff] }
 0x4f8   :  { %4069 = vmatmul.mubr.msk.bf16.vlgmr.msra.gmra.mrb[208].mxu1 %vm7624_vm14, %v4984_v2  ;;  %3685 = vmatprep.subr.bf16.mxu0 %v8449_v52  ;;  %v3516_v59 = vmul.bf16 %v7515_v41, %v8482_v27  ;;  %v8500_v27 = vld [vmem:[#allocation110_spill] sm:$0xff] }
 0x4f9   :  { %4190 = vmatpush3.bf16.msra.mxu1 %v3502_v54  ;;  %4071 = vmatprep.mubr.msk.bf16.mxu1 %vm7384_vm6, %v4984_v2  ;;  %v8483_v54 = vld [vmem:[#allocation50_spill] sm:$0xff] }
 0x4fa   :  { %4191 = vmatprep.subr.bf16.mxu1 %v3511_v3  ;;  %4076 = vmatmul.mubr.msk.bf16.vlgmr.msra.gmra.mrb[104].mxu0 %vm7624_vm14, %v4984_v2  ;;  %v3638_v19 = vmul.bf16 %v7591_v37, %v8483_v54  ;;  %v8484_v3 = vld [vmem:[#allocation21_spill] sm:$0xff]  ;;  %v8501_v54 = vld [vmem:[#allocation14_spill] sm:$0xff] }
 0x4fb   :  { %3686 = vmatpush1.bf16.msra.mxu0 %v3633_v40  ;;  %4081 = vmatprep.mubr.msk.bf16.mxu0 %vm8469_vm4, %v7453_v32  ;;  %v3508_v31 = vmul.bf16 %v7518_v17, %v8484_v3  ;;  %v8485_v40 = vld [vmem:[#allocation39_spill] sm:$0xff]  ;;  %v8502_v3 = vld [vmem:[#allocation32_spill] sm:$0xff] }
 0x4fc   :  { %3687 = vmatprep.subr.bf16.mxu0 %v8449_v52  ;;  %v3517_v5 = vmul.bf16 %v7523_v25, %v8485_v40  ;;  %v8503_v40 = vld [vmem:[#allocation116_spill] sm:$0xff] }
 0x4fd   :  { %4192 = vmatpush3.bf16.msra.mxu1 %v3503_v30  ;;  %v8486_v30 = vld [vmem:[#allocation52_spill] sm:$0xff] }
 0x4fe   :  { %4193 = vmatprep.subr.bf16.mxu1 %v3512_v15  ;;  %v3639_v20 = vmul.bf16 %v7599_v22, %v8486_v30  ;;  %v8487_v15 = vld [vmem:[#allocation23_spill] sm:$0xff]  ;;  %v8504_v30 = vld [vmem:[#allocation16_spill] sm:$0xff] }
 0x4ff   :  { %3688 = vmatpush1.bf16.msra.mxu0 %v3634_v50  ;;  %v3509_v35 = vmul.bf16 %v7531_v48, %v8487_v15  ;;  %v8488_v50 = vld [vmem:[#allocation24_spill] sm:$0xff]  ;;  %v8505_v15 = vld [vmem:[#allocation34_spill] sm:$0xff] }
 0x500   :  { %3689 = vmatprep.subr.bf16.mxu0 %v8449_v52  ;;  %v3625_v61 = vmul.bf16 %v7441_v53, %v8488_v50  ;;  %v8506_v50 = vld [vmem:[#allocation122_spill] sm:$0xff] }
 0x501   :  { %4194 = vmatpush3.bf16.msra.mxu1 %v3504_v62  ;;  %v8489_v62 = vld [vmem:[#allocation54_spill] sm:$0xff] }
 0x502   :  { %4195 = vmatprep.subr.bf16.mxu1 %v3513_v51  ;;  %v3640_v46 = vmul.bf16 %v7607_v57, %v8489_v62  ;;  %v8490_v51 = vld [vmem:[#allocation56_spill] sm:$0xff]  ;;  %v8507_v62 = vld [vmem:[#allocation18_spill] sm:$0xff] }
 0x503   :  { %3690 = vmatpush1.bf16.msra.mxu0 %v3635_v8  ;;  %v3641_v63 = vmul.bf16 %v7616_v7, %v8490_v51  ;;  %v8491_v8 = vld [vmem:[#allocation8_spill] sm:$0xff] }
 0x504   :  { %3691 = vmatprep.subr.bf16.mxu0 %v8449_v52  ;;  %v3617_v13 = vmul.bf16 %v7446_v45, %v8491_v8  ;;  %v8508_v51 = vld [vmem:[#allocation36_spill] sm:$0xff] }
 0x505   :  { %4196 = vmatpush3.bf16.msra.mxu1 %v3505_v34  ;;  %v8492_v34 = vld [vmem:[#allocation26_spill] sm:$0xff]  ;;  %v8509_v8 = vld [vmem:[#allocation128_spill] sm:$0xff] }
 0x506   :  { %4197 = vmatprep.subr.bf16.mxu1 %v3514_v43  ;;  %v3626_v56 = vmul.bf16 %v7460_v11, %v8492_v34  ;;  %v3643_v43 = vsel %vm8493_vm3, %v3641_v63, 0  ;;  %v3631_v63 = vmul.bf16 %v7515_v41, %v8508_v51  ;;  %v8510_v34 = vld [vmem:[#allocation20_spill] sm:$0xff] }
 0x507   :  { %3692 = vmatpush1.bf16.msra.mxu0 %v3636_v28  ;;  %v3618_v28 = vmul.bf16 %v7463_v12, %v8494_v9  ;;  %v8525_v51 = vld [vmem:[#allocation100_spill] sm:$0xff] }
 0x508   :  { %3693 = vmatprep.subr.bf16.mxu0 %v8449_v52 }
 0x509   :  { %4198 = vmatpush3.bf16.msra.mxu1 %v3506_v38  ;;  %v3627_v38 = vmul.bf16 %v7472_v1, %v8495_v58 }
 0x50a   :  { %4199 = vmatprep.subr.bf16.mxu1 %v3515_v26  ;;  %v3743_v26 = vmul.bf16 %v7540_v33, %v8496_v18 }
 0x50b   :  { %3694 = vmatpush1.bf16.msra.mxu0 %v3637_v39  ;;  %v3619_v39 = vmul.bf16 %v7475_v47, %v8497_v44 }
 0x50c   :  { %3695 = vmatprep.subr.bf16.mxu0 %v8449_v52 }
 0x50d   :  { %4200 = vmatpush3.bf16.msra.mxu1 %v3507_v4  ;;  %v3628_v4 = vmul.bf16 %v7484_v0, %v8499_v49 }
 0x50e   :  { %4201 = vmatprep.subr.bf16.mxu1 %v3516_v59  ;;  %v3744_v59 = vmul.bf16 %v7554_v55, %v8500_v27 }
 0x50f   :  { %3696 = vmatpush1.bf16.msra.mxu0 %v3638_v19  ;;  %v3620_v19 = vmul.bf16 %v7487_v23, %v8501_v54 }
 0x510   :  { %3697 = vmatprep.subr.bf16.mxu0 %v8449_v52 }
 0x511   :  { %4202 = vmatpush3.bf16.msra.mxu1 %v3508_v31  ;;  %v3629_v31 = vmul.bf16 %v7496_v21, %v8502_v3 }
 0x512   :  { %4203 = vmatprep.subr.bf16.mxu1 %v3517_v5  ;;  %v3745_v5 = vmul.bf16 %v7563_v16, %v8503_v40 }
 0x513   :  { %3698 = vmatpush1.bf16.msra.mxu0 %v3639_v20  ;;  %v3621_v20 = vmul.bf16 %v7499_v24, %v8504_v30 }
 0x514   :  { %3699 = vmatprep.subr.bf16.mxu0 %v8449_v52 }
 0x515   :  { %4204 = vmatpush3.bf16.msra.mxu1 %v3509_v35  ;;  %v3630_v35 = vmul.bf16 %v7506_v36, %v8505_v15 }
 0x516   :  { %4211 = vmatprep.subr.bf16.mxu1 %v3625_v61  ;;  %v3746_v61 = vmul.bf16 %v7572_v42, %v8506_v50  ;;  %v8523_v50 = vld [vmem:[#allocation63_spill] sm:$0xff] }
 0x517   :  { %3700 = vmatpush1.bf16.msra.mxu0 %v3640_v46  ;;  %v3622_v46 = vmul.bf16 %v7509_v10, %v8507_v62  ;;  %v8524_v62 = vld [vmem:[#allocation81_spill] sm:$0xff] }
 0x518   :  { %4073 = vmatmul.mubr.msk.bf16.vlgmr.msra.gmra.mrb[212].mxu1 %vm7534_vm7, %v4984_v2  ;;  %3701 = vmatprep.subr.bf16.mxu0 %v8449_v52 }
 0x519   :  { %4212 = vmatpush3.bf16.msra.mxu1 %v3617_v13  ;;  %4078 = vmatprep.mubr.msk.bf16.mxu1 %vm7384_vm6, %v4984_v2  ;;  %v3747_v13 = vmul.bf16 %v7581_v60, %v8509_v8  ;;  %v8526_v8 = vld [vmem:[#allocation65_spill] sm:$0xff] }
 0x51a   :  { %4213 = vmatprep.subr.bf16.mxu1 %v3626_v56  ;;  %v3623_v56 = vmul.bf16 %v7518_v17, %v8510_v34  ;;  %v8528_v34 = vld [vmem:[#allocation84_spill] sm:$0xff] }
 0x51b   :  { %3702 = vmatpush1.bf16.msra.mxu0 %v3643_v43  ;;  %v8511_v43 = vld [vmem:[#allocation38_spill] sm:$0xff] }
 0x51c   :  { %3795 = vmatprep.subr.bf16.mxu0 %v8449_v52  ;;  %v3632_v9 = vmul.bf16 %v7523_v25, %v8511_v43  ;;  %v8529_v43 = vld [vmem:[#allocation106_spill] sm:$0xff] }
 0x51d   :  { %4214 = vmatpush3.bf16.msra.mxu1 %v3618_v28  ;;  %v8512_v28 = vld [vmem:[#allocation133_spill] sm:$0xff] }
 0x51e   :  { %4215 = vmatprep.subr.bf16.mxu1 %v3627_v38  ;;  %4083 = vmatmul.mubr.msk.bf16.vlgmr.msra.gmra.mrb[108].mxu0 %vm7624_vm14, %v4984_v2  ;;  %v3748_v58 = vmul.bf16 %v7591_v37, %v8512_v28  ;;  %v8513_v38 = vld [vmem:[#allocation22_spill] sm:$0xff] }
 0x51f   :  { %3796 = vmatpush1.bf16.msra.mxu0 %v3743_v26  ;;  %4088 = vmatprep.mubr.msk.bf16.mxu0 %vm8498_vm5, %v7453_v32  ;;  %v3624_v18 = vmul.bf16 %v7531_v48, %v8513_v38  ;;  %v8514_v26 = vld [vmem:[#allocation75_spill] sm:$0xff] }
 0x520   :  { %3797 = vmatprep.subr.bf16.mxu0 %v8449_v52  ;;  %v3735_v44 = vmul.bf16 %v7441_v53, %v8514_v26  ;;  %v8533_v26 = vld [vmem:[#allocation69_spill] sm:$0xff] }
 0x521   :  { %4216 = vmatpush3.bf16.msra.mxu1 %v3619_v39  ;;  %v8515_v39 = vld [vmem:[#allocation136_spill] sm:$0xff] }
 0x522   :  { %4217 = vmatprep.subr.bf16.mxu1 %v3628_v4  ;;  %v3749_v49 = vmul.bf16 %v7599_v22, %v8515_v39  ;;  %v8516_v4 = vld [vmem:[#allocation59_spill] sm:$0xff] }
 0x523   :  { %3798 = vmatpush1.bf16.msra.mxu0 %v3744_v59  ;;  %v3727_v27 = vmul.bf16 %v7446_v45, %v8516_v4  ;;  %v8517_v59 = vld [vmem:[#allocation77_spill] sm:$0xff] }
 0x524   :  { %3799 = vmatprep.subr.bf16.mxu0 %v8449_v52  ;;  %v3736_v54 = vmul.bf16 %v7460_v11, %v8517_v59 }
 0x525   :  { %4218 = vmatpush3.bf16.msra.mxu1 %v3620_v19  ;;  %v8518_v19 = vld [vmem:[#allocation140_spill] sm:$0xff] }
 0x526   :  { %4219 = vmatprep.subr.bf16.mxu1 %v3629_v31  ;;  %v3750_v3 = vmul.bf16 %v7607_v57, %v8518_v19  ;;  %v8519_v31 = vld [vmem:[#allocation143_spill] sm:$0xff]  ;;  %v8538_v19 = vld [vmem:[#allocation124_spill] sm:$0xff] }
 0x527   :  { %3800 = vmatpush1.bf16.msra.mxu0 %v3745_v5  ;;  %v3751_v40 = vmul.bf16 %v7616_v7, %v8519_v31  ;;  %v8520_v5 = vld [vmem:[#allocation61_spill] sm:$0xff] }
 0x528   :  { %3801 = vmatprep.subr.bf16.mxu0 %v8449_v52  ;;  %v3728_v30 = vmul.bf16 %v7463_v12, %v8520_v5  ;;  %v8539_v31 = vld [vmem:[#allocation73_spill] sm:$0xff] }
 0x529   :  { %4220 = vmatpush3.bf16.msra.mxu1 %v3621_v20  ;;  %v8521_v20 = vld [vmem:[#allocation79_spill] sm:$0xff] }
 0x52a   :  { %4221 = vmatprep.subr.bf16.mxu1 %v3630_v35  ;;  %v3737_v15 = vmul.bf16 %v7472_v1, %v8521_v20  ;;  %v3753_v35 = vsel %vm8522_vm12, %v3751_v40, 0  ;;  %v3734_v40 = vmul.bf16 %v7531_v48, %v8539_v31 }
 0x52b   :  { %3802 = vmatpush1.bf16.msra.mxu0 %v3746_v61  ;;  %v3729_v61 = vmul.bf16 %v7475_v47, %v8523_v50 }
 0x52c   :  { %3803 = vmatprep.subr.bf16.mxu0 %v8449_v52 }
 0x52d   :  { %4222 = vmatpush3.bf16.msra.mxu1 %v3622_v46  ;;  %v3738_v46 = vmul.bf16 %v7484_v0, %v8524_v62  ;;  %v8546_v62 = vld [vmem:[#allocation78_spill] sm:$0xff] }
 0x52e   :  { %4223 = vmatprep.subr.bf16.mxu1 %v3631_v63  ;;  %v3853_v63 = vmul.bf16 %v7540_v33, %v8525_v51  ;;  %v3854_v33 = vmul.bf16 %v7554_v55, %v8529_v43  ;;  %v8534_v55 = vld [vmem:[#allocation92_spill] sm:$0xff] }
 0x52f   :  { %3804 = vmatpush1.bf16.msra.mxu0 %v3747_v13  ;;  %v3730_v13 = vmul.bf16 %v7487_v23, %v8526_v8  ;;  %v3741_v39 = vmul.bf16 %v7515_v41, %v8534_v55  ;;  %v3839_v8 = vmul.bf16 %v7475_v47, %v8549_v29  ;;  %v8554_v47 = vld [vmem:[#allocation66_spill] sm:$0xff] }
 0x530   :  { %3805 = vmatprep.subr.bf16.mxu0 %v8449_v52 }
 0x531   :  { %4224 = vmatpush3.bf16.msra.mxu1 %v3623_v56  ;;  %v3739_v56 = vmul.bf16 %v7496_v21, %v8528_v34  ;;  %v8552_v34 = vld [vmem:[#allocation64_spill] sm:$0xff] }
 0x532   :  { %4225 = vmatprep.subr.bf16.mxu1 %v3632_v9  ;;  %v8530_v9 = vld [vmem:[#allocation67_spill] sm:$0xff] }
 0x533   :  { %3806 = vmatpush1.bf16.msra.mxu0 %v3748_v58  ;;  %v3731_v28 = vmul.bf16 %v7499_v24, %v8530_v9  ;;  %v8531_v58 = vld [vmem:[#allocation88_spill] sm:$0xff]  ;;  %v8557_v9 = vld [vmem:[#allocation90_spill] sm:$0xff] }
 0x534   :  { %3807 = vmatprep.subr.bf16.mxu0 %v8449_v52  ;;  %v3740_v38 = vmul.bf16 %v7506_v36, %v8531_v58  ;;  %v8559_v58 = vld [vmem:[#allocation94_spill] sm:$0xff] }
 0x535   :  { %4226 = vmatpush3.bf16.msra.mxu1 %v3624_v18 }
 0x536   :  { %4233 = vmatprep.subr.bf16.mxu1 %v3735_v44  ;;  %v3732_v44 = vmul.bf16 %v7509_v10, %v8533_v26 }
 0x537   :  { %3808 = vmatpush1.bf16.msra.mxu0 %v3749_v49  ;;  %v8535_v49 = vld [vmem:[#allocation118_spill] sm:$0xff] }
 0x538   :  { %4080 = vmatmul.mubr.msk.bf16.vlgmr.msra.gmra.mrb[216].mxu1 %vm7534_vm7, %v4984_v2  ;;  %3809 = vmatprep.subr.bf16.mxu0 %v8449_v52  ;;  %v3856_v4 = vmul.bf16 %v7572_v42, %v8535_v49  ;;  %v8540_v42 = vld [vmem:[#allocation74_spill] sm:$0xff] }
 0x539   :  { %4234 = vmatpush3.bf16.msra.mxu1 %v3727_v27  ;;  %4085 = vmatprep.mubr.msk.bf16.mxu1 %vm7384_vm6, %v4984_v2  ;;  %v8536_v27 = vld [vmem:[#allocation71_spill] sm:$0xff]  ;;  %v3845_v5 = vmul.bf16 %v7441_v53, %v8540_v42 }
 0x53a   :  { %4235 = vmatprep.subr.bf16.mxu1 %v3736_v54  ;;  %v3733_v59 = vmul.bf16 %v7518_v17, %v8536_v27  ;;  %v8544_v53 = vld [vmem:[#allocation135_spill] sm:$0xff] }
 0x53b   :  { %3810 = vmatpush1.bf16.msra.mxu0 %v3750_v3  ;;  %v3857_v3 = vmul.bf16 %v7581_v60, %v8538_v19  ;;  %v8543_v60 = vld [vmem:[#allocation76_spill] sm:$0xff] }
 0x53c   :  { %3811 = vmatprep.subr.bf16.mxu0 %v8449_v52  ;;  %v3846_v50 = vmul.bf16 %v7460_v11, %v8543_v60  ;;  %v8547_v11 = vld [vmem:[#allocation139_spill] sm:$0xff] }
 0x53d   :  { %4236 = vmatpush3.bf16.msra.mxu1 %v3728_v30  ;;  %v8541_v30 = vld [vmem:[#allocation130_spill] sm:$0xff]  ;;  %v3860_v51 = vmul.bf16 %v7607_v57, %v8547_v11  ;;  %v3840_v57 = vmul.bf16 %v7487_v23, %v8552_v34 }
 0x53e   :  { %4237 = vmatprep.subr.bf16.mxu1 %v3737_v15  ;;  %v3858_v20 = vmul.bf16 %v7591_v37, %v8541_v30  ;;  %v8542_v15 = vld [vmem:[#allocation58_spill] sm:$0xff] }
 0x53f   :  { %3812 = vmatpush1.bf16.msra.mxu0 %v3753_v35  ;;  %v3837_v35 = vmul.bf16 %v7446_v45, %v8542_v15  ;;  %v8545_v45 = vld [vmem:[#allocation60_spill] sm:$0xff] }
 0x540   :  { %3905 = vmatprep.subr.bf16.mxu0 %v8449_v52  ;;  %v3838_v37 = vmul.bf16 %v7463_v12, %v8545_v45 }
 0x541   :  { %4238 = vmatpush3.bf16.msra.mxu1 %v3729_v61  ;;  %v3859_v61 = vmul.bf16 %v7599_v22, %v8544_v53  ;;  %v8548_v22 = vld [vmem:[#allocation142_spill] sm:$0xff] }
 0x542   :  { %4239 = vmatprep.subr.bf16.mxu1 %v3738_v46  ;;  %4090 = vmatmul.mubr.msk.bf16.vlgmr.msra.gmra.mrb[112].mxu0 %vm7624_vm14, %v4984_v2  ;;  %v3847_v46 = vmul.bf16 %v7472_v1, %v8546_v62 }
 0x543   :  { %3906 = vmatpush1.bf16.msra.mxu0 %v3853_v63  ;;  %4095 = vmatprep.mubr.msk.bf16.mxu0 %vm8527_vm11, %v7453_v32  ;;  %v8532_v32 = vld [vmem:[#allocation112_spill] sm:$0xff]  ;;  %v3861_v63 = vmul.bf16 %v7616_v7, %v8548_v22 }
 0x544   :  { %3907 = vmatprep.subr.bf16.mxu0 %v8449_v52  ;;  %v3855_v18 = vmul.bf16 %v7563_v16, %v8532_v32  ;;  %v8537_v16 = vld [vmem:[#allocation98_spill] sm:$0xff] }
 0x545   :  { %4240 = vmatpush3.bf16.msra.mxu1 %v3730_v13  ;;  %v3742_v54 = vmul.bf16 %v7523_v25, %v8537_v16  ;;  %v8550_v13 = vld [vmem:[#allocation80_spill] sm:$0xff] }
 0x546   :  { %4241 = vmatprep.subr.bf16.mxu1 %v3739_v56  ;;  %v3848_v12 = vmul.bf16 %v7484_v0, %v8550_v13  ;;  %v8553_v56 = vld [vmem:[#allocation82_spill] sm:$0xff]  ;;  %v3841_v0 = vmul.bf16 %v7499_v24, %v8554_v47  ;;  %v8560_v24 = vld [vmem:[#allocation72_spill] sm:$0xff] }
 0x547   :  { %3908 = vmatpush1.bf16.msra.mxu0 %v3854_v33  ;;  %v3849_v7 = vmul.bf16 %v7496_v21, %v8553_v56  ;;  %v8556_v33 = vld [vmem:[#allocation68_spill] sm:$0xff]  ;;  %v3851_v21 = vmul.bf16 %v7515_v41, %v8557_v9 }
 0x548   :  { %3909 = vmatprep.subr.bf16.mxu0 %v8449_v52  ;;  %v3842_v23 = vmul.bf16 %v7509_v10, %v8556_v33 }
 0x549   :  { %4242 = vmatpush3.bf16.msra.mxu1 %v3731_v28  ;;  %v8558_v28 = vld [vmem:[#allocation70_spill] sm:$0xff] }
 0x54a   :  { %4243 = vmatprep.subr.bf16.mxu1 %v3740_v38  ;;  %v3843_v6 = vmul.bf16 %v7518_v17, %v8558_v28  ;;  %v3852_v38 = vmul.bf16 %v7523_v25, %v8559_v58 }
 0x54b   :  { %3910 = vmatpush1.bf16.msra.mxu0 %v3855_v18 }
 0x54c   :  { %3911 = vmatprep.subr.bf16.mxu0 %v8449_v52 }
 0x54d   :  { %4244 = vmatpush3.bf16.msra.mxu1 %v3732_v44 }
 0x54e   :  { %4245 = vmatprep.subr.bf16.mxu1 %v3741_v39 }
 0x54f   :  { %3912 = vmatpush1.bf16.msra.mxu0 %v3856_v4 }
 0x550   :  { %3913 = vmatprep.subr.bf16.mxu0 %v8449_v52 }
 0x551   :  { %4246 = vmatpush3.bf16.msra.mxu1 %v3733_v59 }
 0x552   :  { %4247 = vmatprep.subr.bf16.mxu1 %v3742_v54 }
 0x553   :  { %3914 = vmatpush1.bf16.msra.mxu0 %v3857_v3 }
 0x554   :  { %3915 = vmatprep.subr.bf16.mxu0 %v8449_v52 }
 0x555   :  { %4248 = vmatpush3.bf16.msra.mxu1 %v3734_v40 }
 0x556   :  { %4255 = vmatprep.subr.bf16.mxu1 %v3845_v5 }
 0x557   :  { %3916 = vmatpush1.bf16.msra.mxu0 %v3858_v20 }
 0x558   :  { %4087 = vmatmul.mubr.msk.bf16.vlgmr.msra.gmra.mrb[220].mxu1 %vm7534_vm7, %v4984_v2  ;;  %3917 = vmatprep.subr.bf16.mxu0 %v8449_v52 }
 0x559   :  { %4256 = vmatpush3.bf16.msra.mxu1 %v3837_v35  ;;  %4092 = vmatprep.mubr.msk.bf16.mxu1 %vm7384_vm6, %v4984_v2  ;;  %vm8551_vm6 = vmmov %vm8464_vm1 }
 0x55a   :  { %4257 = vmatprep.subr.bf16.mxu1 %v3846_v50  ;;  %v3863_v1 = vsel %vm8551_vm6, %v3861_v63, 0 }
 0x55b   :  { %3918 = vmatpush1.bf16.msra.mxu0 %v3859_v61 }
 0x55c   :  { %3919 = vmatprep.subr.bf16.mxu0 %v8449_v52 }
 0x55d   :  { %4258 = vmatpush3.bf16.msra.mxu1 %v3838_v37 }
 0x55e   :  { %4259 = vmatprep.subr.bf16.mxu1 %v3847_v46 }
 0x55f   :  { %3920 = vmatpush1.bf16.msra.mxu0 %v3860_v51 }
 0x560   :  { %3921 = vmatprep.subr.bf16.mxu0 %v8449_v52  ;;  %v8555_v52 = vld [vmem:[#allocation85_spill] sm:$0xff] }
 0x561   :  { %4260 = vmatpush3.bf16.msra.mxu1 %v3839_v8  ;;  %v3850_v43 = vmul.bf16 %v7506_v36, %v8555_v52  ;;  %v3844_v36 = vmul.bf16 %v7531_v48, %v8560_v24 }
 0x562   :  { %4261 = vmatprep.subr.bf16.mxu1 %v3848_v12 }
 0x563   :  { %3922 = vmatpush1.bf16.msra.mxu0 %v3863_v1 }
 0x565   :  { %4262 = vmatpush3.bf16.msra.mxu1 %v3840_v57 }
 0x566   :  { %4263 = vmatprep.subr.bf16.mxu1 %v3849_v7  ;;  %4097 = vmatmul.mubr.msk.bf16.vlgmr.msra.gmra.mrb[116].mxu0 %vm7624_vm14, %v4984_v2 }
 0x569   :  { %4264 = vmatpush3.bf16.msra.mxu1 %v3841_v0 }
 0x56a   :  { %4265 = vmatprep.subr.bf16.mxu1 %v3850_v43 }
 0x56d   :  { %4266 = vmatpush3.bf16.msra.mxu1 %v3842_v23 }
 0x56e   :  { %4267 = vmatprep.subr.bf16.mxu1 %v3851_v21 }
 0x571   :  { %4268 = vmatpush3.bf16.msra.mxu1 %v3843_v6 }
 0x572   :  { %4269 = vmatprep.subr.bf16.mxu1 %v3852_v38 }
 0x575   :  { %4270 = vmatpush3.bf16.msra.mxu1 %v3844_v36 }
 0x578   :  { %4094 = vmatmul.mubr.msk.bf16.vlgmr.msra.gmra.mrb[224].mxu1 %vm7534_vm7, %v4984_v2 }
 0x588   :  { %v4183_v10 = vpop.f32.mrb[204].mxu1 }
 0x589   :  { %v4184_v41 = vpop.f32.mrb[205].mxu1 }
 0x58a   :  { %v4185_v32 = vadd.f32 %v4184_v41, %v4183_v10  ;;  %v4186_v18 = vpop.f32.mrb[206].mxu1 }
 0x58b   :  { %v4187_v26 = vpop.f32.mrb[207].mxu1 }
 0x5cb   :  { %v3495_v44 = vpop.f32.mrb[208].mxu1 }
 0x5cc   :  { %v3496_v17 = vadd.f32 %v4185_v32, %v3495_v44  ;;  %v3497_v55 = vpop.f32.mrb[209].mxu1 }
 0x5cd   :  { %v3498_v39 = vpop.f32.mrb[210].mxu1  ;;  %v3604_v25 = vpop.f32.mrb[104].mxu0 }
 0x5ce   :  { %4924 = vrcp.f32 %v3496_v17  ;;  %v3499_v49 = vpop.f32.mrb[211].mxu1  ;;  %v3606_v4 = vpop.f32.mrb[105].mxu0 }
 0x5cf   :  { %v3607_v27 = vpop.f32.mrb[106].mxu0 }
 0x5d0   :  { %v3608_v48 = vpop.f32.mrb[107].mxu0 }
 0x5d8   :  { %v4925_v59 = vpop.eup %4924 }
 0x5d9   :  { %3612 = vperm.xlu0 %4679, %v4925_v59  }
 0x5eb   :  { %v4205_v16 = vpop.f32.mrb[212].mxu1 }
 0x5ec   :  { %v4206_v14 = vpop.f32.mrb[213].mxu1 }
 0x5ed   :  { %v4207_v2 = vadd.f32 %v4206_v14, %v4205_v16  ;;  %v4208_v54 = vpop.f32.mrb[214].mxu1 }
 0x5ee   :  { %v4209_v19 = vpop.f32.mrb[215].mxu1 }
 0x5ef   :  { %v3605_v3 = vadd.f32 %v4207_v2, %v3604_v25 }
 0x5f1   :  { %v3719_v31 = vpop.f32.mrb[108].mxu0 }
 0x5f2   :  { %v3721_v40 = vpop.f32.mrb[109].mxu0 }
 0x5f3   :  { %v3722_v42 = vpop.f32.mrb[110].mxu0 }
 0x5f4   :  { %v3723_v5 = vpop.f32.mrb[111].mxu0 }
 0x60b   :  { %v4227_v30 = vpop.f32.mrb[216].mxu1 }
 0x60c   :  { %v4228_v20 = vpop.f32.mrb[217].mxu1 }
 0x60d   :  { %v4229_v15 = vadd.f32 %v4228_v20, %v4227_v30  ;;  %v4230_v35 = vpop.f32.mrb[218].mxu1 }
 0x60e   :  { %v4231_v60 = vpop.f32.mrb[219].mxu1 }
 0x60f   :  { %v3720_v50 = vadd.f32 %v4229_v15, %v3719_v31 }
 0x615   :  { %v3829_v53 = vpop.f32.mrb[112].mxu0 }
 0x616   :  { %v3831_v61 = vpop.f32.mrb[113].mxu0 }
 0x617   :  { %v3832_v45 = vpop.f32.mrb[114].mxu0 }
 0x618   :  { %v3833_v37 = vpop.f32.mrb[115].mxu0 }
 0x62b   :  { %v4249_v62 = vpop.f32.mrb[220].mxu1 }
 0x62c   :  { %v4250_v46 = vpop.f32.mrb[221].mxu1 }
 0x62d   :  { %v4251_v11 = vadd.f32 %v4250_v46, %v4249_v62  ;;  %v4252_v51 = vpop.f32.mrb[222].mxu1 }
 0x62e   :  { %v4253_v22 = vpop.f32.mrb[223].mxu1 }
 0x62f   :  { %v3830_v63 = vadd.f32 %v4251_v11, %v3829_v53 }
 0x639   :  { %v3939_v29 = vpop.f32.mrb[116].mxu0 }
 0x63a   :  { %v3941_v8 = vpop.f32.mrb[117].mxu0 }
 0x63b   :  { %v3942_v13 = vpop.f32.mrb[118].mxu0 }
 0x63c   :  { %v3943_v12 = vpop.f32.mrb[119].mxu0 }
 0x64b   :  { %v4271_v1 = vpop.f32.mrb[224].mxu1 }
 0x64c   :  { %v4272_v34 = vpop.f32.mrb[225].mxu1 }
 0x64d   :  { %v4273_v57 = vadd.f32 %v4272_v34, %v4271_v1  ;;  %v4274_v56 = vpop.f32.mrb[226].mxu1 }
 0x64e   :  { %v4275_v7 = vpop.f32.mrb[227].mxu1 }
 0x64f   :  { %v3940_v47 = vadd.f32 %v4273_v57, %v3939_v29 }
 0x658   :  { %v3613_v0 = vpop.permute.xlu0 %3612 }
 0x659   :  { %v3615_v52 = vmul.f32 %v3613_v0, %v3605_v3  ;;  %v3725_v43 = vmul.f32 %v3720_v50, %v3613_v0  ;;  %v3835_v33 = vmul.f32 %v3830_v63, %v3613_v0  ;;  %v3945_v23 = vmul.f32 %v3940_v47, %v3613_v0 }
 0x65b   :  { %3616 = vst [vmem:[#allocation5] sm:$0xff] %v3615_v52  ;;  %3726 = vst [vmem:[#allocation5 + $0x8] sm:$0xff] %v3725_v43 }
 0x65c   :  { %3836 = vst [vmem:[#allocation5 + $0x10] sm:$0xff] %v3835_v33  ;;  %3946 = vst [vmem:[#allocation5 + $0x18] sm:$0xff] %v3945_v23 }
 0x65d   :  { %4962 = shalt.err (!%p4959_p12)
}
 0x65e   :  { %s4963_s12 = scalar_lea.hbm %s7905_s9, 512 }
 0x65f   :  { %p4964_p13 = scmp.ne.s32.totalorder %s7905_s9, %s4963_s12  ;;  %p4967_p0 = scmp.lt.u32.totalorder %s4963_s12, %s7905_s9 }
 0x661   :  { %p4969_p1 = pnand %p4967_p0, %p4964_p13 }
 0x663   :  { %4972 = shalt.err (!%p4969_p1)
}
 0x664   :  { %3956 = dma.vmem_to_hbm [thread:$0]  %s3954_s29, 512, %s7905_s9, [#allocation4]  }
 0x665   :  { %4975 = dma.done.wait [#allocation4], 512  }
 0x666   :  { %4976 = vsyncadd [#allocation4], 4294966784 }
 0x667   :  { %3960 = vsyncpa [#allocation3], 1 }
 0x668   :  { %3961 = vsyncpa [#allocation4], 1 }

</bundles_post_ra>
